<compile_context>
chip_gen: v6e
topology: v6e:2x2x1
jax: 0.10.0
libtpu: 0.0.40
codegen_flags: <defaults>
</compile_context>

<pallas_src>
import functools

import jax
import jax.numpy as jnp
from jax.experimental import pallas as pl
from jax.experimental.pallas import tpu as pltpu

COMMON_FEATURES = 6
DDM_NUM = 20
DIFFERECE_COL = 5
LATENT_DIM = 8
NUM_LABELS = 3
BN_EPS = 1e-5
VAE_IN = DDM_NUM + DIFFERECE_COL + COMMON_FEATURES  # 31
DM_OUT = DDM_NUM + DIFFERECE_COL                     # 25
SEQ = 5        # VAE_DA reshapes rows into groups of 5 timesteps
CONV_K = 3
CONV_MID = 36
PAD = 256      # uniform padded layer width (max layer width in the model)

# ---------------------------------------------------------------------------
# Weight-slot layout inside the single packed (NSLOT, 256, 256) weight stack
# ---------------------------------------------------------------------------
S_DDM0 = 0                       # 6 DDM layers: slots 0..5
S_SRC_CONV = 6                   # composed conv1*conv2 of the src VAE
S_SRC_E0 = 7                     # src enc0, enc1, enc2, dec0, dec1, dec2: 7..12
S_TGT_COMMON = 13                # tgt conv, common-feature row block (carries bias)
S_TGT_DM0 = 14                   # tgt conv, per-timestep dmval row blocks: 14..18
S_TGT_E0 = 19                    # tgt enc0..dec2: 19..24
S_MLP0 = 25                      # shared feature MLP: 25..28
S_CENTRAL = 29
S_FC0 = 30                       # classify layers: 30..33
NSLOT = 34


# ---------------------------------------------------------------------------
# In-kernel activation helpers
# ---------------------------------------------------------------------------
def _relu(y):
    return jnp.maximum(y, 0.0)


def _leaky(y):                       # LeakyReLU(0.2)
    return jnp.maximum(y, 0.2 * y)


def _sigmoid(y):                     # sigmoid(y) = 0.5*(tanh(y/2)+1), uses EUP
    return 0.5 * (jnp.tanh(0.5 * y) + 1.0)


# ---------------------------------------------------------------------------
# The single fused kernel
# ---------------------------------------------------------------------------
def _fused_kernel(xin_ref, w_ref, b_ref, out_ref, *, batch):
    B = batch
    f32 = jnp.float32

    def mm(h, slot):
        # bf16 weights, f32 activations/bias, f32 MXU accumulate
        return (jnp.dot(h.astype(jnp.bfloat16), w_ref[slot],
                        preferred_element_type=f32) + b_ref[slot])

    # packed input slab: [viirs (5B rows, time-major perm) | src flat | common flat]
    viirs = xin_ref[0:5 * B, :]          # (5B, 256)   valid cols 0:20
    x_src = xin_ref[5 * B:6 * B, :]      # (B, 256)    valid cols 0:155
    common = xin_ref[6 * B:7 * B, :]     # (B, 256)    valid cols 0:30

    # ---- DDM chain (Linear+BN folded; Sigmoid on the first 5 layers) ----
    h = viirs
    for i in range(6):
        h = mm(h, S_DDM0 + i)
        if i < 5:
            h = _sigmoid(h)
    dm = h                               # (5B, 256)   valid cols 0:25, rows t*B+b

    # ---- VAE encoder/decoder tail (shared structure, per-stack weights) ----
    def vae_tail(h_conv, e0):
        h = _leaky(mm(h_conv, e0))
        h = _leaky(mm(h, e0 + 1))
        enc = jnp.tanh(_leaky(mm(h, e0 + 2)))   # cols 0:8 = mu, 8:16 = logvar
        d = _leaky(mm(enc, e0 + 3))             # dec0 weight rows 8: are 0 -> z = mu
        d = _leaky(mm(d, e0 + 4))
        dec = mm(d, e0 + 5)                     # valid cols 0:31
        return enc, dec

    # src VAE: composed conv1*conv2 is one matmul on the flat (B, 155) input
    enc_src, dec_src = vae_tail(mm(x_src, S_SRC_CONV), S_SRC_E0)

    # tgt VAE: conv applied to [dmval | common] WITHOUT materialising the
    # (B, 5*31) reshape — per-timestep contiguous row blocks of dm hit their
    # own pre-split weight slot; the common-feature slot carries the conv bias.
    hc = mm(common, S_TGT_COMMON)
    for t in range(SEQ):
        hc = hc + mm(dm[t * B:(t + 1) * B, :], S_TGT_DM0 + t)   # zero-bias slots
    enc_tgt, dec_tgt = vae_tail(hc, S_TGT_E0)

    # ---- shared feature MLP + central + classify on [mu_src; mu_tgt] ----
    g = jnp.concatenate([enc_src, enc_tgt], axis=0)   # (2B, 256); mlp0 rows 8: are 0
    for i in range(4):
        g = _relu(mm(g, S_MLP0 + i))
    centr = mm(g, S_CENTRAL)                          # valid cols 0:32
    c = centr
    for i in range(3):
        c = _relu(mm(c, S_FC0 + i))
    logits = mm(c, S_FC0 + 3)                         # valid cols 0:3

    # ---- single lane-dense output slab (full 256-lane unmasked stores) ----
    out_ref[0:5 * B, :] = dm
    out_ref[5 * B:6 * B, :] = enc_src
    out_ref[6 * B:7 * B, :] = dec_src
    out_ref[7 * B:8 * B, :] = enc_tgt
    out_ref[8 * B:9 * B, :] = dec_tgt
    out_ref[9 * B:11 * B, :] = centr
    out_ref[11 * B:13 * B, :] = logits


# ---------------------------------------------------------------------------
# Parameter construction (mimics PyTorch inits), with BN/bias folding,
# Conv1d -> matmul conversion, conv1*conv2 pre-composition and packing into a
# single padded bf16 weight stack — all done once at build time.
# ---------------------------------------------------------------------------
def _uniform(key, shape, bound):
    return jax.random.uniform(key, shape, jnp.float32, -bound, bound)


def make_linear(key, n_in, n_out, init="default"):
    kw, kb = jax.random.split(key)
    if init == "kaiming":
        w = _uniform(kw, (n_in, n_out), (2.0 ** 0.5) * (3.0 / n_in) ** 0.5)
    elif init == "xavier":
        w = _uniform(kw, (n_in, n_out), (6.0 / (n_in + n_out)) ** 0.5)
    else:
        w = _uniform(kw, (n_in, n_out), 1.0 / n_in ** 0.5)
    b = _uniform(kb, (n_out,), 1.0 / n_in ** 0.5)
    return w, b


def _bn_scale_shift(n):
    # PyTorch BatchNorm1d eval-mode defaults: gamma=1, beta=0, mean=0, var=1
    gamma = jnp.ones((n,), jnp.float32)
    beta = jnp.zeros((n,), jnp.float32)
    mean = jnp.zeros((n,), jnp.float32)
    var = jnp.ones((n,), jnp.float32)
    scale = gamma / jnp.sqrt(var + BN_EPS)
    shift = beta - mean * scale
    return scale, shift


def fold_linear_bn(wb, n_out, bn=True):
    """Fold eval-mode BatchNorm into (W, b): W' = W*scale, b' = b*scale + shift."""
    w, b = wb
    if bn:
        scale, shift = _bn_scale_shift(n_out)
        w = w * scale[None, :]
        b = b * scale + shift
    return w, b.reshape(1, n_out)


def make_conv1d(key, c_in, c_out, k):
    kw, kb = jax.random.split(key)
    bound = 1.0 / (c_in * k) ** 0.5
    w = _uniform(kw, (c_out, c_in, k), bound)      # PyTorch layout (Cout, Cin, K)
    b = _uniform(kb, (c_out,), bound)
    return w, b


def conv1_as_matmul(w, b, seq_len=SEQ):
    """Block-Toeplitz matrix so conv1 acts on the flat (B, L*Cin) input.
    Output column layout: cout * L_out + t (matches conv2_as_matmul rows)."""
    c_out, c_in, k = w.shape
    l_out = seq_len - k + 1
    tb = jnp.zeros((seq_len, c_in, c_out, l_out), jnp.float32)
    for t_out in range(l_out):
        for kk in range(k):
            t_in = t_out + kk
            tb = tb.at[t_in, :, :, t_out].set(jnp.transpose(w[:, :, kk]))
    t_mat = tb.reshape(seq_len * c_in, c_out * l_out)
    b_full = jnp.repeat(b, l_out).reshape(1, c_out * l_out)
    return t_mat, b_full


def conv2_as_matmul(w, b):
    """Conv over L=3, K=3 (single output position): plain matmul.
    Row layout cin * K + k matches conv1 output column layout."""
    c_out, c_in, k = w.shape
    w_mat = jnp.transpose(w, (1, 2, 0)).reshape(c_in * k, c_out)
    return w_mat, b.reshape(1, c_out)


def make_vae_raw(key):
    """One VAE_DA: composed conv matmul + encoder/decoder layers (BN folded)."""
    ks = jax.random.split(key, 8)
    c1w, c1b = make_conv1d(ks[0], VAE_IN, CONV_MID, CONV_K)
    c2w, c2b = make_conv1d(ks[1], CONV_MID, VAE_IN, CONV_K)
    t1, t1b = conv1_as_matmul(c1w, c1b)            # (155, 108), (1, 108)
    w2, w2b = conv2_as_matmul(c2w, c2b)            # (108, 31),  (1, 31)
    wc = t1 @ w2                                   # composed conv (155, 31)
    bc = t1b @ w2 + w2b                            # (1, 31)
    tail = [
        fold_linear_bn(make_linear(ks[2], VAE_IN, 256), 256),
        fold_linear_bn(make_linear(ks[3], 256, 128), 128),
        fold_linear_bn(make_linear(ks[4], 128, 2 * LATENT_DIM), 2 * LATENT_DIM),
        fold_linear_bn(make_linear(ks[5], LATENT_DIM, 128), 128),
        fold_linear_bn(make_linear(ks[6], 128, 256), 256),
        fold_linear_bn(make_linear(ks[7], 256, VAE_IN), VAE_IN, bn=False),
    ]
    return (wc, bc), tail


def make_ddm(key):
    dims = [(DDM_NUM, 256), (256, 256), (256, 256), (256, 128), (128, 64),
            (64, DM_OUT)]
    ks = jax.random.split(key, len(dims))
    return [fold_linear_bn(make_linear(k, i, o, "xavier"), o, bn=True)
            for k, (i, o) in zip(ks, dims)]


def make_mlp(key):
    dims = [(LATENT_DIM, 128), (128, 256), (256, 128), (128, 64)]
    ks = jax.random.split(key, len(dims))
    return [fold_linear_bn(make_linear(k, i, o, "kaiming"), o, bn=True)
            for k, (i, o) in zip(ks, dims)]


def make_classify(key):
    dims = [(32, 64), (64, 128), (128, 64), (64, NUM_LABELS)]
    ks = jax.random.split(key, len(dims))
    return [fold_linear_bn(make_linear(k, i, o, "kaiming"), o, bn=True)
            for k, (i, o) in zip(ks, dims)]


def _pad_slot(w, b=None):
    wpad = jnp.zeros((PAD, PAD), jnp.float32).at[:w.shape[0], :w.shape[1]].set(w)
    bpad = jnp.zeros((1, PAD), jnp.float32)
    if b is not None:
        b = jnp.reshape(b, (1, -1))
        bpad = bpad.at[:, :b.shape[1]].set(b)
    return wpad, bpad


def make_deep_vae(key):
    ks = jax.random.split(key, 6)
    src_conv, src_tail = make_vae_raw(ks[0])
    tgt_conv, tgt_tail = make_vae_raw(ks[1])
    ddm = make_ddm(ks[2])
    mlp = make_mlp(ks[3])
    central = fold_linear_bn(make_linear(ks[4], 64, 32, "xavier"), 32, bn=False)
    fc = make_classify(ks[5])

    slots = [None] * NSLOT
    for i, wb in enumerate(ddm):
        slots[S_DDM0 + i] = wb
    slots[S_SRC_CONV] = src_conv
    for i, wb in enumerate(src_tail):
        slots[S_SRC_E0 + i] = wb
    # tgt conv split: common-feature rows + per-timestep dmval row blocks
    wc, bc = tgt_conv
    wc3 = wc.reshape(SEQ, VAE_IN, VAE_IN)           # [t, in_feature, out]
    slots[S_TGT_COMMON] = (
        wc3[:, DM_OUT:, :].reshape(SEQ * COMMON_FEATURES, VAE_IN), bc)
    for t in range(SEQ):
        slots[S_TGT_DM0 + t] = (wc3[t, :DM_OUT, :], None)
    for i, wb in enumerate(tgt_tail):
        slots[S_TGT_E0 + i] = wb
    for i, wb in enumerate(mlp):
        slots[S_MLP0 + i] = wb
    slots[S_CENTRAL] = central
    for i, wb in enumerate(fc):
        slots[S_FC0 + i] = wb

    ws, bs = [], []
    for w, b in slots:
        wp, bp = _pad_slot(w, b)
        ws.append(wp)
        bs.append(bp)
    weight_stack = jnp.stack(ws, axis=0).astype(jnp.bfloat16)   # (NSLOT, 256, 256)
    bias_stack = jnp.stack(bs, axis=0)                          # (NSLOT, 1, 256) f32
    return {"w": weight_stack, "b": bias_stack}


# ---------------------------------------------------------------------------
# Deep_VAE forward (single pallas_call + pure layout plumbing in XLA)
# ---------------------------------------------------------------------------
def deep_vae_forward(params, src, tgt):
    n = src.shape[0]
    assert n % SEQ == 0, "row count must be divisible by 5 (VAE_DA reshape)"
    B = n // SEQ

    # wrapper-side layout plumbing (reshape / pad / concat only, no compute)
    viirs_p = (tgt[:, :DDM_NUM].reshape(B, SEQ, DDM_NUM)
               .transpose(1, 0, 2).reshape(SEQ * B, DDM_NUM))      # rows t*B+b
    x_src = src.reshape(B, SEQ * VAE_IN)                           # (B, 155)
    common_flat = tgt[:, DDM_NUM:DDM_NUM + COMMON_FEATURES].reshape(
        B, SEQ * COMMON_FEATURES)                                  # (B, 30)

    def padc(a):
        return jnp.pad(a, ((0, 0), (0, PAD - a.shape[1])))

    xin = jnp.concatenate([padc(viirs_p), padc(x_src), padc(common_flat)],
                          axis=0)                                  # (7B, 256)

    vmem = pl.BlockSpec(memory_space=pltpu.MemorySpace.VMEM)
    out = pl.pallas_call(
        functools.partial(_fused_kernel, batch=B),
        out_shape=jax.ShapeDtypeStruct((13 * B, PAD), jnp.float32),
        in_specs=[vmem, vmem, vmem],
        out_specs=vmem,
    )(xin, params["w"], params["b"])

    # unpack the lane-dense output slab (all slicing done by XLA, outside)
    dm_perm = out[0:5 * B, :DM_OUT]
    dmval = dm_perm.reshape(SEQ, B, DM_OUT).transpose(1, 0, 2).reshape(n, DM_OUT)
    enc_src = out[5 * B:6 * B]
    dec_src = out[6 * B:7 * B, :VAE_IN]
    enc_tgt = out[7 * B:8 * B]
    dec_tgt = out[8 * B:9 * B, :VAE_IN]
    mu_src = enc_src[:, :LATENT_DIM]
    lv_src = enc_src[:, LATENT_DIM:2 * LATENT_DIM]
    mu_tgt = enc_tgt[:, :LATENT_DIM]
    lv_tgt = enc_tgt[:, LATENT_DIM:2 * LATENT_DIM]
    centr = out[9 * B:11 * B, :32]
    logits = out[11 * B:13 * B, :NUM_LABELS]
    centr1, centr2 = centr[:B], centr[B:]
    s, t = logits[:B], logits[B:]
    combine_d = jnp.concatenate(
        [dmval, tgt[:, DDM_NUM:DDM_NUM + COMMON_FEATURES]], axis=1)
    z_src, z_tgt = mu_src, mu_tgt        # eval-mode reparameterise (z = mu)

    return (s, t, dmval, centr1, centr2, dec_src, mu_src, lv_src,
            dec_tgt, mu_tgt, lv_tgt, combine_d, z_src, z_tgt)


if __name__ == "__main__":
    key = jax.random.PRNGKey(0)
    k_params, k_src, k_tgt = jax.random.split(key, 3)

    params = make_deep_vae(k_params)

    # Row count must be divisible by 5 (VAE_DA reshape); 10 rows -> B = 2.
    src = jax.random.normal(k_src, (10, VAE_IN), jnp.float32)                     # (10, 31)
    tgt = jax.random.normal(k_tgt, (10, DDM_NUM + COMMON_FEATURES), jnp.float32)  # (10, 26)

    fwd = jax.jit(deep_vae_forward)
    outs = jax.block_until_ready(fwd(params, src, tgt))

    expected_shapes = [
        (2, NUM_LABELS), (2, NUM_LABELS), (10, DM_OUT), (2, 32), (2, 32),
        (2, VAE_IN), (2, LATENT_DIM), (2, LATENT_DIM),
        (2, VAE_IN), (2, LATENT_DIM), (2, LATENT_DIM),
        (10, VAE_IN), (2, LATENT_DIM), (2, LATENT_DIM),
    ]
    assert len(outs) == 14
    for o, es in zip(outs, expected_shapes):
        assert o.shape == es, (o.shape, es)
        assert bool(jnp.all(jnp.isfinite(o)))

    print("KERNEL_OK")
</pallas_src>

<mosaic_0001>
module attributes {stable_mosaic.version = 11 : i64} {
  func.func @_fused_kernel(%arg0: memref<14x256xf32, #tpu.memory_space<vmem>>, %arg1: memref<34x256x256xbf16, #tpu.memory_space<vmem>>, %arg2: memref<34x1x256xf32, #tpu.memory_space<vmem>>, %arg3: memref<26x256xf32, #tpu.memory_space<vmem>>) attributes {dimension_semantics = [], scalar_prefetch = 0 : i64, scratch_operands = 0 : i64, tpu.core_type = #tpu.core_type<tc>} {
    %c0 = arith.constant 0 : index
    %c0_0 = arith.constant 0 : index
    %0 = vector.load %arg0[%c0, %c0_0] : memref<14x256xf32, #tpu.memory_space<vmem>>, vector<10x256xf32>
    %c10 = arith.constant 10 : index
    %c0_1 = arith.constant 0 : index
    %1 = vector.load %arg0[%c10, %c0_1] : memref<14x256xf32, #tpu.memory_space<vmem>>, vector<2x256xf32>
    %c12 = arith.constant 12 : index
    %c0_2 = arith.constant 0 : index
    %2 = vector.load %arg0[%c12, %c0_2] : memref<14x256xf32, #tpu.memory_space<vmem>>, vector<2x256xf32>
    %3 = arith.truncf %0 : vector<10x256xf32> to vector<10x256xbf16>
    %c0_3 = arith.constant 0 : index
    %c0_4 = arith.constant 0 : index
    %c0_5 = arith.constant 0 : index
    %4 = vector.load %arg1[%c0_3, %c0_4, %c0_5] : memref<34x256x256xbf16, #tpu.memory_space<vmem>>, vector<1x256x256xbf16>
    %5 = vector.shape_cast %4 : vector<1x256x256xbf16> to vector<256x256xbf16>
    %cst = arith.constant dense<0.000000e+00> : vector<10x256xf32>
    %6 = tpu.matmul %3, %5, %cst {dimension_numbers = #tpu.dot_dimension_numbers<[1], [0], [0], [1], [0, 0, 1, 1], [], []>} : vector<10x256xbf16>, vector<256x256xbf16>, vector<10x256xf32> -> vector<10x256xf32>
    %c0_6 = arith.constant 0 : index
    %c0_7 = arith.constant 0 : index
    %c0_8 = arith.constant 0 : index
    %7 = vector.load %arg2[%c0_6, %c0_7, %c0_8] : memref<34x1x256xf32, #tpu.memory_space<vmem>>, vector<1x1x256xf32>
    %8 = vector.shape_cast %7 : vector<1x1x256xf32> to vector<1x256xf32>
    %9 = vector.broadcast %8 : vector<1x256xf32> to vector<10x256xf32>
    %10 = arith.addf %6, %9 : vector<10x256xf32>
    %cst_9 = arith.constant 5.000000e-01 : f32
    %11 = vector.broadcast %cst_9 : f32 to vector<10x256xf32>
    %12 = arith.mulf %11, %10 : vector<10x256xf32>
    %13 = math.tanh %12 : vector<10x256xf32>
    %cst_10 = arith.constant 1.000000e+00 : f32
    %14 = vector.broadcast %cst_10 : f32 to vector<10x256xf32>
    %15 = arith.addf %13, %14 : vector<10x256xf32>
    %cst_11 = arith.constant 5.000000e-01 : f32
    %16 = vector.broadcast %cst_11 : f32 to vector<10x256xf32>
    %17 = arith.mulf %16, %15 : vector<10x256xf32>
    %18 = arith.truncf %17 : vector<10x256xf32> to vector<10x256xbf16>
    %c1 = arith.constant 1 : index
    %c0_12 = arith.constant 0 : index
    %c0_13 = arith.constant 0 : index
    %19 = vector.load %arg1[%c1, %c0_12, %c0_13] : memref<34x256x256xbf16, #tpu.memory_space<vmem>>, vector<1x256x256xbf16>
    %20 = vector.shape_cast %19 : vector<1x256x256xbf16> to vector<256x256xbf16>
    %cst_14 = arith.constant dense<0.000000e+00> : vector<10x256xf32>
    %21 = tpu.matmul %18, %20, %cst_14 {dimension_numbers = #tpu.dot_dimension_numbers<[1], [0], [0], [1], [0, 0, 1, 1], [], []>} : vector<10x256xbf16>, vector<256x256xbf16>, vector<10x256xf32> -> vector<10x256xf32>
    %c1_15 = arith.constant 1 : index
    %c0_16 = arith.constant 0 : index
    %c0_17 = arith.constant 0 : index
    %22 = vector.load %arg2[%c1_15, %c0_16, %c0_17] : memref<34x1x256xf32, #tpu.memory_space<vmem>>, vector<1x1x256xf32>
    %23 = vector.shape_cast %22 : vector<1x1x256xf32> to vector<1x256xf32>
    %24 = vector.broadcast %23 : vector<1x256xf32> to vector<10x256xf32>
    %25 = arith.addf %21, %24 : vector<10x256xf32>
    %cst_18 = arith.constant 5.000000e-01 : f32
    %26 = vector.broadcast %cst_18 : f32 to vector<10x256xf32>
    %27 = arith.mulf %26, %25 : vector<10x256xf32>
    %28 = math.tanh %27 : vector<10x256xf32>
    %cst_19 = arith.constant 1.000000e+00 : f32
    %29 = vector.broadcast %cst_19 : f32 to vector<10x256xf32>
    %30 = arith.addf %28, %29 : vector<10x256xf32>
    %cst_20 = arith.constant 5.000000e-01 : f32
    %31 = vector.broadcast %cst_20 : f32 to vector<10x256xf32>
    %32 = arith.mulf %31, %30 : vector<10x256xf32>
    %33 = arith.truncf %32 : vector<10x256xf32> to vector<10x256xbf16>
    %c2 = arith.constant 2 : index
    %c0_21 = arith.constant 0 : index
    %c0_22 = arith.constant 0 : index
    %34 = vector.load %arg1[%c2, %c0_21, %c0_22] : memref<34x256x256xbf16, #tpu.memory_space<vmem>>, vector<1x256x256xbf16>
    %35 = vector.shape_cast %34 : vector<1x256x256xbf16> to vector<256x256xbf16>
    %cst_23 = arith.constant dense<0.000000e+00> : vector<10x256xf32>
    %36 = tpu.matmul %33, %35, %cst_23 {dimension_numbers = #tpu.dot_dimension_numbers<[1], [0], [0], [1], [0, 0, 1, 1], [], []>} : vector<10x256xbf16>, vector<256x256xbf16>, vector<10x256xf32> -> vector<10x256xf32>
    %c2_24 = arith.constant 2 : index
    %c0_25 = arith.constant 0 : index
    %c0_26 = arith.constant 0 : index
    %37 = vector.load %arg2[%c2_24, %c0_25, %c0_26] : memref<34x1x256xf32, #tpu.memory_space<vmem>>, vector<1x1x256xf32>
    %38 = vector.shape_cast %37 : vector<1x1x256xf32> to vector<1x256xf32>
    %39 = vector.broadcast %38 : vector<1x256xf32> to vector<10x256xf32>
    %40 = arith.addf %36, %39 : vector<10x256xf32>
    %cst_27 = arith.constant 5.000000e-01 : f32
    %41 = vector.broadcast %cst_27 : f32 to vector<10x256xf32>
    %42 = arith.mulf %41, %40 : vector<10x256xf32>
    %43 = math.tanh %42 : vector<10x256xf32>
    %cst_28 = arith.constant 1.000000e+00 : f32
    %44 = vector.broadcast %cst_28 : f32 to vector<10x256xf32>
    %45 = arith.addf %43, %44 : vector<10x256xf32>
    %cst_29 = arith.constant 5.000000e-01 : f32
    %46 = vector.broadcast %cst_29 : f32 to vector<10x256xf32>
    %47 = arith.mulf %46, %45 : vector<10x256xf32>
    %48 = arith.truncf %47 : vector<10x256xf32> to vector<10x256xbf16>
    %c3 = arith.constant 3 : index
    %c0_30 = arith.constant 0 : index
    %c0_31 = arith.constant 0 : index
    %49 = vector.load %arg1[%c3, %c0_30, %c0_31] : memref<34x256x256xbf16, #tpu.memory_space<vmem>>, vector<1x256x256xbf16>
    %50 = vector.shape_cast %49 : vector<1x256x256xbf16> to vector<256x256xbf16>
    %cst_32 = arith.constant dense<0.000000e+00> : vector<10x256xf32>
    %51 = tpu.matmul %48, %50, %cst_32 {dimension_numbers = #tpu.dot_dimension_numbers<[1], [0], [0], [1], [0, 0, 1, 1], [], []>} : vector<10x256xbf16>, vector<256x256xbf16>, vector<10x256xf32> -> vector<10x256xf32>
    %c3_33 = arith.constant 3 : index
    %c0_34 = arith.constant 0 : index
    %c0_35 = arith.constant 0 : index
    %52 = vector.load %arg2[%c3_33, %c0_34, %c0_35] : memref<34x1x256xf32, #tpu.memory_space<vmem>>, vector<1x1x256xf32>
    %53 = vector.shape_cast %52 : vector<1x1x256xf32> to vector<1x256xf32>
    %54 = vector.broadcast %53 : vector<1x256xf32> to vector<10x256xf32>
    %55 = arith.addf %51, %54 : vector<10x256xf32>
    %cst_36 = arith.constant 5.000000e-01 : f32
    %56 = vector.broadcast %cst_36 : f32 to vector<10x256xf32>
    %57 = arith.mulf %56, %55 : vector<10x256xf32>
    %58 = math.tanh %57 : vector<10x256xf32>
    %cst_37 = arith.constant 1.000000e+00 : f32
    %59 = vector.broadcast %cst_37 : f32 to vector<10x256xf32>
    %60 = arith.addf %58, %59 : vector<10x256xf32>
    %cst_38 = arith.constant 5.000000e-01 : f32
    %61 = vector.broadcast %cst_38 : f32 to vector<10x256xf32>
    %62 = arith.mulf %61, %60 : vector<10x256xf32>
    %63 = arith.truncf %62 : vector<10x256xf32> to vector<10x256xbf16>
    %c4 = arith.constant 4 : index
    %c0_39 = arith.constant 0 : index
    %c0_40 = arith.constant 0 : index
    %64 = vector.load %arg1[%c4, %c0_39, %c0_40] : memref<34x256x256xbf16, #tpu.memory_space<vmem>>, vector<1x256x256xbf16>
    %65 = vector.shape_cast %64 : vector<1x256x256xbf16> to vector<256x256xbf16>
    %cst_41 = arith.constant dense<0.000000e+00> : vector<10x256xf32>
    %66 = tpu.matmul %63, %65, %cst_41 {dimension_numbers = #tpu.dot_dimension_numbers<[1], [0], [0], [1], [0, 0, 1, 1], [], []>} : vector<10x256xbf16>, vector<256x256xbf16>, vector<10x256xf32> -> vector<10x256xf32>
    %c4_42 = arith.constant 4 : index
    %c0_43 = arith.constant 0 : index
    %c0_44 = arith.constant 0 : index
    %67 = vector.load %arg2[%c4_42, %c0_43, %c0_44] : memref<34x1x256xf32, #tpu.memory_space<vmem>>, vector<1x1x256xf32>
    %68 = vector.shape_cast %67 : vector<1x1x256xf32> to vector<1x256xf32>
    %69 = vector.broadcast %68 : vector<1x256xf32> to vector<10x256xf32>
    %70 = arith.addf %66, %69 : vector<10x256xf32>
    %cst_45 = arith.constant 5.000000e-01 : f32
    %71 = vector.broadcast %cst_45 : f32 to vector<10x256xf32>
    %72 = arith.mulf %71, %70 : vector<10x256xf32>
    %73 = math.tanh %72 : vector<10x256xf32>
    %cst_46 = arith.constant 1.000000e+00 : f32
    %74 = vector.broadcast %cst_46 : f32 to vector<10x256xf32>
    %75 = arith.addf %73, %74 : vector<10x256xf32>
    %cst_47 = arith.constant 5.000000e-01 : f32
    %76 = vector.broadcast %cst_47 : f32 to vector<10x256xf32>
    %77 = arith.mulf %76, %75 : vector<10x256xf32>
    %78 = arith.truncf %77 : vector<10x256xf32> to vector<10x256xbf16>
    %c5 = arith.constant 5 : index
    %c0_48 = arith.constant 0 : index
    %c0_49 = arith.constant 0 : index
    %79 = vector.load %arg1[%c5, %c0_48, %c0_49] : memref<34x256x256xbf16, #tpu.memory_space<vmem>>, vector<1x256x256xbf16>
    %80 = vector.shape_cast %79 : vector<1x256x256xbf16> to vector<256x256xbf16>
    %cst_50 = arith.constant dense<0.000000e+00> : vector<10x256xf32>
    %81 = tpu.matmul %78, %80, %cst_50 {dimension_numbers = #tpu.dot_dimension_numbers<[1], [0], [0], [1], [0, 0, 1, 1], [], []>} : vector<10x256xbf16>, vector<256x256xbf16>, vector<10x256xf32> -> vector<10x256xf32>
    %c5_51 = arith.constant 5 : index
    %c0_52 = arith.constant 0 : index
    %c0_53 = arith.constant 0 : index
    %82 = vector.load %arg2[%c5_51, %c0_52, %c0_53] : memref<34x1x256xf32, #tpu.memory_space<vmem>>, vector<1x1x256xf32>
    %83 = vector.shape_cast %82 : vector<1x1x256xf32> to vector<1x256xf32>
    %84 = vector.broadcast %83 : vector<1x256xf32> to vector<10x256xf32>
    %85 = arith.addf %81, %84 : vector<10x256xf32>
    %86 = arith.truncf %1 : vector<2x256xf32> to vector<2x256xbf16>
    %c6 = arith.constant 6 : index
    %c0_54 = arith.constant 0 : index
    %c0_55 = arith.constant 0 : index
    %87 = vector.load %arg1[%c6, %c0_54, %c0_55] : memref<34x256x256xbf16, #tpu.memory_space<vmem>>, vector<1x256x256xbf16>
    %88 = vector.shape_cast %87 : vector<1x256x256xbf16> to vector<256x256xbf16>
    %cst_56 = arith.constant dense<0.000000e+00> : vector<2x256xf32>
    %89 = tpu.matmul %86, %88, %cst_56 {dimension_numbers = #tpu.dot_dimension_numbers<[1], [0], [0], [1], [0, 0, 1, 1], [], []>} : vector<2x256xbf16>, vector<256x256xbf16>, vector<2x256xf32> -> vector<2x256xf32>
    %c6_57 = arith.constant 6 : index
    %c0_58 = arith.constant 0 : index
    %c0_59 = arith.constant 0 : index
    %90 = vector.load %arg2[%c6_57, %c0_58, %c0_59] : memref<34x1x256xf32, #tpu.memory_space<vmem>>, vector<1x1x256xf32>
    %91 = vector.shape_cast %90 : vector<1x1x256xf32> to vector<1x256xf32>
    %92 = vector.broadcast %91 : vector<1x256xf32> to vector<2x256xf32>
    %93 = arith.addf %89, %92 : vector<2x256xf32>
    %94 = arith.truncf %93 : vector<2x256xf32> to vector<2x256xbf16>
    %c7 = arith.constant 7 : index
    %c0_60 = arith.constant 0 : index
    %c0_61 = arith.constant 0 : index
    %95 = vector.load %arg1[%c7, %c0_60, %c0_61] : memref<34x256x256xbf16, #tpu.memory_space<vmem>>, vector<1x256x256xbf16>
    %96 = vector.shape_cast %95 : vector<1x256x256xbf16> to vector<256x256xbf16>
    %cst_62 = arith.constant dense<0.000000e+00> : vector<2x256xf32>
    %97 = tpu.matmul %94, %96, %cst_62 {dimension_numbers = #tpu.dot_dimension_numbers<[1], [0], [0], [1], [0, 0, 1, 1], [], []>} : vector<2x256xbf16>, vector<256x256xbf16>, vector<2x256xf32> -> vector<2x256xf32>
    %c7_63 = arith.constant 7 : index
    %c0_64 = arith.constant 0 : index
    %c0_65 = arith.constant 0 : index
    %98 = vector.load %arg2[%c7_63, %c0_64, %c0_65] : memref<34x1x256xf32, #tpu.memory_space<vmem>>, vector<1x1x256xf32>
    %99 = vector.shape_cast %98 : vector<1x1x256xf32> to vector<1x256xf32>
    %100 = vector.broadcast %99 : vector<1x256xf32> to vector<2x256xf32>
    %101 = arith.addf %97, %100 : vector<2x256xf32>
    %cst_66 = arith.constant 2.000000e-01 : f32
    %102 = vector.broadcast %cst_66 : f32 to vector<2x256xf32>
    %103 = arith.mulf %102, %101 : vector<2x256xf32>
    %104 = arith.maximumf %101, %103 : vector<2x256xf32>
    %105 = arith.truncf %104 : vector<2x256xf32> to vector<2x256xbf16>
    %c8 = arith.constant 8 : index
    %c0_67 = arith.constant 0 : index
    %c0_68 = arith.constant 0 : index
    %106 = vector.load %arg1[%c8, %c0_67, %c0_68] : memref<34x256x256xbf16, #tpu.memory_space<vmem>>, vector<1x256x256xbf16>
    %107 = vector.shape_cast %106 : vector<1x256x256xbf16> to vector<256x256xbf16>
    %cst_69 = arith.constant dense<0.000000e+00> : vector<2x256xf32>
    %108 = tpu.matmul %105, %107, %cst_69 {dimension_numbers = #tpu.dot_dimension_numbers<[1], [0], [0], [1], [0, 0, 1, 1], [], []>} : vector<2x256xbf16>, vector<256x256xbf16>, vector<2x256xf32> -> vector<2x256xf32>
    %c8_70 = arith.constant 8 : index
    %c0_71 = arith.constant 0 : index
    %c0_72 = arith.constant 0 : index
    %109 = vector.load %arg2[%c8_70, %c0_71, %c0_72] : memref<34x1x256xf32, #tpu.memory_space<vmem>>, vector<1x1x256xf32>
    %110 = vector.shape_cast %109 : vector<1x1x256xf32> to vector<1x256xf32>
    %111 = vector.broadcast %110 : vector<1x256xf32> to vector<2x256xf32>
    %112 = arith.addf %108, %111 : vector<2x256xf32>
    %cst_73 = arith.constant 2.000000e-01 : f32
    %113 = vector.broadcast %cst_73 : f32 to vector<2x256xf32>
    %114 = arith.mulf %113, %112 : vector<2x256xf32>
    %115 = arith.maximumf %112, %114 : vector<2x256xf32>
    %116 = arith.truncf %115 : vector<2x256xf32> to vector<2x256xbf16>
    %c9 = arith.constant 9 : index
    %c0_74 = arith.constant 0 : index
    %c0_75 = arith.constant 0 : index
    %117 = vector.load %arg1[%c9, %c0_74, %c0_75] : memref<34x256x256xbf16, #tpu.memory_space<vmem>>, vector<1x256x256xbf16>
    %118 = vector.shape_cast %117 : vector<1x256x256xbf16> to vector<256x256xbf16>
    %cst_76 = arith.constant dense<0.000000e+00> : vector<2x256xf32>
    %119 = tpu.matmul %116, %118, %cst_76 {dimension_numbers = #tpu.dot_dimension_numbers<[1], [0], [0], [1], [0, 0, 1, 1], [], []>} : vector<2x256xbf16>, vector<256x256xbf16>, vector<2x256xf32> -> vector<2x256xf32>
    %c9_77 = arith.constant 9 : index
    %c0_78 = arith.constant 0 : index
    %c0_79 = arith.constant 0 : index
    %120 = vector.load %arg2[%c9_77, %c0_78, %c0_79] : memref<34x1x256xf32, #tpu.memory_space<vmem>>, vector<1x1x256xf32>
    %121 = vector.shape_cast %120 : vector<1x1x256xf32> to vector<1x256xf32>
    %122 = vector.broadcast %121 : vector<1x256xf32> to vector<2x256xf32>
    %123 = arith.addf %119, %122 : vector<2x256xf32>
    %cst_80 = arith.constant 2.000000e-01 : f32
    %124 = vector.broadcast %cst_80 : f32 to vector<2x256xf32>
    %125 = arith.mulf %124, %123 : vector<2x256xf32>
    %126 = arith.maximumf %123, %125 : vector<2x256xf32>
    %127 = math.tanh %126 : vector<2x256xf32>
    %128 = arith.truncf %127 : vector<2x256xf32> to vector<2x256xbf16>
    %c10_81 = arith.constant 10 : index
    %c0_82 = arith.constant 0 : index
    %c0_83 = arith.constant 0 : index
    %129 = vector.load %arg1[%c10_81, %c0_82, %c0_83] : memref<34x256x256xbf16, #tpu.memory_space<vmem>>, vector<1x256x256xbf16>
    %130 = vector.shape_cast %129 : vector<1x256x256xbf16> to vector<256x256xbf16>
    %cst_84 = arith.constant dense<0.000000e+00> : vector<2x256xf32>
    %131 = tpu.matmul %128, %130, %cst_84 {dimension_numbers = #tpu.dot_dimension_numbers<[1], [0], [0], [1], [0, 0, 1, 1], [], []>} : vector<2x256xbf16>, vector<256x256xbf16>, vector<2x256xf32> -> vector<2x256xf32>
    %c10_85 = arith.constant 10 : index
    %c0_86 = arith.constant 0 : index
    %c0_87 = arith.constant 0 : index
    %132 = vector.load %arg2[%c10_85, %c0_86, %c0_87] : memref<34x1x256xf32, #tpu.memory_space<vmem>>, vector<1x1x256xf32>
    %133 = vector.shape_cast %132 : vector<1x1x256xf32> to vector<1x256xf32>
    %134 = vector.broadcast %133 : vector<1x256xf32> to vector<2x256xf32>
    %135 = arith.addf %131, %134 : vector<2x256xf32>
    %cst_88 = arith.constant 2.000000e-01 : f32
    %136 = vector.broadcast %cst_88 : f32 to vector<2x256xf32>
    %137 = arith.mulf %136, %135 : vector<2x256xf32>
    %138 = arith.maximumf %135, %137 : vector<2x256xf32>
    %139 = arith.truncf %138 : vector<2x256xf32> to vector<2x256xbf16>
    %c11 = arith.constant 11 : index
    %c0_89 = arith.constant 0 : index
    %c0_90 = arith.constant 0 : index
    %140 = vector.load %arg1[%c11, %c0_89, %c0_90] : memref<34x256x256xbf16, #tpu.memory_space<vmem>>, vector<1x256x256xbf16>
    %141 = vector.shape_cast %140 : vector<1x256x256xbf16> to vector<256x256xbf16>
    %cst_91 = arith.constant dense<0.000000e+00> : vector<2x256xf32>
    %142 = tpu.matmul %139, %141, %cst_91 {dimension_numbers = #tpu.dot_dimension_numbers<[1], [0], [0], [1], [0, 0, 1, 1], [], []>} : vector<2x256xbf16>, vector<256x256xbf16>, vector<2x256xf32> -> vector<2x256xf32>
    %c11_92 = arith.constant 11 : index
    %c0_93 = arith.constant 0 : index
    %c0_94 = arith.constant 0 : index
    %143 = vector.load %arg2[%c11_92, %c0_93, %c0_94] : memref<34x1x256xf32, #tpu.memory_space<vmem>>, vector<1x1x256xf32>
    %144 = vector.shape_cast %143 : vector<1x1x256xf32> to vector<1x256xf32>
    %145 = vector.broadcast %144 : vector<1x256xf32> to vector<2x256xf32>
    %146 = arith.addf %142, %145 : vector<2x256xf32>
    %cst_95 = arith.constant 2.000000e-01 : f32
    %147 = vector.broadcast %cst_95 : f32 to vector<2x256xf32>
    %148 = arith.mulf %147, %146 : vector<2x256xf32>
    %149 = arith.maximumf %146, %148 : vector<2x256xf32>
    %150 = arith.truncf %149 : vector<2x256xf32> to vector<2x256xbf16>
    %c12_96 = arith.constant 12 : index
    %c0_97 = arith.constant 0 : index
    %c0_98 = arith.constant 0 : index
    %151 = vector.load %arg1[%c12_96, %c0_97, %c0_98] : memref<34x256x256xbf16, #tpu.memory_space<vmem>>, vector<1x256x256xbf16>
    %152 = vector.shape_cast %151 : vector<1x256x256xbf16> to vector<256x256xbf16>
    %cst_99 = arith.constant dense<0.000000e+00> : vector<2x256xf32>
    %153 = tpu.matmul %150, %152, %cst_99 {dimension_numbers = #tpu.dot_dimension_numbers<[1], [0], [0], [1], [0, 0, 1, 1], [], []>} : vector<2x256xbf16>, vector<256x256xbf16>, vector<2x256xf32> -> vector<2x256xf32>
    %c12_100 = arith.constant 12 : index
    %c0_101 = arith.constant 0 : index
    %c0_102 = arith.constant 0 : index
    %154 = vector.load %arg2[%c12_100, %c0_101, %c0_102] : memref<34x1x256xf32, #tpu.memory_space<vmem>>, vector<1x1x256xf32>
    %155 = vector.shape_cast %154 : vector<1x1x256xf32> to vector<1x256xf32>
    %156 = vector.broadcast %155 : vector<1x256xf32> to vector<2x256xf32>
    %157 = arith.addf %153, %156 : vector<2x256xf32>
    %158 = arith.truncf %2 : vector<2x256xf32> to vector<2x256xbf16>
    %c13 = arith.constant 13 : index
    %c0_103 = arith.constant 0 : index
    %c0_104 = arith.constant 0 : index
    %159 = vector.load %arg1[%c13, %c0_103, %c0_104] : memref<34x256x256xbf16, #tpu.memory_space<vmem>>, vector<1x256x256xbf16>
    %160 = vector.shape_cast %159 : vector<1x256x256xbf16> to vector<256x256xbf16>
    %cst_105 = arith.constant dense<0.000000e+00> : vector<2x256xf32>
    %161 = tpu.matmul %158, %160, %cst_105 {dimension_numbers = #tpu.dot_dimension_numbers<[1], [0], [0], [1], [0, 0, 1, 1], [], []>} : vector<2x256xbf16>, vector<256x256xbf16>, vector<2x256xf32> -> vector<2x256xf32>
    %c13_106 = arith.constant 13 : index
    %c0_107 = arith.constant 0 : index
    %c0_108 = arith.constant 0 : index
    %162 = vector.load %arg2[%c13_106, %c0_107, %c0_108] : memref<34x1x256xf32, #tpu.memory_space<vmem>>, vector<1x1x256xf32>
    %163 = vector.shape_cast %162 : vector<1x1x256xf32> to vector<1x256xf32>
    %164 = vector.broadcast %163 : vector<1x256xf32> to vector<2x256xf32>
    %165 = arith.addf %161, %164 : vector<2x256xf32>
    %166 = vector.extract_strided_slice %85 {offsets = [0, 0], sizes = [2, 256], strides = [1, 1]} : vector<10x256xf32> to vector<2x256xf32>
    %167 = arith.truncf %166 : vector<2x256xf32> to vector<2x256xbf16>
    %c14 = arith.constant 14 : index
    %c0_109 = arith.constant 0 : index
    %c0_110 = arith.constant 0 : index
    %168 = vector.load %arg1[%c14, %c0_109, %c0_110] : memref<34x256x256xbf16, #tpu.memory_space<vmem>>, vector<1x256x256xbf16>
    %169 = vector.shape_cast %168 : vector<1x256x256xbf16> to vector<256x256xbf16>
    %cst_111 = arith.constant dense<0.000000e+00> : vector<2x256xf32>
    %170 = tpu.matmul %167, %169, %cst_111 {dimension_numbers = #tpu.dot_dimension_numbers<[1], [0], [0], [1], [0, 0, 1, 1], [], []>} : vector<2x256xbf16>, vector<256x256xbf16>, vector<2x256xf32> -> vector<2x256xf32>
    %c14_112 = arith.constant 14 : index
    %c0_113 = arith.constant 0 : index
    %c0_114 = arith.constant 0 : index
    %171 = vector.load %arg2[%c14_112, %c0_113, %c0_114] : memref<34x1x256xf32, #tpu.memory_space<vmem>>, vector<1x1x256xf32>
    %172 = vector.shape_cast %171 : vector<1x1x256xf32> to vector<1x256xf32>
    %173 = vector.broadcast %172 : vector<1x256xf32> to vector<2x256xf32>
    %174 = arith.addf %170, %173 : vector<2x256xf32>
    %175 = arith.addf %165, %174 : vector<2x256xf32>
    %176 = vector.extract_strided_slice %85 {offsets = [2, 0], sizes = [2, 256], strides = [1, 1]} : vector<10x256xf32> to vector<2x256xf32>
    %177 = arith.truncf %176 : vector<2x256xf32> to vector<2x256xbf16>
    %c15 = arith.constant 15 : index
    %c0_115 = arith.constant 0 : index
    %c0_116 = arith.constant 0 : index
    %178 = vector.load %arg1[%c15, %c0_115, %c0_116] : memref<34x256x256xbf16, #tpu.memory_space<vmem>>, vector<1x256x256xbf16>
    %179 = vector.shape_cast %178 : vector<1x256x256xbf16> to vector<256x256xbf16>
    %cst_117 = arith.constant dense<0.000000e+00> : vector<2x256xf32>
    %180 = tpu.matmul %177, %179, %cst_117 {dimension_numbers = #tpu.dot_dimension_numbers<[1], [0], [0], [1], [0, 0, 1, 1], [], []>} : vector<2x256xbf16>, vector<256x256xbf16>, vector<2x256xf32> -> vector<2x256xf32>
    %c15_118 = arith.constant 15 : index
    %c0_119 = arith.constant 0 : index
    %c0_120 = arith.constant 0 : index
    %181 = vector.load %arg2[%c15_118, %c0_119, %c0_120] : memref<34x1x256xf32, #tpu.memory_space<vmem>>, vector<1x1x256xf32>
    %182 = vector.shape_cast %181 : vector<1x1x256xf32> to vector<1x256xf32>
    %183 = vector.broadcast %182 : vector<1x256xf32> to vector<2x256xf32>
    %184 = arith.addf %180, %183 : vector<2x256xf32>
    %185 = arith.addf %175, %184 : vector<2x256xf32>
    %186 = vector.extract_strided_slice %85 {offsets = [4, 0], sizes = [2, 256], strides = [1, 1]} : vector<10x256xf32> to vector<2x256xf32>
    %187 = arith.truncf %186 : vector<2x256xf32> to vector<2x256xbf16>
    %c16 = arith.constant 16 : index
    %c0_121 = arith.constant 0 : index
    %c0_122 = arith.constant 0 : index
    %188 = vector.load %arg1[%c16, %c0_121, %c0_122] : memref<34x256x256xbf16, #tpu.memory_space<vmem>>, vector<1x256x256xbf16>
    %189 = vector.shape_cast %188 : vector<1x256x256xbf16> to vector<256x256xbf16>
    %cst_123 = arith.constant dense<0.000000e+00> : vector<2x256xf32>
    %190 = tpu.matmul %187, %189, %cst_123 {dimension_numbers = #tpu.dot_dimension_numbers<[1], [0], [0], [1], [0, 0, 1, 1], [], []>} : vector<2x256xbf16>, vector<256x256xbf16>, vector<2x256xf32> -> vector<2x256xf32>
    %c16_124 = arith.constant 16 : index
    %c0_125 = arith.constant 0 : index
    %c0_126 = arith.constant 0 : index
    %191 = vector.load %arg2[%c16_124, %c0_125, %c0_126] : memref<34x1x256xf32, #tpu.memory_space<vmem>>, vector<1x1x256xf32>
    %192 = vector.shape_cast %191 : vector<1x1x256xf32> to vector<1x256xf32>
    %193 = vector.broadcast %192 : vector<1x256xf32> to vector<2x256xf32>
    %194 = arith.addf %190, %193 : vector<2x256xf32>
    %195 = arith.addf %185, %194 : vector<2x256xf32>
    %196 = vector.extract_strided_slice %85 {offsets = [6, 0], sizes = [2, 256], strides = [1, 1]} : vector<10x256xf32> to vector<2x256xf32>
    %197 = arith.truncf %196 : vector<2x256xf32> to vector<2x256xbf16>
    %c17 = arith.constant 17 : index
    %c0_127 = arith.constant 0 : index
    %c0_128 = arith.constant 0 : index
    %198 = vector.load %arg1[%c17, %c0_127, %c0_128] : memref<34x256x256xbf16, #tpu.memory_space<vmem>>, vector<1x256x256xbf16>
    %199 = vector.shape_cast %198 : vector<1x256x256xbf16> to vector<256x256xbf16>
    %cst_129 = arith.constant dense<0.000000e+00> : vector<2x256xf32>
    %200 = tpu.matmul %197, %199, %cst_129 {dimension_numbers = #tpu.dot_dimension_numbers<[1], [0], [0], [1], [0, 0, 1, 1], [], []>} : vector<2x256xbf16>, vector<256x256xbf16>, vector<2x256xf32> -> vector<2x256xf32>
    %c17_130 = arith.constant 17 : index
    %c0_131 = arith.constant 0 : index
    %c0_132 = arith.constant 0 : index
    %201 = vector.load %arg2[%c17_130, %c0_131, %c0_132] : memref<34x1x256xf32, #tpu.memory_space<vmem>>, vector<1x1x256xf32>
    %202 = vector.shape_cast %201 : vector<1x1x256xf32> to vector<1x256xf32>
    %203 = vector.broadcast %202 : vector<1x256xf32> to vector<2x256xf32>
    %204 = arith.addf %200, %203 : vector<2x256xf32>
    %205 = arith.addf %195, %204 : vector<2x256xf32>
    %206 = vector.extract_strided_slice %85 {offsets = [8, 0], sizes = [2, 256], strides = [1, 1]} : vector<10x256xf32> to vector<2x256xf32>
    %207 = arith.truncf %206 : vector<2x256xf32> to vector<2x256xbf16>
    %c18 = arith.constant 18 : index
    %c0_133 = arith.constant 0 : index
    %c0_134 = arith.constant 0 : index
    %208 = vector.load %arg1[%c18, %c0_133, %c0_134] : memref<34x256x256xbf16, #tpu.memory_space<vmem>>, vector<1x256x256xbf16>
    %209 = vector.shape_cast %208 : vector<1x256x256xbf16> to vector<256x256xbf16>
    %cst_135 = arith.constant dense<0.000000e+00> : vector<2x256xf32>
    %210 = tpu.matmul %207, %209, %cst_135 {dimension_numbers = #tpu.dot_dimension_numbers<[1], [0], [0], [1], [0, 0, 1, 1], [], []>} : vector<2x256xbf16>, vector<256x256xbf16>, vector<2x256xf32> -> vector<2x256xf32>
    %c18_136 = arith.constant 18 : index
    %c0_137 = arith.constant 0 : index
    %c0_138 = arith.constant 0 : index
    %211 = vector.load %arg2[%c18_136, %c0_137, %c0_138] : memref<34x1x256xf32, #tpu.memory_space<vmem>>, vector<1x1x256xf32>
    %212 = vector.shape_cast %211 : vector<1x1x256xf32> to vector<1x256xf32>
    %213 = vector.broadcast %212 : vector<1x256xf32> to vector<2x256xf32>
    %214 = arith.addf %210, %213 : vector<2x256xf32>
    %215 = arith.addf %205, %214 : vector<2x256xf32>
    %216 = arith.truncf %215 : vector<2x256xf32> to vector<2x256xbf16>
    %c19 = arith.constant 19 : index
    %c0_139 = arith.constant 0 : index
    %c0_140 = arith.constant 0 : index
    %217 = vector.load %arg1[%c19, %c0_139, %c0_140] : memref<34x256x256xbf16, #tpu.memory_space<vmem>>, vector<1x256x256xbf16>
    %218 = vector.shape_cast %217 : vector<1x256x256xbf16> to vector<256x256xbf16>
    %cst_141 = arith.constant dense<0.000000e+00> : vector<2x256xf32>
    %219 = tpu.matmul %216, %218, %cst_141 {dimension_numbers = #tpu.dot_dimension_numbers<[1], [0], [0], [1], [0, 0, 1, 1], [], []>} : vector<2x256xbf16>, vector<256x256xbf16>, vector<2x256xf32> -> vector<2x256xf32>
    %c19_142 = arith.constant 19 : index
    %c0_143 = arith.constant 0 : index
    %c0_144 = arith.constant 0 : index
    %220 = vector.load %arg2[%c19_142, %c0_143, %c0_144] : memref<34x1x256xf32, #tpu.memory_space<vmem>>, vector<1x1x256xf32>
    %221 = vector.shape_cast %220 : vector<1x1x256xf32> to vector<1x256xf32>
    %222 = vector.broadcast %221 : vector<1x256xf32> to vector<2x256xf32>
    %223 = arith.addf %219, %222 : vector<2x256xf32>
    %cst_145 = arith.constant 2.000000e-01 : f32
    %224 = vector.broadcast %cst_145 : f32 to vector<2x256xf32>
    %225 = arith.mulf %224, %223 : vector<2x256xf32>
    %226 = arith.maximumf %223, %225 : vector<2x256xf32>
    %227 = arith.truncf %226 : vector<2x256xf32> to vector<2x256xbf16>
    %c20 = arith.constant 20 : index
    %c0_146 = arith.constant 0 : index
    %c0_147 = arith.constant 0 : index
    %228 = vector.load %arg1[%c20, %c0_146, %c0_147] : memref<34x256x256xbf16, #tpu.memory_space<vmem>>, vector<1x256x256xbf16>
    %229 = vector.shape_cast %228 : vector<1x256x256xbf16> to vector<256x256xbf16>
    %cst_148 = arith.constant dense<0.000000e+00> : vector<2x256xf32>
    %230 = tpu.matmul %227, %229, %cst_148 {dimension_numbers = #tpu.dot_dimension_numbers<[1], [0], [0], [1], [0, 0, 1, 1], [], []>} : vector<2x256xbf16>, vector<256x256xbf16>, vector<2x256xf32> -> vector<2x256xf32>
    %c20_149 = arith.constant 20 : index
    %c0_150 = arith.constant 0 : index
    %c0_151 = arith.constant 0 : index
    %231 = vector.load %arg2[%c20_149, %c0_150, %c0_151] : memref<34x1x256xf32, #tpu.memory_space<vmem>>, vector<1x1x256xf32>
    %232 = vector.shape_cast %231 : vector<1x1x256xf32> to vector<1x256xf32>
    %233 = vector.broadcast %232 : vector<1x256xf32> to vector<2x256xf32>
    %234 = arith.addf %230, %233 : vector<2x256xf32>
    %cst_152 = arith.constant 2.000000e-01 : f32
    %235 = vector.broadcast %cst_152 : f32 to vector<2x256xf32>
    %236 = arith.mulf %235, %234 : vector<2x256xf32>
    %237 = arith.maximumf %234, %236 : vector<2x256xf32>
    %238 = arith.truncf %237 : vector<2x256xf32> to vector<2x256xbf16>
    %c21 = arith.constant 21 : index
    %c0_153 = arith.constant 0 : index
    %c0_154 = arith.constant 0 : index
    %239 = vector.load %arg1[%c21, %c0_153, %c0_154] : memref<34x256x256xbf16, #tpu.memory_space<vmem>>, vector<1x256x256xbf16>
    %240 = vector.shape_cast %239 : vector<1x256x256xbf16> to vector<256x256xbf16>
    %cst_155 = arith.constant dense<0.000000e+00> : vector<2x256xf32>
    %241 = tpu.matmul %238, %240, %cst_155 {dimension_numbers = #tpu.dot_dimension_numbers<[1], [0], [0], [1], [0, 0, 1, 1], [], []>} : vector<2x256xbf16>, vector<256x256xbf16>, vector<2x256xf32> -> vector<2x256xf32>
    %c21_156 = arith.constant 21 : index
    %c0_157 = arith.constant 0 : index
    %c0_158 = arith.constant 0 : index
    %242 = vector.load %arg2[%c21_156, %c0_157, %c0_158] : memref<34x1x256xf32, #tpu.memory_space<vmem>>, vector<1x1x256xf32>
    %243 = vector.shape_cast %242 : vector<1x1x256xf32> to vector<1x256xf32>
    %244 = vector.broadcast %243 : vector<1x256xf32> to vector<2x256xf32>
    %245 = arith.addf %241, %244 : vector<2x256xf32>
    %cst_159 = arith.constant 2.000000e-01 : f32
    %246 = vector.broadcast %cst_159 : f32 to vector<2x256xf32>
    %247 = arith.mulf %246, %245 : vector<2x256xf32>
    %248 = arith.maximumf %245, %247 : vector<2x256xf32>
    %249 = math.tanh %248 : vector<2x256xf32>
    %250 = arith.truncf %249 : vector<2x256xf32> to vector<2x256xbf16>
    %c22 = arith.constant 22 : index
    %c0_160 = arith.constant 0 : index
    %c0_161 = arith.constant 0 : index
    %251 = vector.load %arg1[%c22, %c0_160, %c0_161] : memref<34x256x256xbf16, #tpu.memory_space<vmem>>, vector<1x256x256xbf16>
    %252 = vector.shape_cast %251 : vector<1x256x256xbf16> to vector<256x256xbf16>
    %cst_162 = arith.constant dense<0.000000e+00> : vector<2x256xf32>
    %253 = tpu.matmul %250, %252, %cst_162 {dimension_numbers = #tpu.dot_dimension_numbers<[1], [0], [0], [1], [0, 0, 1, 1], [], []>} : vector<2x256xbf16>, vector<256x256xbf16>, vector<2x256xf32> -> vector<2x256xf32>
    %c22_163 = arith.constant 22 : index
    %c0_164 = arith.constant 0 : index
    %c0_165 = arith.constant 0 : index
    %254 = vector.load %arg2[%c22_163, %c0_164, %c0_165] : memref<34x1x256xf32, #tpu.memory_space<vmem>>, vector<1x1x256xf32>
    %255 = vector.shape_cast %254 : vector<1x1x256xf32> to vector<1x256xf32>
    %256 = vector.broadcast %255 : vector<1x256xf32> to vector<2x256xf32>
    %257 = arith.addf %253, %256 : vector<2x256xf32>
    %cst_166 = arith.constant 2.000000e-01 : f32
    %258 = vector.broadcast %cst_166 : f32 to vector<2x256xf32>
    %259 = arith.mulf %258, %257 : vector<2x256xf32>
    %260 = arith.maximumf %257, %259 : vector<2x256xf32>
    %261 = arith.truncf %260 : vector<2x256xf32> to vector<2x256xbf16>
    %c23 = arith.constant 23 : index
    %c0_167 = arith.constant 0 : index
    %c0_168 = arith.constant 0 : index
    %262 = vector.load %arg1[%c23, %c0_167, %c0_168] : memref<34x256x256xbf16, #tpu.memory_space<vmem>>, vector<1x256x256xbf16>
    %263 = vector.shape_cast %262 : vector<1x256x256xbf16> to vector<256x256xbf16>
    %cst_169 = arith.constant dense<0.000000e+00> : vector<2x256xf32>
    %264 = tpu.matmul %261, %263, %cst_169 {dimension_numbers = #tpu.dot_dimension_numbers<[1], [0], [0], [1], [0, 0, 1, 1], [], []>} : vector<2x256xbf16>, vector<256x256xbf16>, vector<2x256xf32> -> vector<2x256xf32>
    %c23_170 = arith.constant 23 : index
    %c0_171 = arith.constant 0 : index
    %c0_172 = arith.constant 0 : index
    %265 = vector.load %arg2[%c23_170, %c0_171, %c0_172] : memref<34x1x256xf32, #tpu.memory_space<vmem>>, vector<1x1x256xf32>
    %266 = vector.shape_cast %265 : vector<1x1x256xf32> to vector<1x256xf32>
    %267 = vector.broadcast %266 : vector<1x256xf32> to vector<2x256xf32>
    %268 = arith.addf %264, %267 : vector<2x256xf32>
    %cst_173 = arith.constant 2.000000e-01 : f32
    %269 = vector.broadcast %cst_173 : f32 to vector<2x256xf32>
    %270 = arith.mulf %269, %268 : vector<2x256xf32>
    %271 = arith.maximumf %268, %270 : vector<2x256xf32>
    %272 = arith.truncf %271 : vector<2x256xf32> to vector<2x256xbf16>
    %c24 = arith.constant 24 : index
    %c0_174 = arith.constant 0 : index
    %c0_175 = arith.constant 0 : index
    %273 = vector.load %arg1[%c24, %c0_174, %c0_175] : memref<34x256x256xbf16, #tpu.memory_space<vmem>>, vector<1x256x256xbf16>
    %274 = vector.shape_cast %273 : vector<1x256x256xbf16> to vector<256x256xbf16>
    %cst_176 = arith.constant dense<0.000000e+00> : vector<2x256xf32>
    %275 = tpu.matmul %272, %274, %cst_176 {dimension_numbers = #tpu.dot_dimension_numbers<[1], [0], [0], [1], [0, 0, 1, 1], [], []>} : vector<2x256xbf16>, vector<256x256xbf16>, vector<2x256xf32> -> vector<2x256xf32>
    %c24_177 = arith.constant 24 : index
    %c0_178 = arith.constant 0 : index
    %c0_179 = arith.constant 0 : index
    %276 = vector.load %arg2[%c24_177, %c0_178, %c0_179] : memref<34x1x256xf32, #tpu.memory_space<vmem>>, vector<1x1x256xf32>
    %277 = vector.shape_cast %276 : vector<1x1x256xf32> to vector<1x256xf32>
    %278 = vector.broadcast %277 : vector<1x256xf32> to vector<2x256xf32>
    %279 = arith.addf %275, %278 : vector<2x256xf32>
    %280 = tpu.concatenate %127, %249 in 0 : vector<2x256xf32>, vector<2x256xf32> -> vector<4x256xf32>
    %281 = arith.truncf %280 : vector<4x256xf32> to vector<4x256xbf16>
    %c25 = arith.constant 25 : index
    %c0_180 = arith.constant 0 : index
    %c0_181 = arith.constant 0 : index
    %282 = vector.load %arg1[%c25, %c0_180, %c0_181] : memref<34x256x256xbf16, #tpu.memory_space<vmem>>, vector<1x256x256xbf16>
    %283 = vector.shape_cast %282 : vector<1x256x256xbf16> to vector<256x256xbf16>
    %cst_182 = arith.constant dense<0.000000e+00> : vector<4x256xf32>
    %284 = tpu.matmul %281, %283, %cst_182 {dimension_numbers = #tpu.dot_dimension_numbers<[1], [0], [0], [1], [0, 0, 1, 1], [], []>} : vector<4x256xbf16>, vector<256x256xbf16>, vector<4x256xf32> -> vector<4x256xf32>
    %c25_183 = arith.constant 25 : index
    %c0_184 = arith.constant 0 : index
    %c0_185 = arith.constant 0 : index
    %285 = vector.load %arg2[%c25_183, %c0_184, %c0_185] : memref<34x1x256xf32, #tpu.memory_space<vmem>>, vector<1x1x256xf32>
    %286 = vector.shape_cast %285 : vector<1x1x256xf32> to vector<1x256xf32>
    %287 = vector.broadcast %286 : vector<1x256xf32> to vector<4x256xf32>
    %288 = arith.addf %284, %287 : vector<4x256xf32>
    %cst_186 = arith.constant 0.000000e+00 : f32
    %289 = vector.broadcast %cst_186 : f32 to vector<4x256xf32>
    %290 = arith.maximumf %288, %289 : vector<4x256xf32>
    %291 = arith.truncf %290 : vector<4x256xf32> to vector<4x256xbf16>
    %c26 = arith.constant 26 : index
    %c0_187 = arith.constant 0 : index
    %c0_188 = arith.constant 0 : index
    %292 = vector.load %arg1[%c26, %c0_187, %c0_188] : memref<34x256x256xbf16, #tpu.memory_space<vmem>>, vector<1x256x256xbf16>
    %293 = vector.shape_cast %292 : vector<1x256x256xbf16> to vector<256x256xbf16>
    %cst_189 = arith.constant dense<0.000000e+00> : vector<4x256xf32>
    %294 = tpu.matmul %291, %293, %cst_189 {dimension_numbers = #tpu.dot_dimension_numbers<[1], [0], [0], [1], [0, 0, 1, 1], [], []>} : vector<4x256xbf16>, vector<256x256xbf16>, vector<4x256xf32> -> vector<4x256xf32>
    %c26_190 = arith.constant 26 : index
    %c0_191 = arith.constant 0 : index
    %c0_192 = arith.constant 0 : index
    %295 = vector.load %arg2[%c26_190, %c0_191, %c0_192] : memref<34x1x256xf32, #tpu.memory_space<vmem>>, vector<1x1x256xf32>
    %296 = vector.shape_cast %295 : vector<1x1x256xf32> to vector<1x256xf32>
    %297 = vector.broadcast %296 : vector<1x256xf32> to vector<4x256xf32>
    %298 = arith.addf %294, %297 : vector<4x256xf32>
    %cst_193 = arith.constant 0.000000e+00 : f32
    %299 = vector.broadcast %cst_193 : f32 to vector<4x256xf32>
    %300 = arith.maximumf %298, %299 : vector<4x256xf32>
    %301 = arith.truncf %300 : vector<4x256xf32> to vector<4x256xbf16>
    %c27 = arith.constant 27 : index
    %c0_194 = arith.constant 0 : index
    %c0_195 = arith.constant 0 : index
    %302 = vector.load %arg1[%c27, %c0_194, %c0_195] : memref<34x256x256xbf16, #tpu.memory_space<vmem>>, vector<1x256x256xbf16>
    %303 = vector.shape_cast %302 : vector<1x256x256xbf16> to vector<256x256xbf16>
    %cst_196 = arith.constant dense<0.000000e+00> : vector<4x256xf32>
    %304 = tpu.matmul %301, %303, %cst_196 {dimension_numbers = #tpu.dot_dimension_numbers<[1], [0], [0], [1], [0, 0, 1, 1], [], []>} : vector<4x256xbf16>, vector<256x256xbf16>, vector<4x256xf32> -> vector<4x256xf32>
    %c27_197 = arith.constant 27 : index
    %c0_198 = arith.constant 0 : index
    %c0_199 = arith.constant 0 : index
    %305 = vector.load %arg2[%c27_197, %c0_198, %c0_199] : memref<34x1x256xf32, #tpu.memory_space<vmem>>, vector<1x1x256xf32>
    %306 = vector.shape_cast %305 : vector<1x1x256xf32> to vector<1x256xf32>
    %307 = vector.broadcast %306 : vector<1x256xf32> to vector<4x256xf32>
    %308 = arith.addf %304, %307 : vector<4x256xf32>
    %cst_200 = arith.constant 0.000000e+00 : f32
    %309 = vector.broadcast %cst_200 : f32 to vector<4x256xf32>
    %310 = arith.maximumf %308, %309 : vector<4x256xf32>
    %311 = arith.truncf %310 : vector<4x256xf32> to vector<4x256xbf16>
    %c28 = arith.constant 28 : index
    %c0_201 = arith.constant 0 : index
    %c0_202 = arith.constant 0 : index
    %312 = vector.load %arg1[%c28, %c0_201, %c0_202] : memref<34x256x256xbf16, #tpu.memory_space<vmem>>, vector<1x256x256xbf16>
    %313 = vector.shape_cast %312 : vector<1x256x256xbf16> to vector<256x256xbf16>
    %cst_203 = arith.constant dense<0.000000e+00> : vector<4x256xf32>
    %314 = tpu.matmul %311, %313, %cst_203 {dimension_numbers = #tpu.dot_dimension_numbers<[1], [0], [0], [1], [0, 0, 1, 1], [], []>} : vector<4x256xbf16>, vector<256x256xbf16>, vector<4x256xf32> -> vector<4x256xf32>
    %c28_204 = arith.constant 28 : index
    %c0_205 = arith.constant 0 : index
    %c0_206 = arith.constant 0 : index
    %315 = vector.load %arg2[%c28_204, %c0_205, %c0_206] : memref<34x1x256xf32, #tpu.memory_space<vmem>>, vector<1x1x256xf32>
    %316 = vector.shape_cast %315 : vector<1x1x256xf32> to vector<1x256xf32>
    %317 = vector.broadcast %316 : vector<1x256xf32> to vector<4x256xf32>
    %318 = arith.addf %314, %317 : vector<4x256xf32>
    %cst_207 = arith.constant 0.000000e+00 : f32
    %319 = vector.broadcast %cst_207 : f32 to vector<4x256xf32>
    %320 = arith.maximumf %318, %319 : vector<4x256xf32>
    %321 = arith.truncf %320 : vector<4x256xf32> to vector<4x256xbf16>
    %c29 = arith.constant 29 : index
    %c0_208 = arith.constant 0 : index
    %c0_209 = arith.constant 0 : index
    %322 = vector.load %arg1[%c29, %c0_208, %c0_209] : memref<34x256x256xbf16, #tpu.memory_space<vmem>>, vector<1x256x256xbf16>
    %323 = vector.shape_cast %322 : vector<1x256x256xbf16> to vector<256x256xbf16>
    %cst_210 = arith.constant dense<0.000000e+00> : vector<4x256xf32>
    %324 = tpu.matmul %321, %323, %cst_210 {dimension_numbers = #tpu.dot_dimension_numbers<[1], [0], [0], [1], [0, 0, 1, 1], [], []>} : vector<4x256xbf16>, vector<256x256xbf16>, vector<4x256xf32> -> vector<4x256xf32>
    %c29_211 = arith.constant 29 : index
    %c0_212 = arith.constant 0 : index
    %c0_213 = arith.constant 0 : index
    %325 = vector.load %arg2[%c29_211, %c0_212, %c0_213] : memref<34x1x256xf32, #tpu.memory_space<vmem>>, vector<1x1x256xf32>
    %326 = vector.shape_cast %325 : vector<1x1x256xf32> to vector<1x256xf32>
    %327 = vector.broadcast %326 : vector<1x256xf32> to vector<4x256xf32>
    %328 = arith.addf %324, %327 : vector<4x256xf32>
    %329 = arith.truncf %328 : vector<4x256xf32> to vector<4x256xbf16>
    %c30 = arith.constant 30 : index
    %c0_214 = arith.constant 0 : index
    %c0_215 = arith.constant 0 : index
    %330 = vector.load %arg1[%c30, %c0_214, %c0_215] : memref<34x256x256xbf16, #tpu.memory_space<vmem>>, vector<1x256x256xbf16>
    %331 = vector.shape_cast %330 : vector<1x256x256xbf16> to vector<256x256xbf16>
    %cst_216 = arith.constant dense<0.000000e+00> : vector<4x256xf32>
    %332 = tpu.matmul %329, %331, %cst_216 {dimension_numbers = #tpu.dot_dimension_numbers<[1], [0], [0], [1], [0, 0, 1, 1], [], []>} : vector<4x256xbf16>, vector<256x256xbf16>, vector<4x256xf32> -> vector<4x256xf32>
    %c30_217 = arith.constant 30 : index
    %c0_218 = arith.constant 0 : index
    %c0_219 = arith.constant 0 : index
    %333 = vector.load %arg2[%c30_217, %c0_218, %c0_219] : memref<34x1x256xf32, #tpu.memory_space<vmem>>, vector<1x1x256xf32>
    %334 = vector.shape_cast %333 : vector<1x1x256xf32> to vector<1x256xf32>
    %335 = vector.broadcast %334 : vector<1x256xf32> to vector<4x256xf32>
    %336 = arith.addf %332, %335 : vector<4x256xf32>
    %cst_220 = arith.constant 0.000000e+00 : f32
    %337 = vector.broadcast %cst_220 : f32 to vector<4x256xf32>
    %338 = arith.maximumf %336, %337 : vector<4x256xf32>
    %339 = arith.truncf %338 : vector<4x256xf32> to vector<4x256xbf16>
    %c31 = arith.constant 31 : index
    %c0_221 = arith.constant 0 : index
    %c0_222 = arith.constant 0 : index
    %340 = vector.load %arg1[%c31, %c0_221, %c0_222] : memref<34x256x256xbf16, #tpu.memory_space<vmem>>, vector<1x256x256xbf16>
    %341 = vector.shape_cast %340 : vector<1x256x256xbf16> to vector<256x256xbf16>
    %cst_223 = arith.constant dense<0.000000e+00> : vector<4x256xf32>
    %342 = tpu.matmul %339, %341, %cst_223 {dimension_numbers = #tpu.dot_dimension_numbers<[1], [0], [0], [1], [0, 0, 1, 1], [], []>} : vector<4x256xbf16>, vector<256x256xbf16>, vector<4x256xf32> -> vector<4x256xf32>
    %c31_224 = arith.constant 31 : index
    %c0_225 = arith.constant 0 : index
    %c0_226 = arith.constant 0 : index
    %343 = vector.load %arg2[%c31_224, %c0_225, %c0_226] : memref<34x1x256xf32, #tpu.memory_space<vmem>>, vector<1x1x256xf32>
    %344 = vector.shape_cast %343 : vector<1x1x256xf32> to vector<1x256xf32>
    %345 = vector.broadcast %344 : vector<1x256xf32> to vector<4x256xf32>
    %346 = arith.addf %342, %345 : vector<4x256xf32>
    %cst_227 = arith.constant 0.000000e+00 : f32
    %347 = vector.broadcast %cst_227 : f32 to vector<4x256xf32>
    %348 = arith.maximumf %346, %347 : vector<4x256xf32>
    %349 = arith.truncf %348 : vector<4x256xf32> to vector<4x256xbf16>
    %c32 = arith.constant 32 : index
    %c0_228 = arith.constant 0 : index
    %c0_229 = arith.constant 0 : index
    %350 = vector.load %arg1[%c32, %c0_228, %c0_229] : memref<34x256x256xbf16, #tpu.memory_space<vmem>>, vector<1x256x256xbf16>
    %351 = vector.shape_cast %350 : vector<1x256x256xbf16> to vector<256x256xbf16>
    %cst_230 = arith.constant dense<0.000000e+00> : vector<4x256xf32>
    %352 = tpu.matmul %349, %351, %cst_230 {dimension_numbers = #tpu.dot_dimension_numbers<[1], [0], [0], [1], [0, 0, 1, 1], [], []>} : vector<4x256xbf16>, vector<256x256xbf16>, vector<4x256xf32> -> vector<4x256xf32>
    %c32_231 = arith.constant 32 : index
    %c0_232 = arith.constant 0 : index
    %c0_233 = arith.constant 0 : index
    %353 = vector.load %arg2[%c32_231, %c0_232, %c0_233] : memref<34x1x256xf32, #tpu.memory_space<vmem>>, vector<1x1x256xf32>
    %354 = vector.shape_cast %353 : vector<1x1x256xf32> to vector<1x256xf32>
    %355 = vector.broadcast %354 : vector<1x256xf32> to vector<4x256xf32>
    %356 = arith.addf %352, %355 : vector<4x256xf32>
    %cst_234 = arith.constant 0.000000e+00 : f32
    %357 = vector.broadcast %cst_234 : f32 to vector<4x256xf32>
    %358 = arith.maximumf %356, %357 : vector<4x256xf32>
    %359 = arith.truncf %358 : vector<4x256xf32> to vector<4x256xbf16>
    %c33 = arith.constant 33 : index
    %c0_235 = arith.constant 0 : index
    %c0_236 = arith.constant 0 : index
    %360 = vector.load %arg1[%c33, %c0_235, %c0_236] : memref<34x256x256xbf16, #tpu.memory_space<vmem>>, vector<1x256x256xbf16>
    %361 = vector.shape_cast %360 : vector<1x256x256xbf16> to vector<256x256xbf16>
    %cst_237 = arith.constant dense<0.000000e+00> : vector<4x256xf32>
    %362 = tpu.matmul %359, %361, %cst_237 {dimension_numbers = #tpu.dot_dimension_numbers<[1], [0], [0], [1], [0, 0, 1, 1], [], []>} : vector<4x256xbf16>, vector<256x256xbf16>, vector<4x256xf32> -> vector<4x256xf32>
    %c33_238 = arith.constant 33 : index
    %c0_239 = arith.constant 0 : index
    %c0_240 = arith.constant 0 : index
    %363 = vector.load %arg2[%c33_238, %c0_239, %c0_240] : memref<34x1x256xf32, #tpu.memory_space<vmem>>, vector<1x1x256xf32>
    %364 = vector.shape_cast %363 : vector<1x1x256xf32> to vector<1x256xf32>
    %365 = vector.broadcast %364 : vector<1x256xf32> to vector<4x256xf32>
    %366 = arith.addf %362, %365 : vector<4x256xf32>
    %c0_241 = arith.constant 0 : index
    %c0_242 = arith.constant 0 : index
    %367 = vector.load %arg3[%c0_241, %c0_242] : memref<26x256xf32, #tpu.memory_space<vmem>>, vector<10x256xf32>
    tpu.vector_store %arg3[%c0_241, %c0_242], %85 {strides = array<i32>} : memref<26x256xf32, #tpu.memory_space<vmem>>, vector<10x256xf32>,
    %c10_243 = arith.constant 10 : index
    %c0_244 = arith.constant 0 : index
    %368 = vector.load %arg3[%c10_243, %c0_244] : memref<26x256xf32, #tpu.memory_space<vmem>>, vector<2x256xf32>
    tpu.vector_store %arg3[%c10_243, %c0_244], %127 {strides = array<i32>} : memref<26x256xf32, #tpu.memory_space<vmem>>, vector<2x256xf32>,
    %c12_245 = arith.constant 12 : index
    %c0_246 = arith.constant 0 : index
    %369 = vector.load %arg3[%c12_245, %c0_246] : memref<26x256xf32, #tpu.memory_space<vmem>>, vector<2x256xf32>
    tpu.vector_store %arg3[%c12_245, %c0_246], %157 {strides = array<i32>} : memref<26x256xf32, #tpu.memory_space<vmem>>, vector<2x256xf32>,
    %c14_247 = arith.constant 14 : index
    %c0_248 = arith.constant 0 : index
    %370 = vector.load %arg3[%c14_247, %c0_248] : memref<26x256xf32, #tpu.memory_space<vmem>>, vector<2x256xf32>
    tpu.vector_store %arg3[%c14_247, %c0_248], %249 {strides = array<i32>} : memref<26x256xf32, #tpu.memory_space<vmem>>, vector<2x256xf32>,
    %c16_249 = arith.constant 16 : index
    %c0_250 = arith.constant 0 : index
    %371 = vector.load %arg3[%c16_249, %c0_250] : memref<26x256xf32, #tpu.memory_space<vmem>>, vector<2x256xf32>
    tpu.vector_store %arg3[%c16_249, %c0_250], %279 {strides = array<i32>} : memref<26x256xf32, #tpu.memory_space<vmem>>, vector<2x256xf32>,
    %c18_251 = arith.constant 18 : index
    %c0_252 = arith.constant 0 : index
    %372 = vector.load %arg3[%c18_251, %c0_252] : memref<26x256xf32, #tpu.memory_space<vmem>>, vector<4x256xf32>
    tpu.vector_store %arg3[%c18_251, %c0_252], %328 {strides = array<i32>} : memref<26x256xf32, #tpu.memory_space<vmem>>, vector<4x256xf32>,
    %c22_253 = arith.constant 22 : index
    %c0_254 = arith.constant 0 : index
    %373 = vector.load %arg3[%c22_253, %c0_254] : memref<26x256xf32, #tpu.memory_space<vmem>>, vector<4x256xf32>
    tpu.vector_store %arg3[%c22_253, %c0_254], %366 {strides = array<i32>} : memref<26x256xf32, #tpu.memory_space<vmem>>, vector<4x256xf32>,
    return
  }
}

</mosaic_0001>

<bundles_post_ra>
// kernel: deep_vae_forward.1
= control target key start
LH: loop header
LB: loop body
LE: loop exit
PB: predicated region body
PF: predicated region fallthrough
CT: control target
= control target key end

     0   :  { %8 = vsyncpa [#allocation3], 0  ;;  %s11831_s0 = inlined_call_operand.vmem [shape: f32[14,256], index: 0, kind: input, shape index: {}]   ;;  %s11832_s1 = inlined_call_operand.hbm [shape: bf16[34,256,256], index: 1, kind: input, shape index: {}]   ;;  %s11833_s2 = inlined_call_operand.hbm [shape: f32[34,1,256], index: 2, kind: input, shape index: {}]   ;;  %s11834_s3 = inlined_call_operand.vmem [shape: f32[26,256], index: 3, kind: output, shape index: {}]  }
   0x1   :  { %9 = vsyncpa [#allocation5], 0  ;;  %s11573_s12 = smov [#allocation2]  }
   0x2   :  { %s17_s13 = sshll.u32 %s11573_s12, 4  ;;  %s18_s13 = int_to_ptr.vmem [resolvable:$true] %s17_s13 }
   0x3   :  { %s11537_s14 = scalar_lea.vmem %s18_s13, 139264  ;;  %p11542_p1 = scmp.lt.s32.totalorder %s18_s13, %s18_s13 }
   0x4   :  { %p11538_p0 = scmp.ne.s32.totalorder %s18_s13, %s11537_s14  ;;  %p11543_p2 = scmp.lt.s32.totalorder %s11537_s14, %s11537_s14 }
   0x6   :  { %p11544_p3 = por %p11543_p2, %p11542_p1 }
   0x8   :  { %p11545_p4 = pnand %p11544_p3, %p11538_p0 }
   0xa   :  { %11548 = shalt.err (!%p11545_p4)
}
   0xb   :  { %s11574_s15 = smov 128   ;;  %s11575_s16 = smov 8  }
   0xc   :  { %23 = dma.hbm_to_vmem [thread:$0]  %s11832_s1, 139264, %s18_s13, [#allocation3], %s11574_s15, %s11574_s15, %s11575_s16  }
   0xd   :  { %s11576_s19 = smov [#allocation4]  }
   0xe   :  { %s29_s20 = sshll.u32 %s11576_s19, 4  ;;  %s30_s20 = int_to_ptr.vmem [resolvable:$true] %s29_s20 }
   0xf   :  { %s11557_s21 = scalar_lea.vmem %s30_s20, 1088  ;;  %p11562_p6 = scmp.lt.s32.totalorder %s30_s20, %s30_s20 }
  0x10   :  { %p11558_p5 = scmp.ne.s32.totalorder %s30_s20, %s11557_s21  ;;  %p11563_p7 = scmp.lt.s32.totalorder %s11557_s21, %s11557_s21 }
  0x12   :  { %p11564_p8 = por %p11563_p7, %p11562_p6 }
  0x14   :  { %p11565_p9 = pnand %p11564_p8, %p11558_p5 }
  0x16   :  { %11568 = shalt.err (!%p11565_p9)
}
  0x17   :  { %s11577_s22 = smov 32   ;;  %s11578_s23 = smov 2  }
  0x18   :  { %35 = dma.hbm_to_vmem [thread:$0]  %s11833_s2, 1088, %s30_s20, [#allocation5], %s11577_s22, %s11577_s22, %s11578_s23  }
  0x19   :  { %11569 = dma.done.wait [#allocation3], 139264  }
  0x1a   :  { %11570 = vsyncadd [#allocation3], 4294828032 }
  0x1b   :  { %11571 = dma.done.wait [#allocation5], 1088  }
  0x1c   :  { %11572 = vsyncadd [#allocation5], 4294966208  ;;  %v9849_v0 = vld [vmem:[#allocation2 + $0x74] ss:$8 sps:$4 sm:$0xff]   ;;  %v9851_v1 = vld [vmem:[#allocation2 + $0x70] ss:$8 sps:$4 sm:$0xff]  }
  0x1d   :  { %256 = vmatprep.subr.bf16.mxu0 %v9849_v0  ;;  %v9852_v2 = vld [vmem:[#allocation2 + $0x64] ss:$8 sps:$4 sm:$0xff]   ;;  %v9854_v3 = vld [vmem:[#allocation2 + $0x60] ss:$8 sps:$4 sm:$0xff]   ;;  %v9855_v4 = vld [vmem:[#allocation2 + $0x54] ss:$8 sps:$4 sm:$0xff]  }
  0x1e   :  { %257 = vmatpush1.bf16.msra.mxu0 %v9851_v1  ;;  %v9857_v5 = vld [vmem:[#allocation2 + $0x50] ss:$8 sps:$4 sm:$0xff]   ;;  %v9858_v6 = vld [vmem:[#allocation2 + $0x44] ss:$8 sps:$4 sm:$0xff]   ;;  %v9860_v7 = vld [vmem:[#allocation2 + $0x40] ss:$8 sps:$4 sm:$0xff]  }
  0x1f   :  { %258 = vmatprep.subr.bf16.mxu0 %v9852_v2  ;;  %v9861_v8 = vld [vmem:[#allocation2 + $0x34] ss:$8 sps:$4 sm:$0xff]   ;;  %v9863_v9 = vld [vmem:[#allocation2 + $0x30] ss:$8 sps:$4 sm:$0xff]   ;;  %v9864_v10 = vld [vmem:[#allocation2 + $0x24] ss:$8 sps:$4 sm:$0xff]  }
  0x20   :  { %v9866_v11 = vld [vmem:[#allocation2 + $0x20] ss:$8 sps:$4 sm:$0xff]   ;;  %v9867_v12 = vld [vmem:[#allocation2 + $0x14] ss:$8 sps:$4 sm:$0xff]   ;;  %v45_v14 = vld [vmem:[%s11831_s0 + $0x18] sm:$0x3] }
  0x21   :  { %v43_v13 = vld [vmem:[%s11831_s0 + $0x8] sm:$0xff]  ;;  %v9869_v15 = vld [vmem:[#allocation2 + $0x10] ss:$8 sps:$4 sm:$0xff]   ;;  %v9897_v18 = vld [vmem:[#allocation2 + $0x174] ss:$8 sps:$4 sm:$0xff]   ;;  %vm6445_vm0 = vcmask 1041408  }
  0x22   :  { %259 = vmatpush1.bf16.msra.mxu0 %v9854_v3  ;;  %v9870_v16 = vld [vmem:[#allocation2 + $0x4] ss:$8 sps:$4 sm:$0xff]   ;;  %v51_v17 = vpack.c.bf16 %v45_v14, %v43_v13  ;;  %v9899_v19 = vld [vmem:[#allocation2 + $0x170] ss:$8 sps:$4 sm:$0xff]   ;;  %523 = vmatprep.subr.bf16.mxu1 %v9897_v18  ;;  %v9902_v21 = vld [vmem:[#allocation2 + $0x160] ss:$8 sps:$4 sm:$0xff]  }
  0x23   :  { %260 = vmatprep.subr.bf16.mxu0 %v9855_v4  ;;  %v9900_v20 = vld [vmem:[#allocation2 + $0x164] ss:$8 sps:$4 sm:$0xff]   ;;  %524 = vmatpush1.bf16.msra.mxu1 %v9899_v19  ;;  %v9872_v22 = vld [vmem:[#allocation2] ss:$8 sps:$4 sm:$0xff]   ;;  %v9903_v23 = vld [vmem:[#allocation2 + $0x154] ss:$8 sps:$4 sm:$0xff]  }
  0x24   :  { %288 = vmatprep.mubr.bf16.mxu0 %v51_v17  ;;  %525 = vmatprep.subr.bf16.mxu1 %v9900_v20  ;;  %v9873_v24 = vld [vmem:[#allocation2 + $0xf4] ss:$8 sps:$4 sm:$0xff]   ;;  %v9905_v25 = vld [vmem:[#allocation2 + $0x150] ss:$8 sps:$4 sm:$0xff]   ;;  %v9906_v27 = vld [vmem:[#allocation2 + $0x144] ss:$8 sps:$4 sm:$0xff]  }
  0x25   :  { %v9875_v26 = vld [vmem:[#allocation2 + $0xf0] ss:$8 sps:$4 sm:$0xff]   ;;  %v9876_v28 = vld [vmem:[#allocation2 + $0xe4] ss:$8 sps:$4 sm:$0xff]   ;;  %v9878_v29 = vld [vmem:[#allocation2 + $0xe0] ss:$8 sps:$4 sm:$0xff]  }
  0x26   :  { %261 = vmatpush1.bf16.msra.mxu0 %v9857_v5  ;;  %v9908_v30 = vld [vmem:[#allocation2 + $0x140] ss:$8 sps:$4 sm:$0xff]   ;;  %v9909_v31 = vld [vmem:[#allocation2 + $0x134] ss:$8 sps:$4 sm:$0xff]   ;;  %v9911_v33 = vld [vmem:[#allocation2 + $0x130] ss:$8 sps:$4 sm:$0xff]  }
  0x27   :  { %262 = vmatprep.subr.bf16.mxu0 %v9858_v6  ;;  %526 = vmatpush1.bf16.msra.mxu1 %v9902_v21  ;;  %v9879_v32 = vld [vmem:[#allocation2 + $0xd4] ss:$8 sps:$4 sm:$0xff]   ;;  %v9881_v34 = vld [vmem:[#allocation2 + $0xd0] ss:$8 sps:$4 sm:$0xff]   ;;  %v9912_v35 = vld [vmem:[#allocation2 + $0x124] ss:$8 sps:$4 sm:$0xff]  }
  0x28   :  { %527 = vmatprep.subr.bf16.mxu1 %v9903_v23  ;;  %v9882_v36 = vld [vmem:[#allocation2 + $0xc4] ss:$8 sps:$4 sm:$0xff]   ;;  %v9914_v37 = vld [vmem:[#allocation2 + $0x120] ss:$8 sps:$4 sm:$0xff]   ;;  %v9915_v39 = vld [vmem:[#allocation2 + $0x114] ss:$8 sps:$4 sm:$0xff]  }
  0x29   :  { %v9884_v38 = vld [vmem:[#allocation2 + $0xc0] ss:$8 sps:$4 sm:$0xff]   ;;  %v9885_v40 = vld [vmem:[#allocation2 + $0xb4] ss:$8 sps:$4 sm:$0xff]   ;;  %v9917_v41 = vld [vmem:[#allocation2 + $0x110] ss:$8 sps:$4 sm:$0xff]  }
  0x2a   :  { %263 = vmatpush1.bf16.msra.mxu0 %v9860_v7  ;;  %v9887_v42 = vld [vmem:[#allocation2 + $0xb0] ss:$8 sps:$4 sm:$0xff]   ;;  %v9918_v43 = vld [vmem:[#allocation2 + $0x104] ss:$8 sps:$4 sm:$0xff]   ;;  %v9920_v45 = vld [vmem:[#allocation2 + $0x100] ss:$8 sps:$4 sm:$0xff]  }
  0x2b   :  { %264 = vmatprep.subr.bf16.mxu0 %v9861_v8  ;;  %528 = vmatpush1.bf16.msra.mxu1 %v9905_v25  ;;  %v9888_v44 = vld [vmem:[#allocation2 + $0xa4] ss:$8 sps:$4 sm:$0xff]   ;;  %v9890_v46 = vld [vmem:[#allocation2 + $0xa0] ss:$8 sps:$4 sm:$0xff]   ;;  %v9891_v47 = vld [vmem:[#allocation2 + $0x94] ss:$8 sps:$4 sm:$0xff]  }
  0x2c   :  { %529 = vmatprep.subr.bf16.mxu1 %v9906_v27  ;;  %v9893_v48 = vld [vmem:[#allocation2 + $0x90] ss:$8 sps:$4 sm:$0xff]   ;;  %v9894_v49 = vld [vmem:[#allocation2 + $0x84] ss:$8 sps:$4 sm:$0xff]   ;;  %v9896_v50 = vld [vmem:[#allocation2 + $0x80] ss:$8 sps:$4 sm:$0xff]  }
  0x2d   :  { %v42_v51 = vld [vmem:[%s11831_s0] sm:$0xff]  ;;  %v44_v52 = vld [vmem:[%s11831_s0 + $0x10] sm:$0x3]  ;;  %v9921_v54 = vld [vmem:[#allocation2 + $0x1f4] ss:$8 sps:$4 sm:$0xff]  }
  0x2e   :  { %265 = vmatpush1.bf16.msra.mxu0 %v9863_v9  ;;  %v50_v53 = vpack.c.bf16 %v44_v52, %v42_v51  ;;  %v9923_v55 = vld [vmem:[#allocation2 + $0x1f0] ss:$8 sps:$4 sm:$0xff]   ;;  %v9924_v56 = vld [vmem:[#allocation2 + $0x1e4] ss:$8 sps:$4 sm:$0xff]   ;;  %v9926_v57 = vld [vmem:[#allocation2 + $0x1e0] ss:$8 sps:$4 sm:$0xff]  }
  0x2f   :  { %266 = vmatprep.subr.bf16.mxu0 %v9864_v10  ;;  %530 = vmatpush1.bf16.msra.mxu1 %v9908_v30  ;;  %v9927_v58 = vld [vmem:[#allocation2 + $0x1d4] ss:$8 sps:$4 sm:$0xff]   ;;  %v9929_v59 = vld [vmem:[#allocation2 + $0x1d0] ss:$8 sps:$4 sm:$0xff]   ;;  %v9930_v60 = vld [vmem:[#allocation2 + $0x1c4] ss:$8 sps:$4 sm:$0xff]  }
  0x30   :  { %531 = vmatprep.subr.bf16.mxu1 %v9909_v31  ;;  %v9932_v61 = vld [vmem:[#allocation2 + $0x1c0] ss:$8 sps:$4 sm:$0xff]   ;;  %v9933_v62 = vld [vmem:[#allocation2 + $0x1b4] ss:$8 sps:$4 sm:$0xff]   ;;  %v9935_v63 = vld [vmem:[#allocation2 + $0x1b0] ss:$8 sps:$4 sm:$0xff]  }
  0x31   :  { %v9936_v0 = vld [vmem:[#allocation2 + $0x1a4] ss:$8 sps:$4 sm:$0xff]   ;;  %v9938_v1 = vld [vmem:[#allocation2 + $0x1a0] ss:$8 sps:$4 sm:$0xff]   ;;  %v9939_v2 = vld [vmem:[#allocation2 + $0x194] ss:$8 sps:$4 sm:$0xff]  }
  0x32   :  { %267 = vmatpush1.bf16.msra.mxu0 %v9866_v11  ;;  %v9941_v3 = vld [vmem:[#allocation2 + $0x190] ss:$8 sps:$4 sm:$0xff]   ;;  %v9942_v4 = vld [vmem:[#allocation2 + $0x184] ss:$8 sps:$4 sm:$0xff]   ;;  %v9944_v5 = vld [vmem:[#allocation2 + $0x180] ss:$8 sps:$4 sm:$0xff]  }
  0x33   :  { %268 = vmatprep.subr.bf16.mxu0 %v9867_v12  ;;  %532 = vmatpush1.bf16.msra.mxu1 %v9911_v33  ;;  %v9945_v6 = vld [vmem:[#allocation2 + $0x270] ss:$8 sps:$4 sm:$0xff]   ;;  %v9947_v7 = vld [vmem:[#allocation2 + $0x274] ss:$8 sps:$4 sm:$0xff]   ;;  %v9950_v8 = vld [vmem:[#allocation2 + $0x264] ss:$8 sps:$4 sm:$0xff]  }
  0x34   :  { %533 = vmatprep.subr.bf16.mxu1 %v9912_v35  ;;  %v9948_v9 = vld [vmem:[#allocation2 + $0x260] ss:$8 sps:$4 sm:$0xff]   ;;  %v9953_v10 = vld [vmem:[#allocation2 + $0x254] ss:$8 sps:$4 sm:$0xff]   ;;  %v9951_v11 = vld [vmem:[#allocation2 + $0x250] ss:$8 sps:$4 sm:$0xff]  }
  0x35   :  { %v9956_v12 = vld [vmem:[#allocation2 + $0x244] ss:$8 sps:$4 sm:$0xff]   ;;  %v9954_v13 = vld [vmem:[#allocation2 + $0x240] ss:$8 sps:$4 sm:$0xff]   ;;  %v9959_v14 = vld [vmem:[#allocation2 + $0x234] ss:$8 sps:$4 sm:$0xff]  }
  0x36   :  { %269 = vmatpush1.bf16.msra.mxu0 %v9869_v15  ;;  %v9957_v15 = vld [vmem:[#allocation2 + $0x230] ss:$8 sps:$4 sm:$0xff]   ;;  %v9960_v17 = vld [vmem:[#allocation2 + $0x220] ss:$8 sps:$4 sm:$0xff]   ;;  %v9965_v18 = vld [vmem:[#allocation2 + $0x214] ss:$8 sps:$4 sm:$0xff]  }
  0x37   :  { %270 = vmatprep.subr.bf16.mxu0 %v9870_v16  ;;  %534 = vmatpush1.bf16.msra.mxu1 %v9914_v37  ;;  %v9962_v16 = vld [vmem:[#allocation2 + $0x224] ss:$8 sps:$4 sm:$0xff]   ;;  %v9963_v19 = vld [vmem:[#allocation2 + $0x210] ss:$8 sps:$4 sm:$0xff]   ;;  %v9966_v21 = vld [vmem:[#allocation2 + $0x200] ss:$8 sps:$4 sm:$0xff]  }
  0x38   :  { %535 = vmatprep.subr.bf16.mxu1 %v9915_v39  ;;  %v9968_v20 = vld [vmem:[#allocation2 + $0x204] ss:$8 sps:$4 sm:$0xff]  }
  0x3a   :  { %271 = vmatpush1.bf16.msra.mxu0 %v9872_v22  ;;  %v86_v22 = vlaneseq }
  0x3b   :  { %272 = vmatprep.subr.bf16.mxu0 %v9873_v24  ;;  %536 = vmatpush1.bf16.msra.mxu1 %v9917_v41  ;;  %v84_v24 = vld [vmem:[#allocation4] sm:$0x3] }
  0x3c   :  { %537 = vmatprep.subr.bf16.mxu1 %v9918_v43  ;;  %v87_v23 = vshrl.u32 %v86_v22, 7  ;;  %v10014_v22 = vld [vmem:[#allocation2 + $0x300] ss:$8 sps:$4 sm:$0xff]  }
  0x3e   :  { %273 = vmatpush2.bf16.msra.mxu0 %v9875_v26  ;;  %v11617_v25 = vsub.s32 0, %v87_v23  ;;  %v11619_v26 = vsub.s32 1, %v87_v23  ;;  %v351_v23 = vld [vmem:[#allocation4 + $0x2] sm:$0x3] }
  0x3f   :  { %274 = vmatprep.subr.bf16.mxu0 %v9876_v28  ;;  %538 = vmatpush1.bf16.msra.mxu1 %v9920_v45 }
  0x40   :  { %539 = vmatprep.subr.bf16.mxu1 %v9921_v54  ;;  %v89_v27 = vrot.slane %v84_v24, %v11617_v25  ;;  %v93_v28 = vrot.slane %v84_v24, %v11619_v26  ;;  %v356_v24 = vrot.slane %v351_v23, %v11617_v25 }
  0x42   :  { %275 = vmatpush2.bf16.msra.mxu0 %v9878_v29 }
  0x43   :  { %276 = vmatprep.subr.bf16.mxu0 %v9879_v32  ;;  %540 = vmatpush2.bf16.msra.mxu1 %v9923_v55  ;;  %v9971_v55 = vld [vmem:[#allocation2 + $0x2f4] ss:$8 sps:$4 sm:$0xff]  }
  0x44   :  { %541 = vmatprep.subr.bf16.mxu1 %v9924_v56  ;;  %v9969_v56 = vld [vmem:[#allocation2 + $0x2f0] ss:$8 sps:$4 sm:$0xff]  }
  0x46   :  { %277 = vmatpush2.bf16.msra.mxu0 %v9881_v34 }
  0x47   :  { %278 = vmatprep.subr.bf16.mxu0 %v9882_v36  ;;  %542 = vmatpush2.bf16.msra.mxu1 %v9926_v57  ;;  %v9974_v57 = vld [vmem:[#allocation2 + $0x2e4] ss:$8 sps:$4 sm:$0xff]  }
  0x48   :  { %543 = vmatprep.subr.bf16.mxu1 %v9927_v58  ;;  %v9972_v58 = vld [vmem:[#allocation2 + $0x2e0] ss:$8 sps:$4 sm:$0xff]  }
  0x4a   :  { %279 = vmatpush2.bf16.msra.mxu0 %v9884_v38 }
  0x4b   :  { %280 = vmatprep.subr.bf16.mxu0 %v9885_v40  ;;  %544 = vmatpush2.bf16.msra.mxu1 %v9929_v59  ;;  %v9977_v59 = vld [vmem:[#allocation2 + $0x2d4] ss:$8 sps:$4 sm:$0xff]  }
  0x4c   :  { %545 = vmatprep.subr.bf16.mxu1 %v9930_v60  ;;  %v9975_v60 = vld [vmem:[#allocation2 + $0x2d0] ss:$8 sps:$4 sm:$0xff]  }
  0x4e   :  { %281 = vmatpush2.bf16.msra.mxu0 %v9887_v42 }
  0x4f   :  { %282 = vmatprep.subr.bf16.mxu0 %v9888_v44  ;;  %546 = vmatpush2.bf16.msra.mxu1 %v9932_v61  ;;  %v9980_v61 = vld [vmem:[#allocation2 + $0x2c4] ss:$8 sps:$4 sm:$0xff]  }
  0x50   :  { %547 = vmatprep.subr.bf16.mxu1 %v9933_v62  ;;  %v9978_v62 = vld [vmem:[#allocation2 + $0x2c0] ss:$8 sps:$4 sm:$0xff]  }
  0x52   :  { %283 = vmatpush2.bf16.msra.mxu0 %v9890_v46 }
  0x53   :  { %284 = vmatprep.subr.bf16.mxu0 %v9891_v47  ;;  %548 = vmatpush2.bf16.msra.mxu1 %v9935_v63  ;;  %v9983_v63 = vld [vmem:[#allocation2 + $0x2b4] ss:$8 sps:$4 sm:$0xff]  }
  0x54   :  { %549 = vmatprep.subr.bf16.mxu1 %v9936_v0  ;;  %v9981_v0 = vld [vmem:[#allocation2 + $0x2b0] ss:$8 sps:$4 sm:$0xff]  }
  0x56   :  { %285 = vmatpush2.bf16.msra.mxu0 %v9893_v48 }
  0x57   :  { %286 = vmatprep.subr.bf16.mxu0 %v9894_v49  ;;  %550 = vmatpush2.bf16.msra.mxu1 %v9938_v1  ;;  %v9986_v1 = vld [vmem:[#allocation2 + $0x2a4] ss:$8 sps:$4 sm:$0xff]  }
  0x58   :  { %551 = vmatprep.subr.bf16.mxu1 %v9939_v2  ;;  %v9984_v2 = vld [vmem:[#allocation2 + $0x2a0] ss:$8 sps:$4 sm:$0xff]  }
  0x5a   :  { %287 = vmatpush2.bf16.msra.mxu0 %v9896_v50 }
  0x5b   :  { %552 = vmatpush2.bf16.msra.mxu1 %v9941_v3  ;;  %790 = vmatprep.subr.bf16.mxu0 %v9947_v7  ;;  %v9989_v3 = vld [vmem:[#allocation2 + $0x294] ss:$8 sps:$4 sm:$0xff]   ;;  %v9993_v7 = vld [vmem:[#allocation2 + $0x370] ss:$8 sps:$4 sm:$0xff]  }
  0x5c   :  { %553 = vmatprep.subr.bf16.mxu1 %v9942_v4  ;;  %v9987_v4 = vld [vmem:[#allocation2 + $0x290] ss:$8 sps:$4 sm:$0xff]  }
  0x5d   :  { %289 = vmatmul.mubr.bf16.vlgmr.msra.gmra.mxu0 %v50_v53 }
  0x5e   :  { %791 = vmatpush1.bf16.msra.mxu0 %v9945_v6  ;;  %v9990_v6 = vld [vmem:[#allocation2 + $0x280] ss:$8 sps:$4 sm:$0xff]  }
  0x5f   :  { %554 = vmatpush2.bf16.msra.mxu1 %v9944_v5  ;;  %792 = vmatprep.subr.bf16.mxu0 %v9950_v8  ;;  %v9992_v5 = vld [vmem:[#allocation2 + $0x284] ss:$8 sps:$4 sm:$0xff]   ;;  %v9995_v8 = vld [vmem:[#allocation2 + $0x374] ss:$8 sps:$4 sm:$0xff]  }
  0x60   :  { %1057 = vmatprep.subr.bf16.mxu1 %v9995_v8  ;;  %v10046_v8 = vld [vmem:[#allocation2 + $0x464] ss:$8 sps:$4 sm:$0xff]  }
  0x62   :  { %793 = vmatpush1.bf16.msra.mxu0 %v9948_v9  ;;  %v9998_v9 = vld [vmem:[#allocation2 + $0x364] ss:$8 sps:$4 sm:$0xff]  }
  0x63   :  { %794 = vmatprep.subr.bf16.mxu0 %v9953_v10  ;;  %v9996_v10 = vld [vmem:[#allocation2 + $0x360] ss:$8 sps:$4 sm:$0xff]  }
  0x66   :  { %795 = vmatpush1.bf16.msra.mxu0 %v9951_v11  ;;  %v10001_v11 = vld [vmem:[#allocation2 + $0x354] ss:$8 sps:$4 sm:$0xff]  }
  0x67   :  { %796 = vmatprep.subr.bf16.mxu0 %v9956_v12  ;;  %v9999_v12 = vld [vmem:[#allocation2 + $0x350] ss:$8 sps:$4 sm:$0xff]  }
  0x6a   :  { %797 = vmatpush1.bf16.msra.mxu0 %v9954_v13  ;;  %v10004_v13 = vld [vmem:[#allocation2 + $0x344] ss:$8 sps:$4 sm:$0xff]  }
  0x6b   :  { %798 = vmatprep.subr.bf16.mxu0 %v9959_v14  ;;  %v10002_v14 = vld [vmem:[#allocation2 + $0x340] ss:$8 sps:$4 sm:$0xff]  }
  0x6e   :  { %799 = vmatpush1.bf16.msra.mxu0 %v9957_v15  ;;  %v10007_v15 = vld [vmem:[#allocation2 + $0x334] ss:$8 sps:$4 sm:$0xff]  }
  0x6f   :  { %800 = vmatprep.subr.bf16.mxu0 %v9962_v16  ;;  %v10005_v16 = vld [vmem:[#allocation2 + $0x330] ss:$8 sps:$4 sm:$0xff]  }
  0x72   :  { %801 = vmatpush1.bf16.msra.mxu0 %v9960_v17  ;;  %v10010_v17 = vld [vmem:[#allocation2 + $0x324] ss:$8 sps:$4 sm:$0xff]  }
  0x73   :  { %802 = vmatprep.subr.bf16.mxu0 %v9965_v18  ;;  %v10008_v18 = vld [vmem:[#allocation2 + $0x320] ss:$8 sps:$4 sm:$0xff]  }
  0x76   :  { %803 = vmatpush1.bf16.msra.mxu0 %v9963_v19  ;;  %v10013_v19 = vld [vmem:[#allocation2 + $0x314] ss:$8 sps:$4 sm:$0xff]  }
  0x77   :  { %804 = vmatprep.subr.bf16.mxu0 %v9968_v20  ;;  %v10011_v20 = vld [vmem:[#allocation2 + $0x310] ss:$8 sps:$4 sm:$0xff]  }
  0x7a   :  { %805 = vmatpush1.bf16.msra.mxu0 %v9966_v21  ;;  %v10016_v21 = vld [vmem:[#allocation2 + $0x304] ss:$8 sps:$4 sm:$0xff]  }
  0x7b   :  { %806 = vmatprep.subr.bf16.mxu0 %v9971_v55  ;;  %v10017_v55 = vld [vmem:[#allocation2 + $0x3f0] ss:$8 sps:$4 sm:$0xff]  }
  0x7e   :  { %807 = vmatpush2.bf16.msra.mxu0 %v9969_v56  ;;  %v10022_v56 = vld [vmem:[#allocation2 + $0x3e4] ss:$8 sps:$4 sm:$0xff]  }
  0x7f   :  { %808 = vmatprep.subr.bf16.mxu0 %v9974_v57  ;;  %v10020_v57 = vld [vmem:[#allocation2 + $0x3e0] ss:$8 sps:$4 sm:$0xff]  }
  0x82   :  { %809 = vmatpush2.bf16.msra.mxu0 %v9972_v58  ;;  %v10025_v58 = vld [vmem:[#allocation2 + $0x3d4] ss:$8 sps:$4 sm:$0xff]  }
  0x83   :  { %810 = vmatprep.subr.bf16.mxu0 %v9977_v59  ;;  %v10023_v59 = vld [vmem:[#allocation2 + $0x3d0] ss:$8 sps:$4 sm:$0xff]  }
  0x86   :  { %811 = vmatpush2.bf16.msra.mxu0 %v9975_v60  ;;  %v10028_v60 = vld [vmem:[#allocation2 + $0x3c4] ss:$8 sps:$4 sm:$0xff]  }
  0x87   :  { %812 = vmatprep.subr.bf16.mxu0 %v9980_v61  ;;  %v10026_v61 = vld [vmem:[#allocation2 + $0x3c0] ss:$8 sps:$4 sm:$0xff]  }
  0x8a   :  { %813 = vmatpush2.bf16.msra.mxu0 %v9978_v62  ;;  %v10031_v62 = vld [vmem:[#allocation2 + $0x3b4] ss:$8 sps:$4 sm:$0xff]  }
  0x8b   :  { %814 = vmatprep.subr.bf16.mxu0 %v9983_v63  ;;  %v10029_v63 = vld [vmem:[#allocation2 + $0x3b0] ss:$8 sps:$4 sm:$0xff]  }
  0x8e   :  { %815 = vmatpush2.bf16.msra.mxu0 %v9981_v0  ;;  %v10034_v0 = vld [vmem:[#allocation2 + $0x3a4] ss:$8 sps:$4 sm:$0xff]  }
  0x8f   :  { %816 = vmatprep.subr.bf16.mxu0 %v9986_v1  ;;  %v10032_v1 = vld [vmem:[#allocation2 + $0x3a0] ss:$8 sps:$4 sm:$0xff]  }
  0x92   :  { %817 = vmatpush2.bf16.msra.mxu0 %v9984_v2  ;;  %v10037_v2 = vld [vmem:[#allocation2 + $0x394] ss:$8 sps:$4 sm:$0xff]  }
  0x93   :  { %818 = vmatprep.subr.bf16.mxu0 %v9989_v3  ;;  %v10035_v3 = vld [vmem:[#allocation2 + $0x390] ss:$8 sps:$4 sm:$0xff]  }
  0x96   :  { %819 = vmatpush2.bf16.msra.mxu0 %v9987_v4  ;;  %v10040_v4 = vld [vmem:[#allocation2 + $0x384] ss:$8 sps:$4 sm:$0xff]  }
  0x97   :  { %820 = vmatprep.subr.bf16.mxu0 %v9992_v5  ;;  %v10038_v5 = vld [vmem:[#allocation2 + $0x380] ss:$8 sps:$4 sm:$0xff]  }
  0x9a   :  { %821 = vmatpush2.bf16.msra.mxu0 %v9990_v6  ;;  %v10041_v6 = vld [vmem:[#allocation2 + $0x470] ss:$8 sps:$4 sm:$0xff]  }
 0x11d   :  { %v290_v29 = vpop.f32.mrf.mxu0 }
 0x11e   :  { %v291_v30 = vadd.f32 %v290_v29, %v89_v27 }
 0x11f   :  { %v292_v31 = vpop.f32.mrf.mxu0 }
 0x120   :  { %v293_v32 = vadd.f32 %v292_v31, %v93_v28  ;;  %v299_v33 = vmul.f32 0.5, %v291_v30 }
 0x121   :  { %v294_v34 = vpop.f32.mrf.mxu0 }
 0x122   :  { %v300_v35 = vmul.f32 0.5, %v293_v32  ;;  %v295_v36 = vadd.f32 %v294_v34, %v89_v27  ;;  %v360_v27 = vrot.slane %v351_v23, %v11619_v26 }
 0x123   :  { %v296_v37 = vpop.f32.mrf.mxu0 }
 0x124   :  { %11481 = vtanh.f32 %v300_v35  ;;  %v301_v38 = vmul.f32 0.5, %v295_v36  ;;  %v297_v39 = vadd.f32 %v296_v37, %v93_v28 }
 0x125   :  { %11483 = vtanh.f32 %v299_v33 }
 0x126   :  { %11485 = vtanh.f32 %v301_v38  ;;  %v302_v40 = vmul.f32 0.5, %v297_v39 }
 0x128   :  { %11487 = vtanh.f32 %v302_v40 }
 0x131   :  { %v11482_v41 = vpop.eup %11481 }
 0x132   :  { %v11484_v42 = vpop.eup %11483  ;;  %v308_v45 = vadd.f32 1.0, %v11482_v41 }
 0x133   :  { %v11486_v43 = vpop.eup %11485  ;;  %v307_v47 = vadd.f32 1.0, %v11484_v42 }
 0x134   :  { %v309_v44 = vadd.f32 1.0, %v11486_v43  ;;  %v312_v50 = vmul.f32 0.5, %v308_v45 }
 0x135   :  { %v11488_v46 = vpop.eup %11487  ;;  %v311_v52 = vmul.f32 0.5, %v307_v47 }
 0x136   :  { %v310_v48 = vadd.f32 1.0, %v11488_v46  ;;  %v313_v49 = vmul.f32 0.5, %v309_v44 }
 0x138   :  { %v314_v51 = vmul.f32 0.5, %v310_v48  ;;  %v315_v54 = vpack.c.bf16 %v313_v49, %v311_v52 }
 0x13a   :  { %v316_v53 = vpack.c.bf16 %v314_v51, %v312_v50 }
 0x13c   :  { %555 = vmatprep.mubr.bf16.mxu1 %v316_v53 }
 0x13d   :  { %556 = vmatmul.mubr.bf16.vlgmr.msra.gmra.mxu1 %v315_v54  ;;  %v10019_v54 = vld [vmem:[#allocation2 + $0x3f4] ss:$8 sps:$4 sm:$0xff]  }
 0x13e   :  { %1058 = vmatpush1.bf16.msra.mxu1 %v9993_v7  ;;  %v10043_v7 = vld [vmem:[#allocation2 + $0x474] ss:$8 sps:$4 sm:$0xff]  }
 0x13f   :  { %1059 = vmatprep.subr.bf16.mxu1 %v9998_v9  ;;  %1324 = vmatprep.subr.bf16.mxu0 %v10043_v7  ;;  %v10044_v9 = vld [vmem:[#allocation2 + $0x460] ss:$8 sps:$4 sm:$0xff]   ;;  %v10139_v7 = vld [vmem:[#allocation2 + $0x574] ss:$8 sps:$4 sm:$0xff]  }
 0x142   :  { %1060 = vmatpush1.bf16.msra.mxu1 %v9996_v10  ;;  %v10049_v10 = vld [vmem:[#allocation2 + $0x454] ss:$8 sps:$4 sm:$0xff]  }
 0x143   :  { %1061 = vmatprep.subr.bf16.mxu1 %v10001_v11  ;;  %v10047_v11 = vld [vmem:[#allocation2 + $0x450] ss:$8 sps:$4 sm:$0xff]  }
 0x146   :  { %1062 = vmatpush1.bf16.msra.mxu1 %v9999_v12  ;;  %v10052_v12 = vld [vmem:[#allocation2 + $0x444] ss:$8 sps:$4 sm:$0xff]  }
 0x147   :  { %1063 = vmatprep.subr.bf16.mxu1 %v10004_v13  ;;  %v10050_v13 = vld [vmem:[#allocation2 + $0x440] ss:$8 sps:$4 sm:$0xff]  }
 0x14a   :  { %1064 = vmatpush1.bf16.msra.mxu1 %v10002_v14  ;;  %v10055_v14 = vld [vmem:[#allocation2 + $0x434] ss:$8 sps:$4 sm:$0xff]  }
 0x14b   :  { %1065 = vmatprep.subr.bf16.mxu1 %v10007_v15  ;;  %v10053_v15 = vld [vmem:[#allocation2 + $0x430] ss:$8 sps:$4 sm:$0xff]  }
 0x14e   :  { %1066 = vmatpush1.bf16.msra.mxu1 %v10005_v16  ;;  %v10058_v16 = vld [vmem:[#allocation2 + $0x424] ss:$8 sps:$4 sm:$0xff]  }
 0x14f   :  { %1067 = vmatprep.subr.bf16.mxu1 %v10010_v17  ;;  %v10056_v17 = vld [vmem:[#allocation2 + $0x420] ss:$8 sps:$4 sm:$0xff]  }
 0x152   :  { %1068 = vmatpush1.bf16.msra.mxu1 %v10008_v18  ;;  %v10061_v18 = vld [vmem:[#allocation2 + $0x414] ss:$8 sps:$4 sm:$0xff]  }
 0x153   :  { %1069 = vmatprep.subr.bf16.mxu1 %v10013_v19  ;;  %v10059_v19 = vld [vmem:[#allocation2 + $0x410] ss:$8 sps:$4 sm:$0xff]  }
 0x156   :  { %1070 = vmatpush1.bf16.msra.mxu1 %v10011_v20  ;;  %v10064_v20 = vld [vmem:[#allocation2 + $0x404] ss:$8 sps:$4 sm:$0xff]  }
 0x157   :  { %1071 = vmatprep.subr.bf16.mxu1 %v10016_v21  ;;  %v10062_v21 = vld [vmem:[#allocation2 + $0x400] ss:$8 sps:$4 sm:$0xff]  }
 0x15a   :  { %1072 = vmatpush1.bf16.msra.mxu1 %v10014_v22  ;;  %v618_v22 = vld [vmem:[#allocation4 + $0x4] sm:$0x3] }
 0x15b   :  { %1073 = vmatprep.subr.bf16.mxu1 %v10019_v54  ;;  %v623_v23 = vrot.slane %v618_v22, %v11617_v25  ;;  %v10065_v54 = vld [vmem:[#allocation2 + $0x4f0] ss:$8 sps:$4 sm:$0xff]  }
 0x15e   :  { %1074 = vmatpush2.bf16.msra.mxu1 %v10017_v55  ;;  %v10070_v55 = vld [vmem:[#allocation2 + $0x4e4] ss:$8 sps:$4 sm:$0xff]  }
 0x15f   :  { %1075 = vmatprep.subr.bf16.mxu1 %v10022_v56  ;;  %v10068_v56 = vld [vmem:[#allocation2 + $0x4e0] ss:$8 sps:$4 sm:$0xff]  }
 0x162   :  { %1076 = vmatpush2.bf16.msra.mxu1 %v10020_v57  ;;  %v10073_v57 = vld [vmem:[#allocation2 + $0x4d4] ss:$8 sps:$4 sm:$0xff]  }
 0x163   :  { %1077 = vmatprep.subr.bf16.mxu1 %v10025_v58  ;;  %v10071_v58 = vld [vmem:[#allocation2 + $0x4d0] ss:$8 sps:$4 sm:$0xff]  }
 0x166   :  { %1078 = vmatpush2.bf16.msra.mxu1 %v10023_v59  ;;  %v10076_v59 = vld [vmem:[#allocation2 + $0x4c4] ss:$8 sps:$4 sm:$0xff]  }
 0x167   :  { %1079 = vmatprep.subr.bf16.mxu1 %v10028_v60  ;;  %v10074_v60 = vld [vmem:[#allocation2 + $0x4c0] ss:$8 sps:$4 sm:$0xff]  }
 0x16a   :  { %1080 = vmatpush2.bf16.msra.mxu1 %v10026_v61  ;;  %v10079_v61 = vld [vmem:[#allocation2 + $0x4b4] ss:$8 sps:$4 sm:$0xff]  }
 0x16b   :  { %1081 = vmatprep.subr.bf16.mxu1 %v10031_v62  ;;  %v10077_v62 = vld [vmem:[#allocation2 + $0x4b0] ss:$8 sps:$4 sm:$0xff]  }
 0x16e   :  { %1082 = vmatpush2.bf16.msra.mxu1 %v10029_v63  ;;  %v10082_v63 = vld [vmem:[#allocation2 + $0x4a4] ss:$8 sps:$4 sm:$0xff]  }
 0x16f   :  { %1083 = vmatprep.subr.bf16.mxu1 %v10034_v0  ;;  %v10080_v0 = vld [vmem:[#allocation2 + $0x4a0] ss:$8 sps:$4 sm:$0xff]  }
 0x172   :  { %1084 = vmatpush2.bf16.msra.mxu1 %v10032_v1  ;;  %v10085_v1 = vld [vmem:[#allocation2 + $0x494] ss:$8 sps:$4 sm:$0xff]  }
 0x173   :  { %1085 = vmatprep.subr.bf16.mxu1 %v10037_v2  ;;  %v10083_v2 = vld [vmem:[#allocation2 + $0x490] ss:$8 sps:$4 sm:$0xff]  }
 0x176   :  { %1086 = vmatpush2.bf16.msra.mxu1 %v10035_v3  ;;  %v10088_v3 = vld [vmem:[#allocation2 + $0x484] ss:$8 sps:$4 sm:$0xff]  }
 0x177   :  { %1087 = vmatprep.subr.bf16.mxu1 %v10040_v4  ;;  %v10086_v4 = vld [vmem:[#allocation2 + $0x480] ss:$8 sps:$4 sm:$0xff]  }
 0x17a   :  { %1088 = vmatpush2.bf16.msra.mxu1 %v10038_v5  ;;  %v10091_v5 = vld [vmem:[#allocation2 + $0x674] ss:$8 sps:$4 sm:$0xff]  }
 0x17b   :  { %1591 = vmatprep.subr.bf16.mxu1 %v10139_v7  ;;  %v10112_v7 = vld [vmem:[#allocation2 + $0x604] ss:$8 sps:$4 sm:$0xff]  }
 0x1fd   :  { %v557_v28 = vpop.f32.mrf.mxu1 }
 0x1fe   :  { %v558_v29 = vadd.f32 %v557_v28, %v356_v24 }
 0x1ff   :  { %v559_v30 = vpop.f32.mrf.mxu1 }
 0x200   :  { %v560_v31 = vadd.f32 %v559_v30, %v360_v27  ;;  %v566_v32 = vmul.f32 0.5, %v558_v29 }
 0x201   :  { %v561_v33 = vpop.f32.mrf.mxu1 }
 0x202   :  { %v567_v34 = vmul.f32 0.5, %v560_v31  ;;  %v562_v35 = vadd.f32 %v561_v33, %v356_v24  ;;  %v627_v24 = vrot.slane %v618_v22, %v11619_v26  ;;  %v10158_v22 = vld [vmem:[#allocation2 + $0x500] ss:$8 sps:$4 sm:$0xff]  }
 0x203   :  { %v563_v36 = vpop.f32.mrf.mxu1 }
 0x204   :  { %11489 = vtanh.f32 %v567_v34  ;;  %v568_v37 = vmul.f32 0.5, %v562_v35  ;;  %v564_v38 = vadd.f32 %v563_v36, %v360_v27 }
 0x205   :  { %11491 = vtanh.f32 %v566_v32 }
 0x206   :  { %11493 = vtanh.f32 %v568_v37  ;;  %v569_v39 = vmul.f32 0.5, %v564_v38 }
 0x208   :  { %11495 = vtanh.f32 %v569_v39 }
 0x211   :  { %v11490_v40 = vpop.eup %11489 }
 0x212   :  { %v11492_v41 = vpop.eup %11491  ;;  %v575_v43 = vadd.f32 1.0, %v11490_v40 }
 0x213   :  { %v11494_v42 = vpop.eup %11493  ;;  %v574_v46 = vadd.f32 1.0, %v11492_v41 }
 0x214   :  { %v576_v44 = vadd.f32 1.0, %v11494_v42  ;;  %v579_v49 = vmul.f32 0.5, %v575_v43 }
 0x215   :  { %v11496_v45 = vpop.eup %11495  ;;  %v578_v51 = vmul.f32 0.5, %v574_v46 }
 0x216   :  { %v577_v47 = vadd.f32 1.0, %v11496_v45  ;;  %v580_v48 = vmul.f32 0.5, %v576_v44 }
 0x218   :  { %v581_v50 = vmul.f32 0.5, %v577_v47  ;;  %v582_v53 = vpack.c.bf16 %v580_v48, %v578_v51 }
 0x21a   :  { %v583_v52 = vpack.c.bf16 %v581_v50, %v579_v49 }
 0x21c   :  { %822 = vmatprep.mubr.bf16.mxu0 %v583_v52 }
 0x21d   :  { %823 = vmatmul.mubr.bf16.vlgmr.msra.gmra.mxu0 %v582_v53  ;;  %v10067_v53 = vld [vmem:[#allocation2 + $0x4f4] ss:$8 sps:$4 sm:$0xff]  }
 0x21e   :  { %1325 = vmatpush1.bf16.msra.mxu0 %v10041_v6  ;;  %v10137_v6 = vld [vmem:[#allocation2 + $0x570] ss:$8 sps:$4 sm:$0xff]  }
 0x21f   :  { %1326 = vmatprep.subr.bf16.mxu0 %v10046_v8  ;;  %v10142_v8 = vld [vmem:[#allocation2 + $0x564] ss:$8 sps:$4 sm:$0xff]  }
 0x222   :  { %1327 = vmatpush1.bf16.msra.mxu0 %v10044_v9  ;;  %v10140_v9 = vld [vmem:[#allocation2 + $0x560] ss:$8 sps:$4 sm:$0xff]  }
 0x223   :  { %1328 = vmatprep.subr.bf16.mxu0 %v10049_v10  ;;  %v10145_v10 = vld [vmem:[#allocation2 + $0x554] ss:$8 sps:$4 sm:$0xff]  }
 0x226   :  { %1329 = vmatpush1.bf16.msra.mxu0 %v10047_v11  ;;  %v10143_v11 = vld [vmem:[#allocation2 + $0x550] ss:$8 sps:$4 sm:$0xff]  }
 0x227   :  { %1330 = vmatprep.subr.bf16.mxu0 %v10052_v12  ;;  %v10148_v12 = vld [vmem:[#allocation2 + $0x544] ss:$8 sps:$4 sm:$0xff]  }
 0x22a   :  { %1331 = vmatpush1.bf16.msra.mxu0 %v10050_v13  ;;  %v10146_v13 = vld [vmem:[#allocation2 + $0x540] ss:$8 sps:$4 sm:$0xff]  }
 0x22b   :  { %1332 = vmatprep.subr.bf16.mxu0 %v10055_v14  ;;  %v10151_v14 = vld [vmem:[#allocation2 + $0x534] ss:$8 sps:$4 sm:$0xff]  }
 0x22e   :  { %1333 = vmatpush1.bf16.msra.mxu0 %v10053_v15  ;;  %v10149_v15 = vld [vmem:[#allocation2 + $0x530] ss:$8 sps:$4 sm:$0xff]  }
 0x22f   :  { %1334 = vmatprep.subr.bf16.mxu0 %v10058_v16  ;;  %v10154_v16 = vld [vmem:[#allocation2 + $0x524] ss:$8 sps:$4 sm:$0xff]  }
 0x232   :  { %1335 = vmatpush1.bf16.msra.mxu0 %v10056_v17  ;;  %v10152_v17 = vld [vmem:[#allocation2 + $0x520] ss:$8 sps:$4 sm:$0xff]  }
 0x233   :  { %1336 = vmatprep.subr.bf16.mxu0 %v10061_v18  ;;  %v10157_v18 = vld [vmem:[#allocation2 + $0x514] ss:$8 sps:$4 sm:$0xff]  }
 0x236   :  { %1337 = vmatpush1.bf16.msra.mxu0 %v10059_v19  ;;  %v10155_v19 = vld [vmem:[#allocation2 + $0x510] ss:$8 sps:$4 sm:$0xff]  }
 0x237   :  { %1338 = vmatprep.subr.bf16.mxu0 %v10064_v20  ;;  %v10160_v20 = vld [vmem:[#allocation2 + $0x504] ss:$8 sps:$4 sm:$0xff]  }
 0x23a   :  { %1339 = vmatpush1.bf16.msra.mxu0 %v10062_v21  ;;  %v885_v21 = vld [vmem:[#allocation4 + $0x6] sm:$0x3] }
 0x23b   :  { %1340 = vmatprep.subr.bf16.mxu0 %v10067_v53 }
 0x23e   :  { %1341 = vmatpush2.bf16.msra.mxu0 %v10065_v54 }
 0x23f   :  { %1342 = vmatprep.subr.bf16.mxu0 %v10070_v55 }
 0x242   :  { %1343 = vmatpush2.bf16.msra.mxu0 %v10068_v56  ;;  %v10089_v56 = vld [vmem:[#allocation2 + $0x670] ss:$8 sps:$4 sm:$0xff]  }
 0x243   :  { %1344 = vmatprep.subr.bf16.mxu0 %v10073_v57 }
 0x246   :  { %1345 = vmatpush2.bf16.msra.mxu0 %v10071_v58 }
 0x247   :  { %1346 = vmatprep.subr.bf16.mxu0 %v10076_v59  ;;  %v10094_v59 = vld [vmem:[#allocation2 + $0x664] ss:$8 sps:$4 sm:$0xff]  }
 0x24a   :  { %1347 = vmatpush2.bf16.msra.mxu0 %v10074_v60  ;;  %v10092_v60 = vld [vmem:[#allocation2 + $0x660] ss:$8 sps:$4 sm:$0xff]  }
 0x24b   :  { %1348 = vmatprep.subr.bf16.mxu0 %v10079_v61  ;;  %v10097_v61 = vld [vmem:[#allocation2 + $0x654] ss:$8 sps:$4 sm:$0xff]  }
 0x24e   :  { %1349 = vmatpush2.bf16.msra.mxu0 %v10077_v62  ;;  %v10095_v62 = vld [vmem:[#allocation2 + $0x650] ss:$8 sps:$4 sm:$0xff]  }
 0x24f   :  { %1350 = vmatprep.subr.bf16.mxu0 %v10082_v63  ;;  %v10100_v63 = vld [vmem:[#allocation2 + $0x644] ss:$8 sps:$4 sm:$0xff]  }
 0x252   :  { %1351 = vmatpush2.bf16.msra.mxu0 %v10080_v0  ;;  %v10098_v0 = vld [vmem:[#allocation2 + $0x640] ss:$8 sps:$4 sm:$0xff]  }
 0x253   :  { %1352 = vmatprep.subr.bf16.mxu0 %v10085_v1  ;;  %v10103_v1 = vld [vmem:[#allocation2 + $0x634] ss:$8 sps:$4 sm:$0xff]  }
 0x256   :  { %1353 = vmatpush2.bf16.msra.mxu0 %v10083_v2  ;;  %v10101_v2 = vld [vmem:[#allocation2 + $0x630] ss:$8 sps:$4 sm:$0xff]  }
 0x257   :  { %1354 = vmatprep.subr.bf16.mxu0 %v10088_v3  ;;  %v10106_v3 = vld [vmem:[#allocation2 + $0x624] ss:$8 sps:$4 sm:$0xff]  }
 0x25a   :  { %1355 = vmatpush2.bf16.msra.mxu0 %v10086_v4  ;;  %v10104_v4 = vld [vmem:[#allocation2 + $0x620] ss:$8 sps:$4 sm:$0xff]  }
 0x25b   :  { %1848 = vmatprep.subr.bf16.mxu0 %v10091_v5  ;;  %v10109_v5 = vld [vmem:[#allocation2 + $0x614] ss:$8 sps:$4 sm:$0xff]  }
 0x2dd   :  { %v824_v27 = vpop.f32.mrf.mxu0 }
 0x2de   :  { %v825_v28 = vadd.f32 %v824_v27, %v623_v23  ;;  %v894_v27 = vrot.slane %v885_v21, %v11619_v26 }
 0x2df   :  { %v826_v29 = vpop.f32.mrf.mxu0 }
 0x2e0   :  { %v827_v30 = vadd.f32 %v826_v29, %v627_v24  ;;  %v833_v31 = vmul.f32 0.5, %v825_v28  ;;  %v10161_v28 = vld [vmem:[#allocation2 + $0x5f0] ss:$8 sps:$4 sm:$0xff]  }
 0x2e1   :  { %v828_v32 = vpop.f32.mrf.mxu0 }
 0x2e2   :  { %v834_v33 = vmul.f32 0.5, %v827_v30  ;;  %v829_v34 = vadd.f32 %v828_v32, %v623_v23  ;;  %v10163_v23 = vld [vmem:[#allocation2 + $0x5f4] ss:$8 sps:$4 sm:$0xff]  }
 0x2e3   :  { %v830_v35 = vpop.f32.mrf.mxu0 }
 0x2e4   :  { %11497 = vtanh.f32 %v834_v33  ;;  %v835_v36 = vmul.f32 0.5, %v829_v34  ;;  %v831_v37 = vadd.f32 %v830_v35, %v627_v24  ;;  %v890_v24 = vrot.slane %v885_v21, %v11617_v25  ;;  %v10133_v21 = vld [vmem:[#allocation2 + $0x694] ss:$8 sps:$4 sm:$0xff]  }
 0x2e5   :  { %11499 = vtanh.f32 %v833_v31 }
 0x2e6   :  { %11501 = vtanh.f32 %v835_v36  ;;  %v836_v38 = vmul.f32 0.5, %v831_v37 }
 0x2e8   :  { %11503 = vtanh.f32 %v836_v38 }
 0x2f1   :  { %v11498_v39 = vpop.eup %11497 }
 0x2f2   :  { %v11500_v40 = vpop.eup %11499  ;;  %v842_v42 = vadd.f32 1.0, %v11498_v39 }
 0x2f3   :  { %v11502_v41 = vpop.eup %11501  ;;  %v841_v45 = vadd.f32 1.0, %v11500_v40 }
 0x2f4   :  { %v843_v43 = vadd.f32 1.0, %v11502_v41  ;;  %v846_v48 = vmul.f32 0.5, %v842_v42 }
 0x2f5   :  { %v11504_v44 = vpop.eup %11503  ;;  %v845_v50 = vmul.f32 0.5, %v841_v45 }
 0x2f6   :  { %v844_v46 = vadd.f32 1.0, %v11504_v44  ;;  %v847_v47 = vmul.f32 0.5, %v843_v43  ;;  %v47_v44 = vld [vmem:[%s11831_s0 + $0x18] sm:$0xc] }
 0x2f8   :  { %v848_v49 = vmul.f32 0.5, %v844_v46  ;;  %v849_v52 = vpack.c.bf16 %v847_v47, %v845_v50  ;;  %v1635_v50 = vpack.c.bf16 %v47_v44, %v47_v44  ;;  %v10187_v44 = vld [vmem:[#allocation2 + $0x774] ss:$8 sps:$4 sm:$0xff]  }
 0x2fa   :  { %v850_v51 = vpack.c.bf16 %v848_v49, %v846_v48  ;;  %v1685_v57 = vrot.slane %v1635_v50, 1 }
 0x2fc   :  { %1089 = vmatprep.mubr.bf16.mxu1 %v850_v51 }
 0x2fd   :  { %1090 = vmatmul.mubr.bf16.vlgmr.msra.gmra.mxu1 %v849_v52 }
 0x2fe   :  { %1592 = vmatpush1.bf16.msra.mxu1 %v10137_v6  ;;  %v10107_v6 = vld [vmem:[#allocation2 + $0x610] ss:$8 sps:$4 sm:$0xff]  }
 0x2ff   :  { %1593 = vmatprep.subr.bf16.mxu1 %v10142_v8  ;;  %v10110_v8 = vld [vmem:[#allocation2 + $0x600] ss:$8 sps:$4 sm:$0xff]  }
 0x302   :  { %1594 = vmatpush1.bf16.msra.mxu1 %v10140_v9  ;;  %v10115_v9 = vld [vmem:[#allocation2 + $0x6f4] ss:$8 sps:$4 sm:$0xff]  }
 0x303   :  { %1595 = vmatprep.subr.bf16.mxu1 %v10145_v10  ;;  %v10113_v10 = vld [vmem:[#allocation2 + $0x6f0] ss:$8 sps:$4 sm:$0xff]  }
 0x306   :  { %1596 = vmatpush1.bf16.msra.mxu1 %v10143_v11  ;;  %v10118_v11 = vld [vmem:[#allocation2 + $0x6e4] ss:$8 sps:$4 sm:$0xff]  }
 0x307   :  { %1597 = vmatprep.subr.bf16.mxu1 %v10148_v12  ;;  %v10116_v12 = vld [vmem:[#allocation2 + $0x6e0] ss:$8 sps:$4 sm:$0xff]  }
 0x30a   :  { %1598 = vmatpush1.bf16.msra.mxu1 %v10146_v13  ;;  %v10121_v13 = vld [vmem:[#allocation2 + $0x6d4] ss:$8 sps:$4 sm:$0xff]  }
 0x30b   :  { %1599 = vmatprep.subr.bf16.mxu1 %v10151_v14  ;;  %v10119_v14 = vld [vmem:[#allocation2 + $0x6d0] ss:$8 sps:$4 sm:$0xff]  }
 0x30e   :  { %1600 = vmatpush1.bf16.msra.mxu1 %v10149_v15  ;;  %v10124_v15 = vld [vmem:[#allocation2 + $0x6c4] ss:$8 sps:$4 sm:$0xff]  }
 0x30f   :  { %1601 = vmatprep.subr.bf16.mxu1 %v10154_v16  ;;  %v10122_v16 = vld [vmem:[#allocation2 + $0x6c0] ss:$8 sps:$4 sm:$0xff]  }
 0x312   :  { %1602 = vmatpush1.bf16.msra.mxu1 %v10152_v17  ;;  %v10127_v17 = vld [vmem:[#allocation2 + $0x6b4] ss:$8 sps:$4 sm:$0xff]  }
 0x313   :  { %1603 = vmatprep.subr.bf16.mxu1 %v10157_v18  ;;  %v10125_v18 = vld [vmem:[#allocation2 + $0x6b0] ss:$8 sps:$4 sm:$0xff]  }
 0x316   :  { %1604 = vmatpush1.bf16.msra.mxu1 %v10155_v19  ;;  %v10130_v19 = vld [vmem:[#allocation2 + $0x6a4] ss:$8 sps:$4 sm:$0xff]  }
 0x317   :  { %1605 = vmatprep.subr.bf16.mxu1 %v10160_v20  ;;  %v10128_v20 = vld [vmem:[#allocation2 + $0x6a0] ss:$8 sps:$4 sm:$0xff]  }
 0x31a   :  { %1606 = vmatpush1.bf16.msra.mxu1 %v10158_v22  ;;  %v10131_v22 = vld [vmem:[#allocation2 + $0x690] ss:$8 sps:$4 sm:$0xff]  }
 0x31b   :  { %1607 = vmatprep.subr.bf16.mxu1 %v10163_v23  ;;  %v46_v23 = vld [vmem:[%s11831_s0 + $0x10] sm:$0xc] }
 0x31e   :  { %1608 = vmatpush2.bf16.msra.mxu1 %v10161_v28  ;;  %v10134_v28 = vld [vmem:[#allocation2 + $0x680] ss:$8 sps:$4 sm:$0xff]  }
 0x3bd   :  { %v1091_v29 = vpop.f32.mrf.mxu1 }
 0x3be   :  { %v1092_v30 = vadd.f32 %v1091_v29, %v890_v24 }
 0x3bf   :  { %v1093_v31 = vpop.f32.mrf.mxu1 }
 0x3c0   :  { %v1094_v32 = vadd.f32 %v1093_v31, %v894_v27  ;;  %v1100_v33 = vmul.f32 0.5, %v1092_v30  ;;  %v10166_v30 = vld [vmem:[#allocation2 + $0x5e4] ss:$8 sps:$4 sm:$0xff]   ;;  %v10164_v31 = vld [vmem:[#allocation2 + $0x5e0] ss:$8 sps:$4 sm:$0xff]  }
 0x3c1   :  { %v1095_v34 = vpop.f32.mrf.mxu1  ;;  %1609 = vmatprep.subr.bf16.mxu1 %v10166_v30  ;;  %v10214_v30 = vld [vmem:[#allocation2 + $0x7e4] ss:$8 sps:$4 sm:$0xff]  }
 0x3c2   :  { %v1101_v35 = vmul.f32 0.5, %v1094_v32  ;;  %v1096_v36 = vadd.f32 %v1095_v34, %v890_v24  ;;  %v10136_v24 = vld [vmem:[#allocation2 + $0x684] ss:$8 sps:$4 sm:$0xff]   ;;  %1610 = vmatpush2.bf16.msra.mxu1 %v10164_v31  ;;  %v10169_v32 = vld [vmem:[#allocation2 + $0x5d4] ss:$8 sps:$4 sm:$0xff]  }
 0x3c3   :  { %v1097_v37 = vpop.f32.mrf.mxu1  ;;  %1611 = vmatprep.subr.bf16.mxu1 %v10169_v32  ;;  %v10172_v34 = vld [vmem:[#allocation2 + $0x5c4] ss:$8 sps:$4 sm:$0xff]  }
 0x3c4   :  { %11505 = vtanh.f32 %v1101_v35  ;;  %v1102_v38 = vmul.f32 0.5, %v1096_v36  ;;  %v1098_v39 = vadd.f32 %v1097_v37, %v894_v27  ;;  %v1634_v27 = vpack.c.bf16 %v46_v23, %v46_v23  ;;  %v10170_v35 = vld [vmem:[#allocation2 + $0x5c0] ss:$8 sps:$4 sm:$0xff]   ;;  %v10175_v36 = vld [vmem:[#allocation2 + $0x5b4] ss:$8 sps:$4 sm:$0xff]  }
 0x3c5   :  { %11507 = vtanh.f32 %v1100_v33  ;;  %v10167_v33 = vld [vmem:[#allocation2 + $0x5d0] ss:$8 sps:$4 sm:$0xff]   ;;  %v10208_v23 = vld [vmem:[#allocation2 + $0x704] ss:$8 sps:$4 sm:$0xff]  }
 0x3c6   :  { %11509 = vtanh.f32 %v1102_v38  ;;  %v1103_v40 = vmul.f32 0.5, %v1098_v39  ;;  %v1684_v29 = vrot.slane %v1634_v27, 1  ;;  %1612 = vmatpush2.bf16.msra.mxu1 %v10167_v33  ;;  %v10173_v37 = vld [vmem:[#allocation2 + $0x5b0] ss:$8 sps:$4 sm:$0xff]   ;;  %v10178_v38 = vld [vmem:[#allocation2 + $0x5a4] ss:$8 sps:$4 sm:$0xff]  }
 0x3c7   :  { %1613 = vmatprep.subr.bf16.mxu1 %v10172_v34  ;;  %v10176_v39 = vld [vmem:[#allocation2 + $0x5a0] ss:$8 sps:$4 sm:$0xff]   ;;  %v10211_v27 = vld [vmem:[#allocation2 + $0x7f4] ss:$8 sps:$4 sm:$0xff]  }
 0x3c8   :  { %11511 = vtanh.f32 %v1103_v40  ;;  %v10181_v40 = vld [vmem:[#allocation2 + $0x594] ss:$8 sps:$4 sm:$0xff]   ;;  %v10212_v33 = vld [vmem:[#allocation2 + $0x7e0] ss:$8 sps:$4 sm:$0xff]  }
 0x3c9   :  { %v10217_v34 = vld [vmem:[#allocation2 + $0x7d4] ss:$8 sps:$4 sm:$0xff]  }
 0x3ca   :  { %1614 = vmatpush2.bf16.msra.mxu1 %v10170_v35 }
 0x3cb   :  { %1615 = vmatprep.subr.bf16.mxu1 %v10175_v36 }
 0x3ce   :  { %1616 = vmatpush2.bf16.msra.mxu1 %v10173_v37 }
 0x3cf   :  { %1617 = vmatprep.subr.bf16.mxu1 %v10178_v38  ;;  %v10215_v38 = vld [vmem:[#allocation2 + $0x7d0] ss:$8 sps:$4 sm:$0xff]  }
 0x3d1   :  { %v11506_v41 = vpop.eup %11505 }
 0x3d2   :  { %v11508_v42 = vpop.eup %11507  ;;  %v1109_v45 = vadd.f32 1.0, %v11506_v41  ;;  %1618 = vmatpush2.bf16.msra.mxu1 %v10176_v39  ;;  %v10179_v41 = vld [vmem:[#allocation2 + $0x590] ss:$8 sps:$4 sm:$0xff]  }
 0x3d3   :  { %v11510_v43 = vpop.eup %11509  ;;  %v1108_v48 = vadd.f32 1.0, %v11508_v42  ;;  %1619 = vmatprep.subr.bf16.mxu1 %v10181_v40  ;;  %v10184_v42 = vld [vmem:[#allocation2 + $0x584] ss:$8 sps:$4 sm:$0xff]  }
 0x3d4   :  { %v1110_v46 = vadd.f32 1.0, %v11510_v43  ;;  %v1113_v52 = vmul.f32 0.5, %v1109_v45  ;;  %v10182_v43 = vld [vmem:[#allocation2 + $0x580] ss:$8 sps:$4 sm:$0xff]   ;;  %v10220_v40 = vld [vmem:[#allocation2 + $0x7c4] ss:$8 sps:$4 sm:$0xff]  }
 0x3d5   :  { %v11512_v47 = vpop.eup %11511  ;;  %v1112_v54 = vmul.f32 0.5, %v1108_v48  ;;  %v1152_v45 = vld [vmem:[#allocation4 + $0x8] sm:$0x3] }
 0x3d6   :  { %v1111_v49 = vadd.f32 1.0, %v11512_v47  ;;  %v1114_v51 = vmul.f32 0.5, %v1110_v46  ;;  %1620 = vmatpush2.bf16.msra.mxu1 %v10179_v41  ;;  %v1157_v46 = vrot.slane %v1152_v45, %v11617_v25  ;;  %v1161_v47 = vrot.slane %v1152_v45, %v11619_v26  ;;  %v10226_v45 = vld [vmem:[#allocation2 + $0x7a4] ss:$8 sps:$4 sm:$0xff]  }
 0x3d7   :  { %1621 = vmatprep.subr.bf16.mxu1 %v10184_v42  ;;  %v10218_v42 = vld [vmem:[#allocation2 + $0x7c0] ss:$8 sps:$4 sm:$0xff]  }
 0x3d8   :  { %v1115_v53 = vmul.f32 0.5, %v1111_v49  ;;  %v1116_v58 = vpack.c.bf16 %v1114_v51, %v1112_v54 }
 0x3da   :  { %v1117_v55 = vpack.c.bf16 %v1115_v53, %v1113_v52  ;;  %1622 = vmatpush2.bf16.msra.mxu1 %v10182_v43  ;;  %v10223_v43 = vld [vmem:[#allocation2 + $0x7b4] ss:$8 sps:$4 sm:$0xff]  }
 0x3db   :  { %2097 = vmatprep.subr.bf16.mxu1 %v10187_v44  ;;  %v10221_v44 = vld [vmem:[#allocation2 + $0x7b0] ss:$8 sps:$4 sm:$0xff]  }
 0x3dc   :  { %1356 = vmatprep.mubr.bf16.mxu0 %v1117_v55 }
 0x3dd   :  { %1357 = vmatmul.mubr.bf16.vlgmr.msra.gmra.mxu0 %v1116_v58 }
 0x3de   :  { %1849 = vmatpush1.bf16.msra.mxu0 %v10089_v56  ;;  %1880 = vmatprep.mubr.bf16.mxu0 %v1685_v57 }
 0x3df   :  { %1850 = vmatprep.subr.bf16.mxu0 %v10094_v59 }
 0x3e2   :  { %1851 = vmatpush1.bf16.msra.mxu0 %v10092_v60 }
 0x3e3   :  { %1852 = vmatprep.subr.bf16.mxu0 %v10097_v61 }
 0x3e6   :  { %1853 = vmatpush1.bf16.msra.mxu0 %v10095_v62 }
 0x3e7   :  { %1854 = vmatprep.subr.bf16.mxu0 %v10100_v63 }
 0x3ea   :  { %1855 = vmatpush1.bf16.msra.mxu0 %v10098_v0 }
 0x3eb   :  { %1856 = vmatprep.subr.bf16.mxu0 %v10103_v1 }
 0x3ee   :  { %1857 = vmatpush1.bf16.msra.mxu0 %v10101_v2 }
 0x3ef   :  { %1858 = vmatprep.subr.bf16.mxu0 %v10106_v3 }
 0x3f2   :  { %1859 = vmatpush1.bf16.msra.mxu0 %v10104_v4 }
 0x3f3   :  { %1860 = vmatprep.subr.bf16.mxu0 %v10109_v5 }
 0x3f6   :  { %1861 = vmatpush1.bf16.msra.mxu0 %v10107_v6 }
 0x3f7   :  { %1862 = vmatprep.subr.bf16.mxu0 %v10112_v7 }
 0x3fa   :  { %1863 = vmatpush1.bf16.msra.mxu0 %v10110_v8 }
 0x3fb   :  { %1864 = vmatprep.subr.bf16.mxu0 %v10115_v9  ;;  %v10185_v9 = vld [vmem:[#allocation2 + $0x770] ss:$8 sps:$4 sm:$0xff]  }
 0x3fe   :  { %1865 = vmatpush2.bf16.msra.mxu0 %v10113_v10 }
 0x3ff   :  { %1866 = vmatprep.subr.bf16.mxu0 %v10118_v11  ;;  %v10190_v11 = vld [vmem:[#allocation2 + $0x764] ss:$8 sps:$4 sm:$0xff]  }
 0x402   :  { %1867 = vmatpush2.bf16.msra.mxu0 %v10116_v12  ;;  %v10188_v12 = vld [vmem:[#allocation2 + $0x760] ss:$8 sps:$4 sm:$0xff]  }
 0x403   :  { %1868 = vmatprep.subr.bf16.mxu0 %v10121_v13  ;;  %v10193_v13 = vld [vmem:[#allocation2 + $0x754] ss:$8 sps:$4 sm:$0xff]  }
 0x406   :  { %1869 = vmatpush2.bf16.msra.mxu0 %v10119_v14  ;;  %v10191_v14 = vld [vmem:[#allocation2 + $0x750] ss:$8 sps:$4 sm:$0xff]  }
 0x407   :  { %1870 = vmatprep.subr.bf16.mxu0 %v10124_v15  ;;  %v10196_v15 = vld [vmem:[#allocation2 + $0x744] ss:$8 sps:$4 sm:$0xff]  }
 0x40a   :  { %1871 = vmatpush2.bf16.msra.mxu0 %v10122_v16  ;;  %v10194_v16 = vld [vmem:[#allocation2 + $0x740] ss:$8 sps:$4 sm:$0xff]  }
 0x40b   :  { %1872 = vmatprep.subr.bf16.mxu0 %v10127_v17  ;;  %v10199_v17 = vld [vmem:[#allocation2 + $0x734] ss:$8 sps:$4 sm:$0xff]  }
 0x40e   :  { %1873 = vmatpush2.bf16.msra.mxu0 %v10125_v18  ;;  %v10197_v18 = vld [vmem:[#allocation2 + $0x730] ss:$8 sps:$4 sm:$0xff]  }
 0x40f   :  { %1874 = vmatprep.subr.bf16.mxu0 %v10130_v19  ;;  %v10202_v19 = vld [vmem:[#allocation2 + $0x724] ss:$8 sps:$4 sm:$0xff]  }
 0x412   :  { %1875 = vmatpush2.bf16.msra.mxu0 %v10128_v20  ;;  %v10200_v20 = vld [vmem:[#allocation2 + $0x720] ss:$8 sps:$4 sm:$0xff]  }
 0x413   :  { %1876 = vmatprep.subr.bf16.mxu0 %v10133_v21  ;;  %v10205_v21 = vld [vmem:[#allocation2 + $0x714] ss:$8 sps:$4 sm:$0xff]  }
 0x416   :  { %1877 = vmatpush2.bf16.msra.mxu0 %v10131_v22  ;;  %v10203_v22 = vld [vmem:[#allocation2 + $0x710] ss:$8 sps:$4 sm:$0xff]  }
 0x417   :  { %1878 = vmatprep.subr.bf16.mxu0 %v10136_v24  ;;  %v10206_v24 = vld [vmem:[#allocation2 + $0x700] ss:$8 sps:$4 sm:$0xff]  }
 0x41a   :  { %1879 = vmatpush2.bf16.msra.mxu0 %v10134_v28  ;;  %v1670_v28 = vld [vmem:[#allocation4 + $0xc] sm:$0x3] }
 0x41b   :  { %v1679_v31 = vrot.slane %v1670_v28, %v11619_v26 }
 0x41d   :  { %1881 = vmatmul.mubr.bf16.vlgmr.msra.gmra.mxu0 %v1684_v29  ;;  %v10209_v29 = vld [vmem:[#allocation2 + $0x7f0] ss:$8 sps:$4 sm:$0xff]  }
 0x49d   :  { %v1358_v48 = vpop.f32.mrf.mxu0 }
 0x49e   :  { %v1359_v49 = vadd.f32 %v1358_v48, %v1157_v46  ;;  %v10227_v48 = vld [vmem:[#allocation2 + $0x790] ss:$8 sps:$4 sm:$0xff]  }
 0x49f   :  { %v1360_v50 = vpop.f32.mrf.mxu0 }
 0x4a0   :  { %v1361_v51 = vadd.f32 %v1360_v50, %v1161_v47  ;;  %v1367_v52 = vmul.f32 0.5, %v1359_v49  ;;  %v1675_v49 = vrot.slane %v1670_v28, %v11617_v25  ;;  %v10232_v50 = vld [vmem:[#allocation2 + $0x784] ss:$8 sps:$4 sm:$0xff]   ;;  %v10289_v28 = vld [vmem:[#allocation2 + $0x954] ss:$8 sps:$4 sm:$0xff]  }
 0x4a1   :  { %v1362_v53 = vpop.f32.mrf.mxu0 }
 0x4a2   :  { %v1368_v54 = vmul.f32 0.5, %v1361_v51  ;;  %v1363_v55 = vadd.f32 %v1362_v53, %v1157_v46  ;;  %v10224_v46 = vld [vmem:[#allocation2 + $0x7a0] ss:$8 sps:$4 sm:$0xff]  }
 0x4a3   :  { %v1364_v56 = vpop.f32.mrf.mxu0  ;;  %v10230_v51 = vld [vmem:[#allocation2 + $0x780] ss:$8 sps:$4 sm:$0xff]  }
 0x4a4   :  { %11513 = vtanh.f32 %v1368_v54  ;;  %v1369_v57 = vmul.f32 0.5, %v1363_v55  ;;  %v1365_v58 = vadd.f32 %v1364_v56, %v1161_v47  ;;  %v10229_v47 = vld [vmem:[#allocation2 + $0x794] ss:$8 sps:$4 sm:$0xff]   ;;  %v10233_v54 = vld [vmem:[#allocation2 + $0x870] ss:$8 sps:$4 sm:$0xff]  }
 0x4a5   :  { %11515 = vtanh.f32 %v1367_v52  ;;  %v10235_v55 = vld [vmem:[#allocation2 + $0x874] ss:$8 sps:$4 sm:$0xff]   ;;  %v10238_v56 = vld [vmem:[#allocation2 + $0x864] ss:$8 sps:$4 sm:$0xff]  }
 0x4a6   :  { %11517 = vtanh.f32 %v1369_v57  ;;  %v1370_v59 = vmul.f32 0.5, %v1365_v58  ;;  %2350 = vmatprep.subr.bf16.mxu0 %v10235_v55  ;;  %v10236_v57 = vld [vmem:[#allocation2 + $0x860] ss:$8 sps:$4 sm:$0xff]   ;;  %v10241_v58 = vld [vmem:[#allocation2 + $0x854] ss:$8 sps:$4 sm:$0xff]  }
 0x4a7   :  { %2351 = vmatpush1.bf16.msra.mxu0 %v10233_v54 }
 0x4a8   :  { %11519 = vtanh.f32 %v1370_v59  ;;  %2352 = vmatprep.subr.bf16.mxu0 %v10238_v56  ;;  %v10239_v59 = vld [vmem:[#allocation2 + $0x850] ss:$8 sps:$4 sm:$0xff]  }
 0x4ab   :  { %2353 = vmatpush1.bf16.msra.mxu0 %v10236_v57 }
 0x4ac   :  { %2354 = vmatprep.subr.bf16.mxu0 %v10241_v58 }
 0x4af   :  { %2355 = vmatpush1.bf16.msra.mxu0 %v10239_v59 }
 0x4b1   :  { %v11514_v60 = vpop.eup %11513 }
 0x4b2   :  { %v11516_v61 = vpop.eup %11515  ;;  %v1376_v63 = vadd.f32 1.0, %v11514_v60  ;;  %v10244_v60 = vld [vmem:[#allocation2 + $0x844] ss:$8 sps:$4 sm:$0xff]  }
 0x4b3   :  { %v11518_v62 = vpop.eup %11517  ;;  %v1375_v2 = vadd.f32 1.0, %v11516_v61  ;;  %v10242_v61 = vld [vmem:[#allocation2 + $0x840] ss:$8 sps:$4 sm:$0xff]   ;;  %2356 = vmatprep.subr.bf16.mxu0 %v10244_v60 }
 0x4b4   :  { %v1377_v0 = vadd.f32 1.0, %v11518_v62  ;;  %v1380_v5 = vmul.f32 0.5, %v1376_v63  ;;  %v10247_v62 = vld [vmem:[#allocation2 + $0x834] ss:$8 sps:$4 sm:$0xff]   ;;  %2357 = vmatpush1.bf16.msra.mxu0 %v10242_v61  ;;  %v10245_v63 = vld [vmem:[#allocation2 + $0x830] ss:$8 sps:$4 sm:$0xff]  }
 0x4b5   :  { %v11520_v1 = vpop.eup %11519  ;;  %v1379_v7 = vmul.f32 0.5, %v1375_v2  ;;  %2358 = vmatprep.subr.bf16.mxu0 %v10247_v62  ;;  %v10253_v2 = vld [vmem:[#allocation2 + $0x814] ss:$8 sps:$4 sm:$0xff]   ;;  %v1925_v61 = vld [vmem:[#allocation4 + $0xe] sm:$0x3] }
 0x4b6   :  { %v1378_v3 = vadd.f32 1.0, %v11520_v1  ;;  %v1381_v4 = vmul.f32 0.5, %v1377_v0  ;;  %v10250_v0 = vld [vmem:[#allocation2 + $0x824] ss:$8 sps:$4 sm:$0xff]   ;;  %v10248_v1 = vld [vmem:[#allocation2 + $0x820] ss:$8 sps:$4 sm:$0xff]   ;;  %v1930_v62 = vrot.slane %v1925_v61, %v11617_v25 }
 0x4b8   :  { %v1382_v6 = vmul.f32 0.5, %v1378_v3  ;;  %v1383_v10 = vpack.c.bf16 %v1381_v4, %v1379_v7  ;;  %2359 = vmatpush1.bf16.msra.mxu0 %v10245_v63  ;;  %v10251_v3 = vld [vmem:[#allocation2 + $0x810] ss:$8 sps:$4 sm:$0xff]   ;;  %v10256_v4 = vld [vmem:[#allocation2 + $0x804] ss:$8 sps:$4 sm:$0xff]   ;;  %v1934_v63 = vrot.slane %v1925_v61, %v11619_v26 }
 0x4b9   :  { %2360 = vmatprep.subr.bf16.mxu0 %v10250_v0  ;;  %v10257_v7 = vld [vmem:[#allocation2 + $0x8f0] ss:$8 sps:$4 sm:$0xff]   ;;  %v10364_v61 = vld [vmem:[#allocation2 + $0xac4] ss:$8 sps:$4 sm:$0xff]  }
 0x4ba   :  { %v1384_v8 = vpack.c.bf16 %v1382_v6, %v1380_v5  ;;  %v10254_v5 = vld [vmem:[#allocation2 + $0x800] ss:$8 sps:$4 sm:$0xff]   ;;  %v10259_v6 = vld [vmem:[#allocation2 + $0x8f4] ss:$8 sps:$4 sm:$0xff]  }
 0x4bc   :  { %1623 = vmatprep.mubr.bf16.mxu1 %v1384_v8  ;;  %2361 = vmatpush1.bf16.msra.mxu0 %v10248_v1  ;;  %v10262_v8 = vld [vmem:[#allocation2 + $0x8e4] ss:$8 sps:$4 sm:$0xff]  }
 0x4bd   :  { %1624 = vmatmul.mubr.bf16.vlgmr.msra.gmra.mxu1 %v1383_v10  ;;  %2362 = vmatprep.subr.bf16.mxu0 %v10253_v2  ;;  %v10265_v10 = vld [vmem:[#allocation2 + $0x8d4] ss:$8 sps:$4 sm:$0xff]  }
 0x4be   :  { %2098 = vmatpush1.bf16.msra.mxu1 %v10185_v9  ;;  %v10260_v9 = vld [vmem:[#allocation2 + $0x8e0] ss:$8 sps:$4 sm:$0xff]  }
 0x4bf   :  { %2099 = vmatprep.subr.bf16.mxu1 %v10190_v11  ;;  %v10263_v11 = vld [vmem:[#allocation2 + $0x8d0] ss:$8 sps:$4 sm:$0xff]  }
 0x4c0   :  { %2363 = vmatpush1.bf16.msra.mxu0 %v10251_v3 }
 0x4c1   :  { %2364 = vmatprep.subr.bf16.mxu0 %v10256_v4 }
 0x4c2   :  { %2100 = vmatpush1.bf16.msra.mxu1 %v10188_v12  ;;  %v10268_v12 = vld [vmem:[#allocation2 + $0x8c4] ss:$8 sps:$4 sm:$0xff]  }
 0x4c3   :  { %2101 = vmatprep.subr.bf16.mxu1 %v10193_v13  ;;  %v10266_v13 = vld [vmem:[#allocation2 + $0x8c0] ss:$8 sps:$4 sm:$0xff]  }
 0x4c4   :  { %2365 = vmatpush1.bf16.msra.mxu0 %v10254_v5 }
 0x4c5   :  { %2366 = vmatprep.subr.bf16.mxu0 %v10259_v6 }
 0x4c6   :  { %2102 = vmatpush1.bf16.msra.mxu1 %v10191_v14  ;;  %v10271_v14 = vld [vmem:[#allocation2 + $0x8b4] ss:$8 sps:$4 sm:$0xff]  }
 0x4c7   :  { %2103 = vmatprep.subr.bf16.mxu1 %v10196_v15  ;;  %v10269_v15 = vld [vmem:[#allocation2 + $0x8b0] ss:$8 sps:$4 sm:$0xff]  }
 0x4c8   :  { %2367 = vmatpush2.bf16.msra.mxu0 %v10257_v7 }
 0x4c9   :  { %2368 = vmatprep.subr.bf16.mxu0 %v10262_v8 }
 0x4ca   :  { %2104 = vmatpush1.bf16.msra.mxu1 %v10194_v16  ;;  %v10274_v16 = vld [vmem:[#allocation2 + $0x8a4] ss:$8 sps:$4 sm:$0xff]  }
 0x4cb   :  { %2105 = vmatprep.subr.bf16.mxu1 %v10199_v17  ;;  %v10272_v17 = vld [vmem:[#allocation2 + $0x8a0] ss:$8 sps:$4 sm:$0xff]  }
 0x4cc   :  { %2369 = vmatpush2.bf16.msra.mxu0 %v10260_v9 }
 0x4cd   :  { %2370 = vmatprep.subr.bf16.mxu0 %v10265_v10 }
 0x4ce   :  { %2106 = vmatpush1.bf16.msra.mxu1 %v10197_v18  ;;  %v10277_v18 = vld [vmem:[#allocation2 + $0x894] ss:$8 sps:$4 sm:$0xff]  }
 0x4cf   :  { %2107 = vmatprep.subr.bf16.mxu1 %v10202_v19  ;;  %v10275_v19 = vld [vmem:[#allocation2 + $0x890] ss:$8 sps:$4 sm:$0xff]  }
 0x4d0   :  { %2371 = vmatpush2.bf16.msra.mxu0 %v10263_v11 }
 0x4d1   :  { %2372 = vmatprep.subr.bf16.mxu0 %v10268_v12  ;;  %v10322_v12 = vld [vmem:[#allocation2 + $0x9a4] ss:$8 sps:$4 sm:$0xff]  }
 0x4d2   :  { %2108 = vmatpush1.bf16.msra.mxu1 %v10200_v20  ;;  %v10280_v20 = vld [vmem:[#allocation2 + $0x884] ss:$8 sps:$4 sm:$0xff]  }
 0x4d3   :  { %2109 = vmatprep.subr.bf16.mxu1 %v10205_v21  ;;  %v10278_v21 = vld [vmem:[#allocation2 + $0x880] ss:$8 sps:$4 sm:$0xff]  }
 0x4d4   :  { %2373 = vmatpush2.bf16.msra.mxu0 %v10266_v13  ;;  %v10320_v13 = vld [vmem:[#allocation2 + $0x9a0] ss:$8 sps:$4 sm:$0xff]  }
 0x4d5   :  { %2374 = vmatprep.subr.bf16.mxu0 %v10271_v14  ;;  %v10325_v14 = vld [vmem:[#allocation2 + $0x994] ss:$8 sps:$4 sm:$0xff]  }
 0x4d6   :  { %2110 = vmatpush1.bf16.msra.mxu1 %v10203_v22  ;;  %v10281_v22 = vld [vmem:[#allocation2 + $0x970] ss:$8 sps:$4 sm:$0xff]  }
 0x4d7   :  { %2111 = vmatprep.subr.bf16.mxu1 %v10208_v23  ;;  %v10283_v23 = vld [vmem:[#allocation2 + $0x974] ss:$8 sps:$4 sm:$0xff]  }
 0x4d8   :  { %2375 = vmatpush2.bf16.msra.mxu0 %v10269_v15  ;;  %v10323_v15 = vld [vmem:[#allocation2 + $0x990] ss:$8 sps:$4 sm:$0xff]  }
 0x4d9   :  { %2376 = vmatprep.subr.bf16.mxu0 %v10274_v16  ;;  %v10328_v16 = vld [vmem:[#allocation2 + $0x984] ss:$8 sps:$4 sm:$0xff]  }
 0x4da   :  { %2112 = vmatpush1.bf16.msra.mxu1 %v10206_v24  ;;  %v10286_v24 = vld [vmem:[#allocation2 + $0x964] ss:$8 sps:$4 sm:$0xff]  }
 0x4db   :  { %2113 = vmatprep.subr.bf16.mxu1 %v10211_v27  ;;  %v10284_v27 = vld [vmem:[#allocation2 + $0x960] ss:$8 sps:$4 sm:$0xff]  }
 0x4dc   :  { %2377 = vmatpush2.bf16.msra.mxu0 %v10272_v17  ;;  %v10326_v17 = vld [vmem:[#allocation2 + $0x980] ss:$8 sps:$4 sm:$0xff]  }
 0x4dd   :  { %v1882_v32 = vpop.f32.mrf.mxu0  ;;  %2378 = vmatprep.subr.bf16.mxu0 %v10277_v18  ;;  %v10329_v18 = vld [vmem:[#allocation2 + $0xa70] ss:$8 sps:$4 sm:$0xff]  }
 0x4de   :  { %2114 = vmatpush2.bf16.msra.mxu1 %v10209_v29  ;;  %v1883_v52 = vadd.f32 %v1882_v32, %v1675_v49  ;;  %v10287_v29 = vld [vmem:[#allocation2 + $0x950] ss:$8 sps:$4 sm:$0xff]   ;;  %v10295_v32 = vld [vmem:[#allocation2 + $0x934] ss:$8 sps:$4 sm:$0xff]   ;;  %v1419_v49 = vld [vmem:[#allocation4 + $0xa] sm:$0x3] }
 0x4df   :  { %2115 = vmatprep.subr.bf16.mxu1 %v10214_v30  ;;  %v1884_v35 = vpop.f32.mrf.mxu0  ;;  %v10292_v30 = vld [vmem:[#allocation2 + $0x944] ss:$8 sps:$4 sm:$0xff]  }
 0x4e0   :  { %v1885_v36 = vadd.f32 %v1884_v35, %v1679_v31  ;;  %v1889_v53 = vpack.c.bf16 %v1883_v52, %v1883_v52  ;;  %2379 = vmatpush2.bf16.msra.mxu0 %v10275_v19  ;;  %v10290_v31 = vld [vmem:[#allocation2 + $0x940] ss:$8 sps:$4 sm:$0xff]   ;;  %v1428_v52 = vrot.slane %v1419_v49, %v11619_v26  ;;  %v10331_v19 = vld [vmem:[#allocation2 + $0xa74] ss:$8 sps:$4 sm:$0xff]  }
 0x4e1   :  { %v1886_v37 = vpop.f32.mrf.mxu0  ;;  %2380 = vmatprep.subr.bf16.mxu0 %v10280_v20  ;;  %v10296_v35 = vld [vmem:[#allocation2 + $0x920] ss:$8 sps:$4 sm:$0xff]   ;;  %v10334_v20 = vld [vmem:[#allocation2 + $0xa64] ss:$8 sps:$4 sm:$0xff]  }
 0x4e2   :  { %2116 = vmatpush2.bf16.msra.mxu1 %v10212_v33  ;;  %v1890_v39 = vpack.c.bf16 %v1885_v36, %v1885_v36  ;;  %v10293_v33 = vld [vmem:[#allocation2 + $0x930] ss:$8 sps:$4 sm:$0xff]   ;;  %v10301_v36 = vld [vmem:[#allocation2 + $0x914] ss:$8 sps:$4 sm:$0xff]  }
 0x4e3   :  { %2117 = vmatprep.subr.bf16.mxu1 %v10217_v34  ;;  %v1887_v41 = vpop.f32.mrf.mxu0  ;;  %v10298_v34 = vld [vmem:[#allocation2 + $0x924] ss:$8 sps:$4 sm:$0xff]   ;;  %v10299_v37 = vld [vmem:[#allocation2 + $0x910] ss:$8 sps:$4 sm:$0xff]  }
 0x4e4   :  { %2129 = vmatprep.mubr.bf16.mxu1 %v1890_v39  ;;  %2381 = vmatpush2.bf16.msra.mxu0 %v10278_v21  ;;  %v10302_v39 = vld [vmem:[#allocation2 + $0x900] ss:$8 sps:$4 sm:$0xff]   ;;  %v10305_v41 = vld [vmem:[#allocation2 + $0x9f0] ss:$8 sps:$4 sm:$0xff]  }
 0x4e5   :  { %2858 = vmatprep.subr.bf16.mxu0 %v10331_v19  ;;  %v10332_v21 = vld [vmem:[#allocation2 + $0xa60] ss:$8 sps:$4 sm:$0xff]   ;;  %v10397_v19 = vld [vmem:[#allocation2 + $0xb14] ss:$8 sps:$4 sm:$0xff]  }
 0x4e6   :  { %2118 = vmatpush2.bf16.msra.mxu1 %v10215_v38  ;;  %v10304_v38 = vld [vmem:[#allocation2 + $0x904] ss:$8 sps:$4 sm:$0xff]  }
 0x4e7   :  { %2119 = vmatprep.subr.bf16.mxu1 %v10220_v40  ;;  %v10307_v40 = vld [vmem:[#allocation2 + $0x9f4] ss:$8 sps:$4 sm:$0xff]  }
 0x4ea   :  { %2120 = vmatpush2.bf16.msra.mxu1 %v10218_v42  ;;  %v10310_v42 = vld [vmem:[#allocation2 + $0x9e4] ss:$8 sps:$4 sm:$0xff]  }
 0x4eb   :  { %2121 = vmatprep.subr.bf16.mxu1 %v10223_v43  ;;  %v10308_v43 = vld [vmem:[#allocation2 + $0x9e0] ss:$8 sps:$4 sm:$0xff]  }
 0x4ee   :  { %2122 = vmatpush2.bf16.msra.mxu1 %v10221_v44  ;;  %v10313_v44 = vld [vmem:[#allocation2 + $0x9d4] ss:$8 sps:$4 sm:$0xff]  }
 0x4ef   :  { %2123 = vmatprep.subr.bf16.mxu1 %v10226_v45  ;;  %v10311_v45 = vld [vmem:[#allocation2 + $0x9d0] ss:$8 sps:$4 sm:$0xff]  }
 0x4f2   :  { %2124 = vmatpush2.bf16.msra.mxu1 %v10224_v46  ;;  %v10316_v46 = vld [vmem:[#allocation2 + $0x9c4] ss:$8 sps:$4 sm:$0xff]  }
 0x4f3   :  { %2125 = vmatprep.subr.bf16.mxu1 %v10229_v47  ;;  %v10314_v47 = vld [vmem:[#allocation2 + $0x9c0] ss:$8 sps:$4 sm:$0xff]  }
 0x4f6   :  { %2126 = vmatpush2.bf16.msra.mxu1 %v10227_v48  ;;  %v10319_v48 = vld [vmem:[#allocation2 + $0x9b4] ss:$8 sps:$4 sm:$0xff]  }
 0x4f7   :  { %2127 = vmatprep.subr.bf16.mxu1 %v10232_v50  ;;  %v10317_v50 = vld [vmem:[#allocation2 + $0x9b0] ss:$8 sps:$4 sm:$0xff]  }
 0x4fa   :  { %2128 = vmatpush2.bf16.msra.mxu1 %v10230_v51  ;;  %v1424_v51 = vrot.slane %v1419_v49, %v11617_v25 }
 0x4fb   :  { %2603 = vmatprep.subr.bf16.mxu1 %v10283_v23  ;;  %v10335_v23 = vld [vmem:[#allocation2 + $0xa50] ss:$8 sps:$4 sm:$0xff]  }
 0x4fd   :  { %2130 = vmatmul.mubr.bf16.vlgmr.msra.gmra.mxu1 %v1889_v53 }
 0x4fe   :  { %2604 = vmatpush1.bf16.msra.mxu1 %v10281_v22  ;;  %v10337_v22 = vld [vmem:[#allocation2 + $0xa54] ss:$8 sps:$4 sm:$0xff]  }
 0x4ff   :  { %2605 = vmatprep.subr.bf16.mxu1 %v10286_v24  ;;  %v10340_v24 = vld [vmem:[#allocation2 + $0xa44] ss:$8 sps:$4 sm:$0xff]  }
 0x502   :  { %2606 = vmatpush1.bf16.msra.mxu1 %v10284_v27  ;;  %v10338_v27 = vld [vmem:[#allocation2 + $0xa40] ss:$8 sps:$4 sm:$0xff]  }
 0x503   :  { %2607 = vmatprep.subr.bf16.mxu1 %v10289_v28  ;;  %v10343_v28 = vld [vmem:[#allocation2 + $0xa34] ss:$8 sps:$4 sm:$0xff]  }
 0x506   :  { %2608 = vmatpush1.bf16.msra.mxu1 %v10287_v29  ;;  %v10341_v29 = vld [vmem:[#allocation2 + $0xa30] ss:$8 sps:$4 sm:$0xff]  }
 0x507   :  { %2609 = vmatprep.subr.bf16.mxu1 %v10292_v30  ;;  %v10346_v30 = vld [vmem:[#allocation2 + $0xa24] ss:$8 sps:$4 sm:$0xff]  }
 0x50a   :  { %2610 = vmatpush1.bf16.msra.mxu1 %v10290_v31  ;;  %v10344_v31 = vld [vmem:[#allocation2 + $0xa20] ss:$8 sps:$4 sm:$0xff]  }
 0x50b   :  { %2611 = vmatprep.subr.bf16.mxu1 %v10295_v32  ;;  %v10349_v32 = vld [vmem:[#allocation2 + $0xa14] ss:$8 sps:$4 sm:$0xff]  }
 0x50e   :  { %2612 = vmatpush1.bf16.msra.mxu1 %v10293_v33  ;;  %v10347_v33 = vld [vmem:[#allocation2 + $0xa10] ss:$8 sps:$4 sm:$0xff]  }
 0x50f   :  { %2613 = vmatprep.subr.bf16.mxu1 %v10298_v34  ;;  %v10352_v34 = vld [vmem:[#allocation2 + $0xa04] ss:$8 sps:$4 sm:$0xff]  }
 0x512   :  { %2614 = vmatpush1.bf16.msra.mxu1 %v10296_v35  ;;  %v10350_v35 = vld [vmem:[#allocation2 + $0xa00] ss:$8 sps:$4 sm:$0xff]  }
 0x513   :  { %2615 = vmatprep.subr.bf16.mxu1 %v10301_v36  ;;  %v10355_v36 = vld [vmem:[#allocation2 + $0xaf4] ss:$8 sps:$4 sm:$0xff]  }
 0x516   :  { %2616 = vmatpush1.bf16.msra.mxu1 %v10299_v37  ;;  %v10353_v37 = vld [vmem:[#allocation2 + $0xaf0] ss:$8 sps:$4 sm:$0xff]  }
 0x517   :  { %2617 = vmatprep.subr.bf16.mxu1 %v10304_v38  ;;  %v10358_v38 = vld [vmem:[#allocation2 + $0xae4] ss:$8 sps:$4 sm:$0xff]  }
 0x51a   :  { %2618 = vmatpush1.bf16.msra.mxu1 %v10302_v39  ;;  %v10356_v39 = vld [vmem:[#allocation2 + $0xae0] ss:$8 sps:$4 sm:$0xff]  }
 0x51b   :  { %2619 = vmatprep.subr.bf16.mxu1 %v10307_v40  ;;  %v2178_v40 = vld [vmem:[#allocation4 + $0x10] sm:$0x3] }
 0x51e   :  { %2620 = vmatpush2.bf16.msra.mxu1 %v10305_v41  ;;  %v2183_v41 = vrot.slane %v2178_v40, %v11617_v25 }
 0x51f   :  { %2621 = vmatprep.subr.bf16.mxu1 %v10310_v42  ;;  %v2187_v42 = vrot.slane %v2178_v40, %v11619_v26 }
 0x522   :  { %2622 = vmatpush2.bf16.msra.mxu1 %v10308_v43 }
 0x523   :  { %2623 = vmatprep.subr.bf16.mxu1 %v10313_v44 }
 0x526   :  { %2624 = vmatpush2.bf16.msra.mxu1 %v10311_v45 }
 0x527   :  { %2625 = vmatprep.subr.bf16.mxu1 %v10316_v46 }
 0x52a   :  { %2626 = vmatpush2.bf16.msra.mxu1 %v10314_v47 }
 0x52b   :  { %2627 = vmatprep.subr.bf16.mxu1 %v10319_v48 }
 0x52e   :  { %2628 = vmatpush2.bf16.msra.mxu1 %v10317_v50 }
 0x52f   :  { %2629 = vmatprep.subr.bf16.mxu1 %v10322_v12  ;;  %v10383_v12 = vld [vmem:[#allocation2 + $0xb50] ss:$8 sps:$4 sm:$0xff]  }
 0x532   :  { %2630 = vmatpush2.bf16.msra.mxu1 %v10320_v13  ;;  %v10388_v13 = vld [vmem:[#allocation2 + $0xb44] ss:$8 sps:$4 sm:$0xff]  }
 0x533   :  { %2631 = vmatprep.subr.bf16.mxu1 %v10325_v14  ;;  %v10386_v14 = vld [vmem:[#allocation2 + $0xb40] ss:$8 sps:$4 sm:$0xff]  }
 0x536   :  { %2632 = vmatpush2.bf16.msra.mxu1 %v10323_v15  ;;  %v10391_v15 = vld [vmem:[#allocation2 + $0xb34] ss:$8 sps:$4 sm:$0xff]  }
 0x537   :  { %2633 = vmatprep.subr.bf16.mxu1 %v10328_v16  ;;  %v10389_v16 = vld [vmem:[#allocation2 + $0xb30] ss:$8 sps:$4 sm:$0xff]  }
 0x53a   :  { %2634 = vmatpush2.bf16.msra.mxu1 %v10326_v17  ;;  %v10394_v17 = vld [vmem:[#allocation2 + $0xb24] ss:$8 sps:$4 sm:$0xff]  }
 0x57d   :  { %v1625_v53 = vpop.f32.mrf.mxu1 }
 0x57e   :  { %v11641_v54 = vadd.f32 %v1625_v53, %v1424_v51 }
 0x57f   :  { %v1627_v55 = vpop.f32.mrf.mxu1 }
 0x580   :  { %8703 = vst [vmem:[%s11834_s3] sm:$0xff] %v11641_v54  ;;  %v11647_v56 = vadd.f32 %v1627_v55, %v1428_v52 }
 0x581   :  { %v1629_v57 = vpop.f32.mrf.mxu1 }
 0x582   :  { %8704 = vst [vmem:[%s11834_s3 + $0x8] sm:$0xff] %v11647_v56  ;;  %v11653_v58 = vadd.f32 %v1629_v57, %v1424_v51  ;;  %v10361_v57 = vld [vmem:[#allocation2 + $0xad4] ss:$8 sps:$4 sm:$0xff]  }
 0x583   :  { %v1631_v59 = vpop.f32.mrf.mxu1 }
 0x584   :  { %8705 = vst [vmem:[%s11834_s3 + $0x10] sm:$0x3] %v11653_v58  ;;  %v11659_v60 = vadd.f32 %v1631_v59, %v1428_v52  ;;  %v10359_v59 = vld [vmem:[#allocation2 + $0xad0] ss:$8 sps:$4 sm:$0xff]  }
 0x586   :  { %8706 = vst [vmem:[%s11834_s3 + $0x18] sm:$0x3] %v11659_v60 }
 0x5bd   :  { %v2131_v0 = vpop.f32.mrf.mxu1 }
 0x5be   :  { %v2132_v1 = vadd.f32 %v2131_v0, %v1930_v62  ;;  %v10362_v62 = vld [vmem:[#allocation2 + $0xac0] ss:$8 sps:$4 sm:$0xff]   ;;  %v10365_v0 = vld [vmem:[#allocation2 + $0xab0] ss:$8 sps:$4 sm:$0xff]  }
 0x5bf   :  { %v2133_v2 = vpop.f32.mrf.mxu1 }
 0x5c0   :  { %v2138_v3 = vmul.f32 0.2, %v2132_v1  ;;  %v2134_v4 = vadd.f32 %v2133_v2, %v1934_v63  ;;  %v10367_v63 = vld [vmem:[#allocation2 + $0xab4] ss:$8 sps:$4 sm:$0xff]   ;;  %v10368_v2 = vld [vmem:[#allocation2 + $0xaa0] ss:$8 sps:$4 sm:$0xff]  }
 0x5c1   :  { %v2135_v5 = vpop.f32.mrf.mxu1 }
 0x5c2   :  { %v2139_v6 = vmul.f32 0.2, %v2134_v4  ;;  %v2140_v7 = vmax.f32 %v2132_v1, %v2138_v3  ;;  %v10370_v1 = vld [vmem:[#allocation2 + $0xaa4] ss:$8 sps:$4 sm:$0xff]   ;;  %v10373_v3 = vld [vmem:[#allocation2 + $0xa94] ss:$8 sps:$4 sm:$0xff]  }
 0x5c3   :  { %v2136_v8 = vpop.f32.mrf.mxu1  ;;  %v10376_v5 = vld [vmem:[#allocation2 + $0xa84] ss:$8 sps:$4 sm:$0xff]  }
 0x5c4   :  { %v2141_v9 = vmax.f32 %v2134_v4, %v2139_v6  ;;  %v2142_v11 = vpack.c.bf16 %v2140_v7, %v2140_v7  ;;  %v10371_v4 = vld [vmem:[#allocation2 + $0xa90] ss:$8 sps:$4 sm:$0xff]   ;;  %v10374_v6 = vld [vmem:[#allocation2 + $0xa80] ss:$8 sps:$4 sm:$0xff]   ;;  %v10379_v8 = vld [vmem:[#allocation2 + $0xb74] ss:$8 sps:$4 sm:$0xff]  }
 0x5c5   :  { %v10377_v7 = vld [vmem:[#allocation2 + $0xb70] ss:$8 sps:$4 sm:$0xff]   ;;  %3111 = vmatprep.subr.bf16.mxu1 %v10379_v8 }
 0x5c6   :  { %v2143_v10 = vpack.c.bf16 %v2141_v9, %v2141_v9  ;;  %v10382_v9 = vld [vmem:[#allocation2 + $0xb64] ss:$8 sps:$4 sm:$0xff]  }
 0x5c8   :  { %2382 = vmatprep.mubr.bf16.mxu0 %v2143_v10  ;;  %v10380_v10 = vld [vmem:[#allocation2 + $0xb60] ss:$8 sps:$4 sm:$0xff]  }
 0x5c9   :  { %2383 = vmatmul.mubr.bf16.vlgmr.msra.gmra.mxu0 %v2142_v11  ;;  %v10385_v11 = vld [vmem:[#allocation2 + $0xb54] ss:$8 sps:$4 sm:$0xff]  }
 0x5ca   :  { %2859 = vmatpush1.bf16.msra.mxu0 %v10329_v18  ;;  %v10392_v18 = vld [vmem:[#allocation2 + $0xb20] ss:$8 sps:$4 sm:$0xff]  }
 0x5cb   :  { %2860 = vmatprep.subr.bf16.mxu0 %v10334_v20  ;;  %v10395_v20 = vld [vmem:[#allocation2 + $0xb10] ss:$8 sps:$4 sm:$0xff]  }
 0x5ce   :  { %2861 = vmatpush1.bf16.msra.mxu0 %v10332_v21  ;;  %v10400_v21 = vld [vmem:[#allocation2 + $0xb04] ss:$8 sps:$4 sm:$0xff]  }
 0x5cf   :  { %2862 = vmatprep.subr.bf16.mxu0 %v10337_v22  ;;  %v10398_v22 = vld [vmem:[#allocation2 + $0xb00] ss:$8 sps:$4 sm:$0xff]  }
 0x5d2   :  { %2863 = vmatpush1.bf16.msra.mxu0 %v10335_v23  ;;  %v10403_v23 = vld [vmem:[#allocation2 + $0xbf4] ss:$8 sps:$4 sm:$0xff]  }
 0x5d3   :  { %2864 = vmatprep.subr.bf16.mxu0 %v10340_v24  ;;  %v10401_v24 = vld [vmem:[#allocation2 + $0xbf0] ss:$8 sps:$4 sm:$0xff]  }
 0x5d6   :  { %2865 = vmatpush1.bf16.msra.mxu0 %v10338_v27  ;;  %v10406_v27 = vld [vmem:[#allocation2 + $0xbe4] ss:$8 sps:$4 sm:$0xff]  }
 0x5d7   :  { %2866 = vmatprep.subr.bf16.mxu0 %v10343_v28  ;;  %v10404_v28 = vld [vmem:[#allocation2 + $0xbe0] ss:$8 sps:$4 sm:$0xff]  }
 0x5da   :  { %2867 = vmatpush1.bf16.msra.mxu0 %v10341_v29  ;;  %v10409_v29 = vld [vmem:[#allocation2 + $0xbd4] ss:$8 sps:$4 sm:$0xff]  }
 0x5db   :  { %2868 = vmatprep.subr.bf16.mxu0 %v10346_v30  ;;  %v10407_v30 = vld [vmem:[#allocation2 + $0xbd0] ss:$8 sps:$4 sm:$0xff]  }
 0x5de   :  { %2869 = vmatpush1.bf16.msra.mxu0 %v10344_v31  ;;  %v10412_v31 = vld [vmem:[#allocation2 + $0xbc4] ss:$8 sps:$4 sm:$0xff]  }
 0x5df   :  { %2870 = vmatprep.subr.bf16.mxu0 %v10349_v32  ;;  %v10410_v32 = vld [vmem:[#allocation2 + $0xbc0] ss:$8 sps:$4 sm:$0xff]  }
 0x5e2   :  { %2871 = vmatpush1.bf16.msra.mxu0 %v10347_v33  ;;  %v10415_v33 = vld [vmem:[#allocation2 + $0xbb4] ss:$8 sps:$4 sm:$0xff]  }
 0x5e3   :  { %2872 = vmatprep.subr.bf16.mxu0 %v10352_v34  ;;  %v10413_v34 = vld [vmem:[#allocation2 + $0xbb0] ss:$8 sps:$4 sm:$0xff]  }
 0x5e6   :  { %2873 = vmatpush1.bf16.msra.mxu0 %v10350_v35  ;;  %v10418_v35 = vld [vmem:[#allocation2 + $0xba4] ss:$8 sps:$4 sm:$0xff]  }
 0x5e7   :  { %2874 = vmatprep.subr.bf16.mxu0 %v10355_v36  ;;  %v10416_v36 = vld [vmem:[#allocation2 + $0xba0] ss:$8 sps:$4 sm:$0xff]  }
 0x5ea   :  { %2875 = vmatpush2.bf16.msra.mxu0 %v10353_v37  ;;  %v2431_v37 = vld [vmem:[#allocation4 + $0x12] sm:$0x3] }
 0x5eb   :  { %2876 = vmatprep.subr.bf16.mxu0 %v10358_v38  ;;  %v2436_v38 = vrot.slane %v2431_v37, %v11617_v25 }
 0x5ee   :  { %2877 = vmatpush2.bf16.msra.mxu0 %v10356_v39  ;;  %v2440_v39 = vrot.slane %v2431_v37, %v11619_v26  ;;  %v10544_v37 = vld [vmem:[#allocation2 + $0xc54] ss:$8 sps:$4 sm:$0xff]  }
 0x5ef   :  { %2878 = vmatprep.subr.bf16.mxu0 %v10361_v57 }
 0x5f2   :  { %2879 = vmatpush2.bf16.msra.mxu0 %v10359_v59  ;;  %v10421_v59 = vld [vmem:[#allocation2 + $0xb94] ss:$8 sps:$4 sm:$0xff]  }
 0x5f3   :  { %2880 = vmatprep.subr.bf16.mxu0 %v10364_v61  ;;  %v10419_v61 = vld [vmem:[#allocation2 + $0xb90] ss:$8 sps:$4 sm:$0xff]  }
 0x5f6   :  { %2881 = vmatpush2.bf16.msra.mxu0 %v10362_v62  ;;  %v10424_v62 = vld [vmem:[#allocation2 + $0xb84] ss:$8 sps:$4 sm:$0xff]  }
 0x5f7   :  { %2882 = vmatprep.subr.bf16.mxu0 %v10367_v63  ;;  %v10422_v63 = vld [vmem:[#allocation2 + $0xb80] ss:$8 sps:$4 sm:$0xff]  }
 0x5fa   :  { %2883 = vmatpush2.bf16.msra.mxu0 %v10365_v0  ;;  %v10427_v0 = vld [vmem:[#allocation2 + $0xd74] ss:$8 sps:$4 sm:$0xff]  }
 0x5fb   :  { %2884 = vmatprep.subr.bf16.mxu0 %v10370_v1  ;;  %v2686_v1 = vld [vmem:[#allocation4 + $0x14] sm:$0x3] }
 0x5fe   :  { %2885 = vmatpush2.bf16.msra.mxu0 %v10368_v2  ;;  %v2691_v2 = vrot.slane %v2686_v1, %v11617_v25 }
 0x5ff   :  { %2886 = vmatprep.subr.bf16.mxu0 %v10373_v3  ;;  %v2695_v3 = vrot.slane %v2686_v1, %v11619_v26  ;;  %v10458_v1 = vld [vmem:[#allocation2 + $0xdc0] ss:$8 sps:$4 sm:$0xff]  }
 0x602   :  { %2887 = vmatpush2.bf16.msra.mxu0 %v10371_v4 }
 0x603   :  { %2888 = vmatprep.subr.bf16.mxu0 %v10376_v5 }
 0x606   :  { %2889 = vmatpush2.bf16.msra.mxu0 %v10374_v6 }
 0x689   :  { %v2384_v43 = vpop.f32.mrf.mxu0 }
 0x68a   :  { %v2385_v44 = vadd.f32 %v2384_v43, %v2183_v41 }
 0x68b   :  { %v2386_v45 = vpop.f32.mrf.mxu0 }
 0x68c   :  { %v2391_v46 = vmul.f32 0.2, %v2385_v44  ;;  %v2387_v47 = vadd.f32 %v2386_v45, %v2187_v42 }
 0x68d   :  { %v2388_v48 = vpop.f32.mrf.mxu0 }
 0x68e   :  { %v2392_v49 = vmul.f32 0.2, %v2387_v47  ;;  %v2393_v50 = vmax.f32 %v2385_v44, %v2391_v46 }
 0x68f   :  { %v2389_v51 = vpop.f32.mrf.mxu0 }
 0x690   :  { %v2394_v52 = vmax.f32 %v2387_v47, %v2392_v49  ;;  %v2395_v55 = vpack.c.bf16 %v2393_v50, %v2393_v50 }
 0x692   :  { %v2396_v53 = vpack.c.bf16 %v2394_v52, %v2394_v52 }
 0x694   :  { %2635 = vmatprep.mubr.bf16.mxu1 %v2396_v53 }
 0x695   :  { %2636 = vmatmul.mubr.bf16.vlgmr.msra.gmra.mxu1 %v2395_v55 }
 0x696   :  { %3112 = vmatpush1.bf16.msra.mxu1 %v10377_v7  ;;  %v49_v7 = vld [vmem:[%s11831_s0 + $0x18] sm:$0x30] }
 0x697   :  { %3113 = vmatprep.subr.bf16.mxu1 %v10382_v9 }
 0x69a   :  { %3114 = vmatpush1.bf16.msra.mxu1 %v10380_v10 }
 0x69b   :  { %3115 = vmatprep.subr.bf16.mxu1 %v10385_v11 }
 0x69e   :  { %3116 = vmatpush1.bf16.msra.mxu1 %v10383_v12  ;;  %v3406_v12 = vpack.c.bf16 %v49_v7, %v49_v7  ;;  %v10586_v7 = vld [vmem:[#allocation2 + $0xce4] ss:$8 sps:$4 sm:$0xff]  }
 0x69f   :  { %3117 = vmatprep.subr.bf16.mxu1 %v10388_v13 }
 0x6a2   :  { %3118 = vmatpush1.bf16.msra.mxu1 %v10386_v14 }
 0x6a3   :  { %3119 = vmatprep.subr.bf16.mxu1 %v10391_v15 }
 0x6a6   :  { %3120 = vmatpush1.bf16.msra.mxu1 %v10389_v16 }
 0x6a7   :  { %3121 = vmatprep.subr.bf16.mxu1 %v10394_v17  ;;  %v10425_v17 = vld [vmem:[#allocation2 + $0xd70] ss:$8 sps:$4 sm:$0xff]  }
 0x6aa   :  { %3122 = vmatpush1.bf16.msra.mxu1 %v10392_v18  ;;  %v3456_v18 = vrot.slane %v3406_v12, 2  ;;  %v10469_v12 = vld [vmem:[#allocation2 + $0xd94] ss:$8 sps:$4 sm:$0xff]  }
 0x6ab   :  { %3123 = vmatprep.subr.bf16.mxu1 %v10397_v19 }
 0x6ae   :  { %3124 = vmatpush1.bf16.msra.mxu1 %v10395_v20  ;;  %v10430_v20 = vld [vmem:[#allocation2 + $0xd64] ss:$8 sps:$4 sm:$0xff]  }
 0x6af   :  { %3125 = vmatprep.subr.bf16.mxu1 %v10400_v21  ;;  %v10428_v21 = vld [vmem:[#allocation2 + $0xd60] ss:$8 sps:$4 sm:$0xff]  }
 0x6b2   :  { %3126 = vmatpush1.bf16.msra.mxu1 %v10398_v22  ;;  %v10433_v22 = vld [vmem:[#allocation2 + $0xd54] ss:$8 sps:$4 sm:$0xff]  }
 0x6b3   :  { %3127 = vmatprep.subr.bf16.mxu1 %v10403_v23  ;;  %v10431_v23 = vld [vmem:[#allocation2 + $0xd50] ss:$8 sps:$4 sm:$0xff]  }
 0x6b6   :  { %3128 = vmatpush2.bf16.msra.mxu1 %v10401_v24  ;;  %v10436_v24 = vld [vmem:[#allocation2 + $0xd44] ss:$8 sps:$4 sm:$0xff]  }
 0x6b7   :  { %3129 = vmatprep.subr.bf16.mxu1 %v10406_v27  ;;  %v10434_v27 = vld [vmem:[#allocation2 + $0xd40] ss:$8 sps:$4 sm:$0xff]  }
 0x6ba   :  { %3130 = vmatpush2.bf16.msra.mxu1 %v10404_v28  ;;  %v10530_v28 = vld [vmem:[#allocation2 + $0xc70] ss:$8 sps:$4 sm:$0xff]  }
 0x6bb   :  { %3131 = vmatprep.subr.bf16.mxu1 %v10409_v29  ;;  %v10532_v29 = vld [vmem:[#allocation2 + $0xc74] ss:$8 sps:$4 sm:$0xff]  }
 0x6bc   :  { %3364 = vmatprep.subr.bf16.mxu0 %v10532_v29  ;;  %v10610_v29 = vld [vmem:[#allocation2 + $0xca4] ss:$8 sps:$4 sm:$0xff]  }
 0x6be   :  { %3132 = vmatpush2.bf16.msra.mxu1 %v10407_v30  ;;  %v10439_v30 = vld [vmem:[#allocation2 + $0xd34] ss:$8 sps:$4 sm:$0xff]  }
 0x6bf   :  { %3133 = vmatprep.subr.bf16.mxu1 %v10412_v31  ;;  %v10437_v31 = vld [vmem:[#allocation2 + $0xd30] ss:$8 sps:$4 sm:$0xff]  }
 0x6c2   :  { %3134 = vmatpush2.bf16.msra.mxu1 %v10410_v32  ;;  %v10536_v32 = vld [vmem:[#allocation2 + $0xc60] ss:$8 sps:$4 sm:$0xff]  }
 0x6c3   :  { %3135 = vmatprep.subr.bf16.mxu1 %v10415_v33  ;;  %v10538_v33 = vld [vmem:[#allocation2 + $0xc64] ss:$8 sps:$4 sm:$0xff]  }
 0x6c6   :  { %3136 = vmatpush2.bf16.msra.mxu1 %v10413_v34  ;;  %v10442_v34 = vld [vmem:[#allocation2 + $0xd24] ss:$8 sps:$4 sm:$0xff]  }
 0x6c7   :  { %3137 = vmatprep.subr.bf16.mxu1 %v10418_v35  ;;  %v10440_v35 = vld [vmem:[#allocation2 + $0xd20] ss:$8 sps:$4 sm:$0xff]  }
 0x6ca   :  { %3138 = vmatpush2.bf16.msra.mxu1 %v10416_v36  ;;  %v10542_v36 = vld [vmem:[#allocation2 + $0xc50] ss:$8 sps:$4 sm:$0xff]  }
 0x6cb   :  { %3139 = vmatprep.subr.bf16.mxu1 %v10421_v59  ;;  %v10457_v59 = vld [vmem:[#allocation2 + $0xdd4] ss:$8 sps:$4 sm:$0xff]  }
 0x6ce   :  { %3140 = vmatpush2.bf16.msra.mxu1 %v10419_v61  ;;  %v10455_v61 = vld [vmem:[#allocation2 + $0xdd0] ss:$8 sps:$4 sm:$0xff]  }
 0x6cf   :  { %3141 = vmatprep.subr.bf16.mxu1 %v10424_v62  ;;  %v10572_v62 = vld [vmem:[#allocation2 + $0xc00] ss:$8 sps:$4 sm:$0xff]  }
 0x6d2   :  { %3142 = vmatpush2.bf16.msra.mxu1 %v10422_v63  ;;  %v10574_v63 = vld [vmem:[#allocation2 + $0xc04] ss:$8 sps:$4 sm:$0xff]  }
 0x6d3   :  { %3619 = vmatprep.subr.bf16.mxu1 %v10427_v0  ;;  %v10460_v0 = vld [vmem:[#allocation2 + $0xdc4] ss:$8 sps:$4 sm:$0xff]  }
 0x755   :  { %v2637_v40 = vpop.f32.mrf.mxu1 }
 0x756   :  { %v2638_v41 = vadd.f32 %v2637_v40, %v2436_v38  ;;  %v10445_v38 = vld [vmem:[#allocation2 + $0xd14] ss:$8 sps:$4 sm:$0xff]   ;;  %v10548_v40 = vld [vmem:[#allocation2 + $0xc40] ss:$8 sps:$4 sm:$0xff]  }
 0x757   :  { %v2639_v42 = vpop.f32.mrf.mxu1 }
 0x758   :  { %v2644_v43 = vmul.f32 0.2, %v2638_v41  ;;  %v2640_v44 = vadd.f32 %v2639_v42, %v2440_v39  ;;  %v10443_v39 = vld [vmem:[#allocation2 + $0xd10] ss:$8 sps:$4 sm:$0xff]   ;;  %v10448_v42 = vld [vmem:[#allocation2 + $0xd04] ss:$8 sps:$4 sm:$0xff]  }
 0x759   :  { %v2641_v45 = vpop.f32.mrf.mxu1 }
 0x75a   :  { %v2646_v46 = vmax.f32 %v2638_v41, %v2644_v43  ;;  %v2645_v47 = vmul.f32 0.2, %v2640_v44  ;;  %v10550_v41 = vld [vmem:[#allocation2 + $0xc44] ss:$8 sps:$4 sm:$0xff]   ;;  %v10446_v43 = vld [vmem:[#allocation2 + $0xd00] ss:$8 sps:$4 sm:$0xff]  }
 0x75b   :  { %v2642_v48 = vpop.f32.mrf.mxu1  ;;  %v10556_v45 = vld [vmem:[#allocation2 + $0xc34] ss:$8 sps:$4 sm:$0xff]  }
 0x75c   :  { %11521 = vtanh.f32 %v2646_v46  ;;  %v2647_v49 = vmax.f32 %v2640_v44, %v2645_v47  ;;  %v10554_v44 = vld [vmem:[#allocation2 + $0xc30] ss:$8 sps:$4 sm:$0xff]   ;;  %v10451_v46 = vld [vmem:[#allocation2 + $0xdf4] ss:$8 sps:$4 sm:$0xff]   ;;  %v10560_v48 = vld [vmem:[#allocation2 + $0xc20] ss:$8 sps:$4 sm:$0xff]  }
 0x75d   :  { %v10449_v47 = vld [vmem:[#allocation2 + $0xdf0] ss:$8 sps:$4 sm:$0xff]  }
 0x75e   :  { %11523 = vtanh.f32 %v2647_v49  ;;  %v10562_v49 = vld [vmem:[#allocation2 + $0xc24] ss:$8 sps:$4 sm:$0xff]  }
 0x769   :  { %v11671_v50 = vpop.eup %11521 }
 0x76a   :  { %v8709_v51 = vrot.slane %v11671_v50, 6  ;;  %v2650_v57 = vpack.c.bf16 %v11671_v50, %v11671_v50 }
 0x76b   :  { %v11674_v52 = vpop.eup %11523 }
 0x76c   :  { %8713 = vst [vmem:[%s11834_s3 + $0x10] sm:$0xc] %v8709_v51  ;;  %v8710_v53 = vrot.slane %v11674_v52, 6  ;;  %v2651_v55 = vpack.c.bf16 %v11674_v52, %v11674_v52  ;;  %v10454_v51 = vld [vmem:[#allocation2 + $0xde4] ss:$8 sps:$4 sm:$0xff]  }
 0x76e   :  { %8714 = vst [vmem:[%s11834_s3 + $0x18] sm:$0xc] %v8710_v53  ;;  %2890 = vmatprep.mubr.bf16.mxu0 %v2651_v55  ;;  %v10452_v53 = vld [vmem:[#allocation2 + $0xde0] ss:$8 sps:$4 sm:$0xff]   ;;  %v10566_v55 = vld [vmem:[#allocation2 + $0xc10] ss:$8 sps:$4 sm:$0xff]  }
 0x76f   :  { %2891 = vmatmul.mubr.bf16.vlgmr.msra.gmra.mxu0 %v2650_v57  ;;  %v10568_v57 = vld [vmem:[#allocation2 + $0xc14] ss:$8 sps:$4 sm:$0xff]  }
 0x770   :  { %3365 = vmatpush1.bf16.msra.mxu0 %v10530_v28  ;;  %v10608_v28 = vld [vmem:[#allocation2 + $0xca0] ss:$8 sps:$4 sm:$0xff]  }
 0x771   :  { %3366 = vmatprep.subr.bf16.mxu0 %v10538_v33  ;;  %v10613_v33 = vld [vmem:[#allocation2 + $0xc94] ss:$8 sps:$4 sm:$0xff]  }
 0x774   :  { %3367 = vmatpush1.bf16.msra.mxu0 %v10536_v32  ;;  %v10476_v32 = vld [vmem:[#allocation2 + $0xf60] ss:$8 sps:$4 sm:$0xff]  }
 0x775   :  { %3368 = vmatprep.subr.bf16.mxu0 %v10544_v37  ;;  %v10616_v37 = vld [vmem:[#allocation2 + $0xc84] ss:$8 sps:$4 sm:$0xff]  }
 0x778   :  { %3369 = vmatpush1.bf16.msra.mxu0 %v10542_v36  ;;  %v10484_v36 = vld [vmem:[#allocation2 + $0xf44] ss:$8 sps:$4 sm:$0xff]  }
 0x779   :  { %3370 = vmatprep.subr.bf16.mxu0 %v10550_v41  ;;  %v10619_v41 = vld [vmem:[#allocation2 + $0xe74] ss:$8 sps:$4 sm:$0xff]  }
 0x77c   :  { %3371 = vmatpush1.bf16.msra.mxu0 %v10548_v40  ;;  %v10487_v40 = vld [vmem:[#allocation2 + $0xf34] ss:$8 sps:$4 sm:$0xff]  }
 0x77d   :  { %3372 = vmatprep.subr.bf16.mxu0 %v10556_v45  ;;  %v10493_v45 = vld [vmem:[#allocation2 + $0xf14] ss:$8 sps:$4 sm:$0xff]  }
 0x780   :  { %3373 = vmatpush1.bf16.msra.mxu0 %v10554_v44  ;;  %v10488_v44 = vld [vmem:[#allocation2 + $0xf20] ss:$8 sps:$4 sm:$0xff]  }
 0x781   :  { %3374 = vmatprep.subr.bf16.mxu0 %v10562_v49  ;;  %v10499_v49 = vld [vmem:[#allocation2 + $0xff4] ss:$8 sps:$4 sm:$0xff]  }
 0x784   :  { %3375 = vmatpush1.bf16.msra.mxu0 %v10560_v48  ;;  %v10494_v48 = vld [vmem:[#allocation2 + $0xf00] ss:$8 sps:$4 sm:$0xff]  }
 0x785   :  { %3376 = vmatprep.subr.bf16.mxu0 %v10568_v57  ;;  %v10505_v57 = vld [vmem:[#allocation2 + $0xfd4] ss:$8 sps:$4 sm:$0xff]  }
 0x788   :  { %3377 = vmatpush1.bf16.msra.mxu0 %v10566_v55  ;;  %v10500_v55 = vld [vmem:[#allocation2 + $0xfe0] ss:$8 sps:$4 sm:$0xff]  }
 0x789   :  { %3378 = vmatprep.subr.bf16.mxu0 %v10574_v63  ;;  %v10511_v63 = vld [vmem:[#allocation2 + $0xfb4] ss:$8 sps:$4 sm:$0xff]  }
 0x78c   :  { %3379 = vmatpush1.bf16.msra.mxu0 %v10572_v62  ;;  %v10506_v62 = vld [vmem:[#allocation2 + $0xfc0] ss:$8 sps:$4 sm:$0xff]  }
 0x82f   :  { %v2892_v4 = vpop.f32.mrf.mxu0 }
 0x830   :  { %v2893_v5 = vadd.f32 %v2892_v4, %v2691_v2  ;;  %v10578_v2 = vld [vmem:[#allocation2 + $0xcf0] ss:$8 sps:$4 sm:$0xff]   ;;  %v10463_v4 = vld [vmem:[#allocation2 + $0xdb4] ss:$8 sps:$4 sm:$0xff]  }
 0x831   :  { %v2894_v6 = vpop.f32.mrf.mxu0 }
 0x832   :  { %v2899_v8 = vmul.f32 0.2, %v2893_v5  ;;  %v2895_v9 = vadd.f32 %v2894_v6, %v2695_v3  ;;  %v10580_v3 = vld [vmem:[#allocation2 + $0xcf4] ss:$8 sps:$4 sm:$0xff]   ;;  %v10584_v6 = vld [vmem:[#allocation2 + $0xce0] ss:$8 sps:$4 sm:$0xff]  }
 0x833   :  { %v2896_v10 = vpop.f32.mrf.mxu0  ;;  %3380 = vmatprep.subr.bf16.mxu0 %v10580_v3  ;;  %v10517_v3 = vld [vmem:[#allocation2 + $0xf94] ss:$8 sps:$4 sm:$0xff]  }
 0x834   :  { %v2900_v11 = vmul.f32 0.2, %v2895_v9  ;;  %v2901_v13 = vmax.f32 %v2893_v5, %v2899_v8  ;;  %3381 = vmatpush2.bf16.msra.mxu0 %v10578_v2  ;;  %v10461_v5 = vld [vmem:[#allocation2 + $0xdb0] ss:$8 sps:$4 sm:$0xff]   ;;  %v10466_v8 = vld [vmem:[#allocation2 + $0xda4] ss:$8 sps:$4 sm:$0xff]  }
 0x835   :  { %v2897_v14 = vpop.f32.mrf.mxu0  ;;  %3382 = vmatprep.subr.bf16.mxu0 %v10586_v7  ;;  %v10590_v10 = vld [vmem:[#allocation2 + $0xcd0] ss:$8 sps:$4 sm:$0xff]   ;;  %v10512_v2 = vld [vmem:[#allocation2 + $0xfa0] ss:$8 sps:$4 sm:$0xff]   ;;  %v11702_v7 = vpack.c.bf16 %v11641_v54, %v11641_v54  ;;  %v10535_v54 = vld [vmem:[#allocation2 + $0x1144] ss:$8 sps:$4 sm:$0xff]  }
 0x836   :  { %v2902_v15 = vmax.f32 %v2895_v9, %v2900_v11  ;;  %v2903_v19 = vpack.c.bf16 %v2901_v13, %v2901_v13  ;;  %v10464_v9 = vld [vmem:[#allocation2 + $0xda0] ss:$8 sps:$4 sm:$0xff]   ;;  %v10592_v11 = vld [vmem:[#allocation2 + $0xcd4] ss:$8 sps:$4 sm:$0xff]   ;;  %v10467_v13 = vld [vmem:[#allocation2 + $0xd90] ss:$8 sps:$4 sm:$0xff]  }
 0x837   :  { %v48_v14 = vld [vmem:[%s11831_s0 + $0x10] sm:$0x30] }
 0x838   :  { %v2904_v16 = vpack.c.bf16 %v2902_v15, %v2902_v15  ;;  %3383 = vmatpush2.bf16.msra.mxu0 %v10584_v6  ;;  %v10596_v15 = vld [vmem:[#allocation2 + $0xcc0] ss:$8 sps:$4 sm:$0xff]  }
 0x839   :  { %3384 = vmatprep.subr.bf16.mxu0 %v10592_v11  ;;  %v10518_v6 = vld [vmem:[#allocation2 + $0xf80] ss:$8 sps:$4 sm:$0xff]   ;;  %v10526_v11 = vld [vmem:[#allocation2 + $0x1164] ss:$8 sps:$4 sm:$0xff]  }
 0x83a   :  { %3143 = vmatprep.mubr.bf16.mxu1 %v2904_v16  ;;  %v10598_v16 = vld [vmem:[#allocation2 + $0xcc4] ss:$8 sps:$4 sm:$0xff]  }
 0x83b   :  { %3144 = vmatmul.mubr.bf16.vlgmr.msra.gmra.mxu1 %v2903_v19  ;;  %v10470_v19 = vld [vmem:[#allocation2 + $0xd80] ss:$8 sps:$4 sm:$0xff]  }
 0x83c   :  { %3620 = vmatpush1.bf16.msra.mxu1 %v10425_v17  ;;  %3651 = vmatprep.mubr.bf16.mxu1 %v3456_v18  ;;  %v10472_v17 = vld [vmem:[#allocation2 + $0xd84] ss:$8 sps:$4 sm:$0xff]   ;;  %v3405_v18 = vpack.c.bf16 %v48_v14, %v48_v14  ;;  %v10529_v14 = vld [vmem:[#allocation2 + $0x1154] ss:$8 sps:$4 sm:$0xff]  }
 0x83d   :  { %3621 = vmatprep.subr.bf16.mxu1 %v10430_v20  ;;  %3385 = vmatpush2.bf16.msra.mxu0 %v10590_v10  ;;  %v10602_v20 = vld [vmem:[#allocation2 + $0xcb0] ss:$8 sps:$4 sm:$0xff]   ;;  %v3959_v10 = vrot.slane %v11702_v7, 1 }
 0x83e   :  { %3386 = vmatprep.subr.bf16.mxu0 %v10598_v16  ;;  %v10533_v16 = vld [vmem:[#allocation2 + $0x1140] ss:$8 sps:$4 sm:$0xff]  }
 0x840   :  { %3622 = vmatpush1.bf16.msra.mxu1 %v10428_v21  ;;  %v10604_v21 = vld [vmem:[#allocation2 + $0xcb4] ss:$8 sps:$4 sm:$0xff]  }
 0x841   :  { %3623 = vmatprep.subr.bf16.mxu1 %v10433_v22  ;;  %3387 = vmatpush2.bf16.msra.mxu0 %v10596_v15  ;;  %v10475_v22 = vld [vmem:[#allocation2 + $0xf74] ss:$8 sps:$4 sm:$0xff]   ;;  %v10527_v15 = vld [vmem:[#allocation2 + $0x1150] ss:$8 sps:$4 sm:$0xff]  }
 0x842   :  { %3388 = vmatprep.subr.bf16.mxu0 %v10604_v21  ;;  %v10553_v21 = vld [vmem:[#allocation2 + $0x1114] ss:$8 sps:$4 sm:$0xff]  }
 0x844   :  { %3624 = vmatpush1.bf16.msra.mxu1 %v10431_v23  ;;  %v11697_v23 = vpack.c.bf16 %v11647_v56, %v11647_v56  ;;  %v10481_v56 = vld [vmem:[#allocation2 + $0xf54] ss:$8 sps:$4 sm:$0xff]  }
 0x845   :  { %3625 = vmatprep.subr.bf16.mxu1 %v10436_v24  ;;  %v3455_v24 = vrot.slane %v3405_v18, 2  ;;  %3389 = vmatpush2.bf16.msra.mxu0 %v10602_v20  ;;  %v10539_v18 = vld [vmem:[#allocation2 + $0x1130] ss:$8 sps:$4 sm:$0xff]   ;;  %v10545_v20 = vld [vmem:[#allocation2 + $0x1120] ss:$8 sps:$4 sm:$0xff]  }
 0x846   :  { %3390 = vmatprep.subr.bf16.mxu0 %v10610_v29  ;;  %v10563_v29 = vld [vmem:[#allocation2 + $0x11f0] ss:$8 sps:$4 sm:$0xff]  }
 0x848   :  { %3626 = vmatpush1.bf16.msra.mxu1 %v10434_v27  ;;  %v10473_v27 = vld [vmem:[#allocation2 + $0xf70] ss:$8 sps:$4 sm:$0xff]  }
 0x849   :  { %3627 = vmatprep.subr.bf16.mxu1 %v10439_v30  ;;  %v10478_v30 = vld [vmem:[#allocation2 + $0xf64] ss:$8 sps:$4 sm:$0xff]   ;;  %3391 = vmatpush2.bf16.msra.mxu0 %v10608_v28  ;;  %v10565_v28 = vld [vmem:[#allocation2 + $0x11f4] ss:$8 sps:$4 sm:$0xff]  }
 0x84a   :  { %3392 = vmatprep.subr.bf16.mxu0 %v10613_v33  ;;  %v10583_v33 = vld [vmem:[#allocation2 + $0x11c4] ss:$8 sps:$4 sm:$0xff]  }
 0x84c   :  { %3628 = vmatpush1.bf16.msra.mxu1 %v10437_v31  ;;  %v3960_v31 = vrot.slane %v11697_v23, 1 }
 0x84d   :  { %3629 = vmatprep.subr.bf16.mxu1 %v10442_v34  ;;  %v10611_v34 = vld [vmem:[#allocation2 + $0xc90] ss:$8 sps:$4 sm:$0xff]  }
 0x84e   :  { %3393 = vmatpush2.bf16.msra.mxu0 %v10611_v34  ;;  %v10581_v34 = vld [vmem:[#allocation2 + $0x11c0] ss:$8 sps:$4 sm:$0xff]  }
 0x84f   :  { %3394 = vmatprep.subr.bf16.mxu0 %v10616_v37  ;;  %v10595_v37 = vld [vmem:[#allocation2 + $0x11a4] ss:$8 sps:$4 sm:$0xff]  }
 0x850   :  { %3630 = vmatpush1.bf16.msra.mxu1 %v10440_v35  ;;  %v10479_v35 = vld [vmem:[#allocation2 + $0xf50] ss:$8 sps:$4 sm:$0xff]  }
 0x851   :  { %3631 = vmatprep.subr.bf16.mxu1 %v10445_v38  ;;  %v10614_v38 = vld [vmem:[#allocation2 + $0xc80] ss:$8 sps:$4 sm:$0xff]  }
 0x852   :  { %3395 = vmatpush2.bf16.msra.mxu0 %v10614_v38  ;;  %v10593_v38 = vld [vmem:[#allocation2 + $0x11a0] ss:$8 sps:$4 sm:$0xff]  }
 0x853   :  { %3868 = vmatprep.subr.bf16.mxu0 %v10619_v41  ;;  %v10607_v41 = vld [vmem:[#allocation2 + $0x1184] ss:$8 sps:$4 sm:$0xff]  }
 0x854   :  { %3632 = vmatpush1.bf16.msra.mxu1 %v10443_v39  ;;  %v10482_v39 = vld [vmem:[#allocation2 + $0xf40] ss:$8 sps:$4 sm:$0xff]  }
 0x855   :  { %3633 = vmatprep.subr.bf16.mxu1 %v10448_v42  ;;  %v10485_v42 = vld [vmem:[#allocation2 + $0xf30] ss:$8 sps:$4 sm:$0xff]  }
 0x858   :  { %3634 = vmatpush1.bf16.msra.mxu1 %v10446_v43  ;;  %v10490_v43 = vld [vmem:[#allocation2 + $0xf24] ss:$8 sps:$4 sm:$0xff]  }
 0x859   :  { %3635 = vmatprep.subr.bf16.mxu1 %v10451_v46  ;;  %v10491_v46 = vld [vmem:[#allocation2 + $0xf10] ss:$8 sps:$4 sm:$0xff]  }
 0x85c   :  { %3636 = vmatpush2.bf16.msra.mxu1 %v10449_v47  ;;  %v10496_v47 = vld [vmem:[#allocation2 + $0xf04] ss:$8 sps:$4 sm:$0xff]  }
 0x85d   :  { %3637 = vmatprep.subr.bf16.mxu1 %v10454_v51  ;;  %v10497_v51 = vld [vmem:[#allocation2 + $0xff0] ss:$8 sps:$4 sm:$0xff]  }
 0x860   :  { %3638 = vmatpush2.bf16.msra.mxu1 %v10452_v53  ;;  %v10502_v53 = vld [vmem:[#allocation2 + $0xfe4] ss:$8 sps:$4 sm:$0xff]  }
 0x861   :  { %3639 = vmatprep.subr.bf16.mxu1 %v10457_v59  ;;  %v10503_v59 = vld [vmem:[#allocation2 + $0xfd0] ss:$8 sps:$4 sm:$0xff]  }
 0x864   :  { %3640 = vmatpush2.bf16.msra.mxu1 %v10455_v61  ;;  %v10508_v61 = vld [vmem:[#allocation2 + $0xfc4] ss:$8 sps:$4 sm:$0xff]  }
 0x865   :  { %3641 = vmatprep.subr.bf16.mxu1 %v10460_v0  ;;  %v10509_v0 = vld [vmem:[#allocation2 + $0xfb0] ss:$8 sps:$4 sm:$0xff]  }
 0x868   :  { %3642 = vmatpush2.bf16.msra.mxu1 %v10458_v1  ;;  %v10514_v1 = vld [vmem:[#allocation2 + $0xfa4] ss:$8 sps:$4 sm:$0xff]  }
 0x869   :  { %3643 = vmatprep.subr.bf16.mxu1 %v10463_v4  ;;  %v10515_v4 = vld [vmem:[#allocation2 + $0xf90] ss:$8 sps:$4 sm:$0xff]  }
 0x86c   :  { %3644 = vmatpush2.bf16.msra.mxu1 %v10461_v5  ;;  %v10520_v5 = vld [vmem:[#allocation2 + $0xf84] ss:$8 sps:$4 sm:$0xff]  }
 0x86d   :  { %3645 = vmatprep.subr.bf16.mxu1 %v10466_v8  ;;  %v10523_v8 = vld [vmem:[#allocation2 + $0x1174] ss:$8 sps:$4 sm:$0xff]  }
 0x870   :  { %3646 = vmatpush2.bf16.msra.mxu1 %v10464_v9  ;;  %v10521_v9 = vld [vmem:[#allocation2 + $0x1170] ss:$8 sps:$4 sm:$0xff]  }
 0x871   :  { %3647 = vmatprep.subr.bf16.mxu1 %v10469_v12  ;;  %v4466_v12 = vrot.slane %v11697_v23, 3 }
 0x874   :  { %3648 = vmatpush2.bf16.msra.mxu1 %v10467_v13  ;;  %v10524_v13 = vld [vmem:[#allocation2 + $0x1160] ss:$8 sps:$4 sm:$0xff]  }
 0x875   :  { %3649 = vmatprep.subr.bf16.mxu1 %v10472_v17  ;;  %v10541_v17 = vld [vmem:[#allocation2 + $0x1134] ss:$8 sps:$4 sm:$0xff]  }
 0x878   :  { %3650 = vmatpush2.bf16.msra.mxu1 %v10470_v19  ;;  %v10547_v19 = vld [vmem:[#allocation2 + $0x1124] ss:$8 sps:$4 sm:$0xff]  }
 0x879   :  { %4123 = vmatprep.subr.bf16.mxu1 %v10475_v22  ;;  %v10551_v22 = vld [vmem:[#allocation2 + $0x1110] ss:$8 sps:$4 sm:$0xff]  }
 0x87b   :  { %3652 = vmatmul.mubr.bf16.vlgmr.msra.gmra.mxu1 %v3455_v24  ;;  %v10559_v24 = vld [vmem:[#allocation2 + $0x1104] ss:$8 sps:$4 sm:$0xff]  }
 0x87c   :  { %4124 = vmatpush1.bf16.msra.mxu1 %v10473_v27  ;;  %4155 = vmatprep.mubr.bf16.mxu1 %v3960_v31  ;;  %v10557_v27 = vld [vmem:[#allocation2 + $0x1100] ss:$8 sps:$4 sm:$0xff]  }
 0x87d   :  { %4125 = vmatprep.subr.bf16.mxu1 %v10478_v30  ;;  %v10571_v30 = vld [vmem:[#allocation2 + $0x11e4] ss:$8 sps:$4 sm:$0xff]   ;;  %v10569_v31 = vld [vmem:[#allocation2 + $0x11e0] ss:$8 sps:$4 sm:$0xff]  }
 0x880   :  { %4126 = vmatpush1.bf16.msra.mxu1 %v10476_v32  ;;  %v10577_v32 = vld [vmem:[#allocation2 + $0x11d4] ss:$8 sps:$4 sm:$0xff]  }
 0x881   :  { %4127 = vmatprep.subr.bf16.mxu1 %v10481_v56  ;;  %v10575_v56 = vld [vmem:[#allocation2 + $0x11d0] ss:$8 sps:$4 sm:$0xff]  }
 0x884   :  { %4128 = vmatpush1.bf16.msra.mxu1 %v10479_v35  ;;  %v10589_v35 = vld [vmem:[#allocation2 + $0x11b4] ss:$8 sps:$4 sm:$0xff]  }
 0x885   :  { %4129 = vmatprep.subr.bf16.mxu1 %v10484_v36  ;;  %v10587_v36 = vld [vmem:[#allocation2 + $0x11b0] ss:$8 sps:$4 sm:$0xff]  }
 0x888   :  { %4130 = vmatpush1.bf16.msra.mxu1 %v10482_v39  ;;  %v10601_v39 = vld [vmem:[#allocation2 + $0x1194] ss:$8 sps:$4 sm:$0xff]  }
 0x889   :  { %4131 = vmatprep.subr.bf16.mxu1 %v10487_v40  ;;  %v10599_v40 = vld [vmem:[#allocation2 + $0x1190] ss:$8 sps:$4 sm:$0xff]  }
 0x88c   :  { %4132 = vmatpush1.bf16.msra.mxu1 %v10485_v42  ;;  %v10605_v42 = vld [vmem:[#allocation2 + $0x1180] ss:$8 sps:$4 sm:$0xff]  }
 0x88d   :  { %4133 = vmatprep.subr.bf16.mxu1 %v10490_v43  ;;  %v2939_v43 = vld [vmem:[#allocation4 + $0x16] sm:$0x3] }
 0x890   :  { %4134 = vmatpush1.bf16.msra.mxu1 %v10488_v44  ;;  %v2944_v44 = vrot.slane %v2939_v43, %v11617_v25 }
 0x891   :  { %4135 = vmatprep.subr.bf16.mxu1 %v10493_v45  ;;  %v4465_v45 = vrot.slane %v11702_v7, 3 }
 0x894   :  { %4136 = vmatpush1.bf16.msra.mxu1 %v10491_v46  ;;  %v2948_v46 = vrot.slane %v2939_v43, %v11619_v26  ;;  %v10673_v43 = vld [vmem:[#allocation2 + $0x1054] ss:$8 sps:$4 sm:$0xff]  }
 0x895   :  { %4137 = vmatprep.subr.bf16.mxu1 %v10496_v47 }
 0x898   :  { %4138 = vmatpush1.bf16.msra.mxu1 %v10494_v48 }
 0x899   :  { %4139 = vmatprep.subr.bf16.mxu1 %v10499_v49 }
 0x89c   :  { %4140 = vmatpush2.bf16.msra.mxu1 %v10497_v51 }
 0x89d   :  { %4141 = vmatprep.subr.bf16.mxu1 %v10502_v53 }
 0x8a0   :  { %4142 = vmatpush2.bf16.msra.mxu1 %v10500_v55 }
 0x8a1   :  { %4143 = vmatprep.subr.bf16.mxu1 %v10505_v57 }
 0x8a4   :  { %4144 = vmatpush2.bf16.msra.mxu1 %v10503_v59 }
 0x8a5   :  { %4145 = vmatprep.subr.bf16.mxu1 %v10508_v61 }
 0x8a8   :  { %4146 = vmatpush2.bf16.msra.mxu1 %v10506_v62 }
 0x8a9   :  { %4147 = vmatprep.subr.bf16.mxu1 %v10511_v63 }
 0x8ac   :  { %4148 = vmatpush2.bf16.msra.mxu1 %v10509_v0  ;;  %v10617_v0 = vld [vmem:[#allocation2 + $0xe70] ss:$8 sps:$4 sm:$0xff]  }
 0x8ad   :  { %4149 = vmatprep.subr.bf16.mxu1 %v10514_v1 }
 0x8b0   :  { %4150 = vmatpush2.bf16.msra.mxu1 %v10512_v2  ;;  %v10622_v2 = vld [vmem:[#allocation2 + $0xe64] ss:$8 sps:$4 sm:$0xff]  }
 0x8b1   :  { %4151 = vmatprep.subr.bf16.mxu1 %v10517_v3  ;;  %v10620_v3 = vld [vmem:[#allocation2 + $0xe60] ss:$8 sps:$4 sm:$0xff]  }
 0x8b4   :  { %4152 = vmatpush2.bf16.msra.mxu1 %v10515_v4  ;;  %v10625_v4 = vld [vmem:[#allocation2 + $0xe54] ss:$8 sps:$4 sm:$0xff]  }
 0x8b5   :  { %4153 = vmatprep.subr.bf16.mxu1 %v10520_v5  ;;  %v10623_v5 = vld [vmem:[#allocation2 + $0xe50] ss:$8 sps:$4 sm:$0xff]  }
 0x8b8   :  { %4154 = vmatpush2.bf16.msra.mxu1 %v10518_v6  ;;  %v10628_v6 = vld [vmem:[#allocation2 + $0xe44] ss:$8 sps:$4 sm:$0xff]  }
 0x8b9   :  { %4629 = vmatprep.subr.bf16.mxu1 %v10523_v8  ;;  %v10626_v8 = vld [vmem:[#allocation2 + $0xe40] ss:$8 sps:$4 sm:$0xff]  }
 0x8bb   :  { %4156 = vmatmul.mubr.bf16.vlgmr.msra.gmra.mxu1 %v3959_v10  ;;  %v10629_v10 = vld [vmem:[#allocation2 + $0xe30] ss:$8 sps:$4 sm:$0xff]  }
 0x8bc   :  { %4630 = vmatpush1.bf16.msra.mxu1 %v10521_v9  ;;  %4661 = vmatprep.mubr.bf16.mxu1 %v4466_v12  ;;  %v10631_v9 = vld [vmem:[#allocation2 + $0xe34] ss:$8 sps:$4 sm:$0xff]   ;;  %v10632_v12 = vld [vmem:[#allocation2 + $0xe20] ss:$8 sps:$4 sm:$0xff]  }
 0x8bd   :  { %4631 = vmatprep.subr.bf16.mxu1 %v10526_v11  ;;  %v10634_v11 = vld [vmem:[#allocation2 + $0xe24] ss:$8 sps:$4 sm:$0xff]  }
 0x8c0   :  { %4632 = vmatpush1.bf16.msra.mxu1 %v10524_v13  ;;  %v10637_v13 = vld [vmem:[#allocation2 + $0xe14] ss:$8 sps:$4 sm:$0xff]  }
 0x8c1   :  { %4633 = vmatprep.subr.bf16.mxu1 %v10529_v14  ;;  %v10635_v14 = vld [vmem:[#allocation2 + $0xe10] ss:$8 sps:$4 sm:$0xff]  }
 0x8c4   :  { %4634 = vmatpush1.bf16.msra.mxu1 %v10527_v15  ;;  %v10640_v15 = vld [vmem:[#allocation2 + $0xe04] ss:$8 sps:$4 sm:$0xff]  }
 0x8c5   :  { %4635 = vmatprep.subr.bf16.mxu1 %v10535_v54  ;;  %v10638_v54 = vld [vmem:[#allocation2 + $0xe00] ss:$8 sps:$4 sm:$0xff]  }
 0x8c8   :  { %4636 = vmatpush1.bf16.msra.mxu1 %v10533_v16  ;;  %v10643_v16 = vld [vmem:[#allocation2 + $0xef4] ss:$8 sps:$4 sm:$0xff]  }
 0x8c9   :  { %4637 = vmatprep.subr.bf16.mxu1 %v10541_v17  ;;  %v10641_v17 = vld [vmem:[#allocation2 + $0xef0] ss:$8 sps:$4 sm:$0xff]  }
 0x8cc   :  { %4638 = vmatpush1.bf16.msra.mxu1 %v10539_v18  ;;  %v10646_v18 = vld [vmem:[#allocation2 + $0xee4] ss:$8 sps:$4 sm:$0xff]  }
 0x8cd   :  { %4639 = vmatprep.subr.bf16.mxu1 %v10547_v19  ;;  %v10644_v19 = vld [vmem:[#allocation2 + $0xee0] ss:$8 sps:$4 sm:$0xff]  }
 0x8d0   :  { %4640 = vmatpush1.bf16.msra.mxu1 %v10545_v20  ;;  %v10649_v20 = vld [vmem:[#allocation2 + $0xed4] ss:$8 sps:$4 sm:$0xff]  }
 0x8d1   :  { %4641 = vmatprep.subr.bf16.mxu1 %v10553_v21  ;;  %v10647_v21 = vld [vmem:[#allocation2 + $0xed0] ss:$8 sps:$4 sm:$0xff]  }
 0x8d4   :  { %4642 = vmatpush1.bf16.msra.mxu1 %v10551_v22  ;;  %v10652_v22 = vld [vmem:[#allocation2 + $0xec4] ss:$8 sps:$4 sm:$0xff]  }
 0x8d5   :  { %4643 = vmatprep.subr.bf16.mxu1 %v10559_v24  ;;  %v10650_v24 = vld [vmem:[#allocation2 + $0xec0] ss:$8 sps:$4 sm:$0xff]  }
 0x8d8   :  { %4644 = vmatpush1.bf16.msra.mxu1 %v10557_v27  ;;  %v10655_v27 = vld [vmem:[#allocation2 + $0xeb4] ss:$8 sps:$4 sm:$0xff]  }
 0x8d9   :  { %4645 = vmatprep.subr.bf16.mxu1 %v10565_v28  ;;  %v10653_v28 = vld [vmem:[#allocation2 + $0xeb0] ss:$8 sps:$4 sm:$0xff]  }
 0x8dc   :  { %4646 = vmatpush2.bf16.msra.mxu1 %v10563_v29  ;;  %v10658_v29 = vld [vmem:[#allocation2 + $0xea4] ss:$8 sps:$4 sm:$0xff]  }
 0x8dd   :  { %4647 = vmatprep.subr.bf16.mxu1 %v10571_v30  ;;  %v10656_v30 = vld [vmem:[#allocation2 + $0xea0] ss:$8 sps:$4 sm:$0xff]  }
 0x8e0   :  { %4648 = vmatpush2.bf16.msra.mxu1 %v10569_v31  ;;  %v10661_v31 = vld [vmem:[#allocation2 + $0xe94] ss:$8 sps:$4 sm:$0xff]  }
 0x8e1   :  { %4649 = vmatprep.subr.bf16.mxu1 %v10577_v32 }
 0x8e4   :  { %4650 = vmatpush2.bf16.msra.mxu1 %v10575_v56  ;;  %v10659_v56 = vld [vmem:[#allocation2 + $0xe90] ss:$8 sps:$4 sm:$0xff]  }
 0x8e5   :  { %4651 = vmatprep.subr.bf16.mxu1 %v10583_v33  ;;  %v10664_v33 = vld [vmem:[#allocation2 + $0xe84] ss:$8 sps:$4 sm:$0xff]  }
 0x8e8   :  { %4652 = vmatpush2.bf16.msra.mxu1 %v10581_v34 }
 0x8e9   :  { %4653 = vmatprep.subr.bf16.mxu1 %v10589_v35 }
 0x8ec   :  { %4654 = vmatpush2.bf16.msra.mxu1 %v10587_v36  ;;  %v10662_v36 = vld [vmem:[#allocation2 + $0xe80] ss:$8 sps:$4 sm:$0xff]  }
 0x8ed   :  { %4655 = vmatprep.subr.bf16.mxu1 %v10595_v37  ;;  %v10667_v37 = vld [vmem:[#allocation2 + $0x1074] ss:$8 sps:$4 sm:$0xff]  }
 0x8f0   :  { %4656 = vmatpush2.bf16.msra.mxu1 %v10593_v38 }
 0x8f1   :  { %4657 = vmatprep.subr.bf16.mxu1 %v10601_v39  ;;  %v10665_v39 = vld [vmem:[#allocation2 + $0x1070] ss:$8 sps:$4 sm:$0xff]  }
 0x8f4   :  { %4658 = vmatpush2.bf16.msra.mxu1 %v10599_v40  ;;  %v10670_v40 = vld [vmem:[#allocation2 + $0x1064] ss:$8 sps:$4 sm:$0xff]  }
 0x8f5   :  { %4659 = vmatprep.subr.bf16.mxu1 %v10607_v41  ;;  %v4213_v41 = vrot.slane %v11697_v23, 2 }
 0x8f8   :  { %4660 = vmatpush2.bf16.msra.mxu1 %v10605_v42  ;;  %v10668_v42 = vld [vmem:[#allocation2 + $0x1060] ss:$8 sps:$4 sm:$0xff]  }
 0x8fb   :  { %4662 = vmatmul.mubr.bf16.vlgmr.msra.gmra.mxu1 %v4465_v45  ;;  %v3145_v47 = vpop.f32.mrf.mxu1  ;;  %v10676_v45 = vld [vmem:[#allocation2 + $0x1044] ss:$8 sps:$4 sm:$0xff]  }
 0x8fc   :  { %v3146_v48 = vadd.f32 %v3145_v47, %v2944_v44  ;;  %v10671_v44 = vld [vmem:[#allocation2 + $0x1050] ss:$8 sps:$4 sm:$0xff]   ;;  %v10679_v47 = vld [vmem:[#allocation2 + $0x1034] ss:$8 sps:$4 sm:$0xff]  }
 0x8fd   :  { %v3147_v49 = vpop.f32.mrf.mxu1 }
 0x8fe   :  { %v3152_v51 = vmul.f32 0.2, %v3146_v48  ;;  %v3148_v53 = vadd.f32 %v3147_v49, %v2948_v46  ;;  %v10674_v46 = vld [vmem:[#allocation2 + $0x1040] ss:$8 sps:$4 sm:$0xff]   ;;  %v10682_v49 = vld [vmem:[#allocation2 + $0x1024] ss:$8 sps:$4 sm:$0xff]  }
 0x8ff   :  { %v3149_v55 = vpop.f32.mrf.mxu1 }
 0x900   :  { %v3153_v57 = vmul.f32 0.2, %v3148_v53  ;;  %v3154_v59 = vmax.f32 %v3146_v48, %v3152_v51  ;;  %v10677_v48 = vld [vmem:[#allocation2 + $0x1030] ss:$8 sps:$4 sm:$0xff]   ;;  %v10685_v51 = vld [vmem:[#allocation2 + $0x1014] ss:$8 sps:$4 sm:$0xff]  }
 0x901   :  { %v3150_v61 = vpop.f32.mrf.mxu1  ;;  %v10688_v55 = vld [vmem:[#allocation2 + $0x1004] ss:$8 sps:$4 sm:$0xff]  }
 0x902   :  { %v3155_v62 = vmax.f32 %v3148_v53, %v3153_v57  ;;  %v3156_v1 = vpack.c.bf16 %v3154_v59, %v3154_v59  ;;  %v10683_v53 = vld [vmem:[#allocation2 + $0x1010] ss:$8 sps:$4 sm:$0xff]   ;;  %v10686_v57 = vld [vmem:[#allocation2 + $0x1000] ss:$8 sps:$4 sm:$0xff]   ;;  %v10691_v59 = vld [vmem:[#allocation2 + $0x10f4] ss:$8 sps:$4 sm:$0xff]  }
 0x903   :  { %v10689_v61 = vld [vmem:[#allocation2 + $0x10f0] ss:$8 sps:$4 sm:$0xff]  }
 0x904   :  { %v3157_v63 = vpack.c.bf16 %v3155_v62, %v3155_v62  ;;  %v10694_v62 = vld [vmem:[#allocation2 + $0x10e4] ss:$8 sps:$4 sm:$0xff]  }
 0x906   :  { %3396 = vmatprep.mubr.bf16.mxu0 %v3157_v63  ;;  %v10692_v63 = vld [vmem:[#allocation2 + $0x10e0] ss:$8 sps:$4 sm:$0xff]  }
 0x907   :  { %3397 = vmatmul.mubr.bf16.vlgmr.msra.gmra.mxu0 %v3156_v1  ;;  %v10695_v1 = vld [vmem:[#allocation2 + $0x10d0] ss:$8 sps:$4 sm:$0xff]  }
 0x908   :  { %3869 = vmatpush1.bf16.msra.mxu0 %v10617_v0  ;;  %3900 = vmatprep.mubr.bf16.mxu0 %v11697_v23  ;;  %v10680_v23 = vld [vmem:[#allocation2 + $0x1020] ss:$8 sps:$4 sm:$0xff]   ;;  %v10697_v0 = vld [vmem:[#allocation2 + $0x10d4] ss:$8 sps:$4 sm:$0xff]  }
 0x909   :  { %3870 = vmatprep.subr.bf16.mxu0 %v10622_v2  ;;  %v10700_v2 = vld [vmem:[#allocation2 + $0x10c4] ss:$8 sps:$4 sm:$0xff]  }
 0x90c   :  { %3871 = vmatpush1.bf16.msra.mxu0 %v10620_v3  ;;  %v10698_v3 = vld [vmem:[#allocation2 + $0x10c0] ss:$8 sps:$4 sm:$0xff]  }
 0x90d   :  { %3872 = vmatprep.subr.bf16.mxu0 %v10625_v4  ;;  %v10703_v4 = vld [vmem:[#allocation2 + $0x10b4] ss:$8 sps:$4 sm:$0xff]  }
 0x910   :  { %3873 = vmatpush1.bf16.msra.mxu0 %v10623_v5  ;;  %v10701_v5 = vld [vmem:[#allocation2 + $0x10b0] ss:$8 sps:$4 sm:$0xff]  }
 0x911   :  { %3874 = vmatprep.subr.bf16.mxu0 %v10628_v6  ;;  %v10706_v6 = vld [vmem:[#allocation2 + $0x10a4] ss:$8 sps:$4 sm:$0xff]  }
 0x914   :  { %3875 = vmatpush1.bf16.msra.mxu0 %v10626_v8  ;;  %v10704_v8 = vld [vmem:[#allocation2 + $0x10a0] ss:$8 sps:$4 sm:$0xff]  }
 0x915   :  { %3876 = vmatprep.subr.bf16.mxu0 %v10631_v9  ;;  %v10709_v9 = vld [vmem:[#allocation2 + $0x1094] ss:$8 sps:$4 sm:$0xff]  }
 0x918   :  { %3877 = vmatpush1.bf16.msra.mxu0 %v10629_v10 }
 0x919   :  { %3878 = vmatprep.subr.bf16.mxu0 %v10634_v11  ;;  %v10707_v11 = vld [vmem:[#allocation2 + $0x1090] ss:$8 sps:$4 sm:$0xff]  }
 0x91c   :  { %3879 = vmatpush1.bf16.msra.mxu0 %v10632_v12 }
 0x91d   :  { %3880 = vmatprep.subr.bf16.mxu0 %v10637_v13  ;;  %v10712_v13 = vld [vmem:[#allocation2 + $0x1084] ss:$8 sps:$4 sm:$0xff]  }
 0x920   :  { %3881 = vmatpush1.bf16.msra.mxu0 %v10635_v14 }
 0x921   :  { %3882 = vmatprep.subr.bf16.mxu0 %v10640_v15  ;;  %v10710_v15 = vld [vmem:[#allocation2 + $0x1080] ss:$8 sps:$4 sm:$0xff]  }
 0x924   :  { %3883 = vmatpush1.bf16.msra.mxu0 %v10638_v54 }
 0x925   :  { %3884 = vmatprep.subr.bf16.mxu0 %v10643_v16  ;;  %v10715_v16 = vld [vmem:[#allocation2 + $0x1274] ss:$8 sps:$4 sm:$0xff]  }
 0x928   :  { %3885 = vmatpush2.bf16.msra.mxu0 %v10641_v17  ;;  %v10713_v17 = vld [vmem:[#allocation2 + $0x1270] ss:$8 sps:$4 sm:$0xff]  }
 0x929   :  { %3886 = vmatprep.subr.bf16.mxu0 %v10646_v18  ;;  %v4212_v18 = vrot.slane %v11702_v7, 2 }
 0x92c   :  { %3887 = vmatpush2.bf16.msra.mxu0 %v10644_v19  ;;  %v10718_v19 = vld [vmem:[#allocation2 + $0x1264] ss:$8 sps:$4 sm:$0xff]  }
 0x92d   :  { %3888 = vmatprep.subr.bf16.mxu0 %v10649_v20  ;;  %v4673_v20 = vpack.c.bf16 %v11659_v60, %v11659_v60  ;;  %v10728_v60 = vld [vmem:[#allocation2 + $0x1220] ss:$8 sps:$4 sm:$0xff]  }
 0x930   :  { %3889 = vmatpush2.bf16.msra.mxu0 %v10647_v21  ;;  %v10716_v21 = vld [vmem:[#allocation2 + $0x1260] ss:$8 sps:$4 sm:$0xff]  }
 0x931   :  { %3890 = vmatprep.subr.bf16.mxu0 %v10652_v22  ;;  %v10721_v22 = vld [vmem:[#allocation2 + $0x1254] ss:$8 sps:$4 sm:$0xff]  }
 0x934   :  { %3891 = vmatpush2.bf16.msra.mxu0 %v10650_v24  ;;  %v10719_v24 = vld [vmem:[#allocation2 + $0x1250] ss:$8 sps:$4 sm:$0xff]  }
 0x935   :  { %3892 = vmatprep.subr.bf16.mxu0 %v10655_v27  ;;  %v10724_v27 = vld [vmem:[#allocation2 + $0x1244] ss:$8 sps:$4 sm:$0xff]  }
 0x938   :  { %3893 = vmatpush2.bf16.msra.mxu0 %v10653_v28  ;;  %v10722_v28 = vld [vmem:[#allocation2 + $0x1240] ss:$8 sps:$4 sm:$0xff]  }
 0x939   :  { %3894 = vmatprep.subr.bf16.mxu0 %v10658_v29  ;;  %v10727_v29 = vld [vmem:[#allocation2 + $0x1234] ss:$8 sps:$4 sm:$0xff]  }
 0x93b   :  { %v11710_v32 = vpop.f32.mrf.mxu1 }
 0x93c   :  { %3895 = vmatpush2.bf16.msra.mxu0 %v10656_v30  ;;  %v10730_v30 = vld [vmem:[#allocation2 + $0x1224] ss:$8 sps:$4 sm:$0xff]  }
 0x93d   :  { %3896 = vmatprep.subr.bf16.mxu0 %v10661_v31  ;;  %v11712_v34 = vpop.f32.mrf.mxu1  ;;  %v10733_v31 = vld [vmem:[#allocation2 + $0x1214] ss:$8 sps:$4 sm:$0xff]  }
 0x93f   :  { %v3657_v35 = vpop.f32.mrf.mxu1 }
 0x940   :  { %3897 = vmatpush2.bf16.msra.mxu0 %v10659_v56  ;;  %v10731_v56 = vld [vmem:[#allocation2 + $0x1210] ss:$8 sps:$4 sm:$0xff]   ;;  %v10734_v35 = vld [vmem:[#allocation2 + $0x1200] ss:$8 sps:$4 sm:$0xff]  }
 0x941   :  { %3898 = vmatprep.subr.bf16.mxu0 %v10664_v33  ;;  %v3658_v38 = vpop.f32.mrf.mxu1  ;;  %v10736_v33 = vld [vmem:[#allocation2 + $0x1204] ss:$8 sps:$4 sm:$0xff]  }
 0x942   :  { %v10742_v38 = vld [vmem:[#allocation2 + $0x12e4] ss:$8 sps:$4 sm:$0xff]  }
 0x944   :  { %3899 = vmatpush2.bf16.msra.mxu0 %v10662_v36  ;;  %v10739_v36 = vld [vmem:[#allocation2 + $0x12f4] ss:$8 sps:$4 sm:$0xff]  }
 0x945   :  { %4376 = vmatprep.subr.bf16.mxu0 %v10667_v37  ;;  %v10737_v37 = vld [vmem:[#allocation2 + $0x12f0] ss:$8 sps:$4 sm:$0xff]  }
 0x947   :  { %3901 = vmatmul.mubr.bf16.vlgmr.msra.gmra.mxu0 %v11702_v7  ;;  %v10725_v7 = vld [vmem:[#allocation2 + $0x1230] ss:$8 sps:$4 sm:$0xff]  }
 0x948   :  { %4377 = vmatpush1.bf16.msra.mxu0 %v10665_v39  ;;  %4408 = vmatprep.mubr.bf16.mxu0 %v4213_v41  ;;  %v10740_v39 = vld [vmem:[#allocation2 + $0x12e0] ss:$8 sps:$4 sm:$0xff]   ;;  %v10743_v41 = vld [vmem:[#allocation2 + $0x12d0] ss:$8 sps:$4 sm:$0xff]  }
 0x949   :  { %4378 = vmatprep.subr.bf16.mxu0 %v10670_v40  ;;  %v10745_v40 = vld [vmem:[#allocation2 + $0x12d4] ss:$8 sps:$4 sm:$0xff]  }
 0x94c   :  { %4379 = vmatpush1.bf16.msra.mxu0 %v10668_v42  ;;  %v10748_v42 = vld [vmem:[#allocation2 + $0x12c4] ss:$8 sps:$4 sm:$0xff]  }
 0x94d   :  { %4380 = vmatprep.subr.bf16.mxu0 %v10673_v43  ;;  %v10746_v43 = vld [vmem:[#allocation2 + $0x12c0] ss:$8 sps:$4 sm:$0xff]  }
 0x950   :  { %4381 = vmatpush1.bf16.msra.mxu0 %v10671_v44  ;;  %v10751_v44 = vld [vmem:[#allocation2 + $0x12b4] ss:$8 sps:$4 sm:$0xff]  }
 0x951   :  { %4382 = vmatprep.subr.bf16.mxu0 %v10676_v45  ;;  %v10749_v45 = vld [vmem:[#allocation2 + $0x12b0] ss:$8 sps:$4 sm:$0xff]  }
 0x954   :  { %4383 = vmatpush1.bf16.msra.mxu0 %v10674_v46  ;;  %v10754_v46 = vld [vmem:[#allocation2 + $0x12a4] ss:$8 sps:$4 sm:$0xff]  }
 0x955   :  { %4384 = vmatprep.subr.bf16.mxu0 %v10679_v47  ;;  %v10752_v47 = vld [vmem:[#allocation2 + $0x12a0] ss:$8 sps:$4 sm:$0xff]  }
 0x958   :  { %4385 = vmatpush1.bf16.msra.mxu0 %v10677_v48  ;;  %v10757_v48 = vld [vmem:[#allocation2 + $0x1294] ss:$8 sps:$4 sm:$0xff]  }
 0x959   :  { %4386 = vmatprep.subr.bf16.mxu0 %v10682_v49 }
 0x95c   :  { %4387 = vmatpush1.bf16.msra.mxu0 %v10680_v23  ;;  %v10755_v23 = vld [vmem:[#allocation2 + $0x1290] ss:$8 sps:$4 sm:$0xff]  }
 0x95d   :  { %4388 = vmatprep.subr.bf16.mxu0 %v10685_v51 }
 0x960   :  { %4389 = vmatpush1.bf16.msra.mxu0 %v10683_v53  ;;  %v10760_v53 = vld [vmem:[#allocation2 + $0x1284] ss:$8 sps:$4 sm:$0xff]  }
 0x961   :  { %4390 = vmatprep.subr.bf16.mxu0 %v10688_v55 }
 0x964   :  { %4391 = vmatpush1.bf16.msra.mxu0 %v10686_v57  ;;  %v10758_v57 = vld [vmem:[#allocation2 + $0x1280] ss:$8 sps:$4 sm:$0xff]  }
 0x965   :  { %4392 = vmatprep.subr.bf16.mxu0 %v10691_v59 }
 0x968   :  { %4393 = vmatpush2.bf16.msra.mxu0 %v10689_v61  ;;  %v3192_v61 = vld [vmem:[#allocation4 + $0x18] sm:$0x3] }
 0x969   :  { %4394 = vmatprep.subr.bf16.mxu0 %v10694_v62  ;;  %v3197_v62 = vrot.slane %v3192_v61, %v11617_v25 }
 0x96c   :  { %4395 = vmatpush2.bf16.msra.mxu0 %v10692_v63  ;;  %v4672_v63 = vpack.c.bf16 %v11653_v58, %v11653_v58  ;;  %v10766_v58 = vld [vmem:[#allocation2 + $0x1364] ss:$8 sps:$4 sm:$0xff]  }
 0x96d   :  { %4396 = vmatprep.subr.bf16.mxu0 %v10697_v0  ;;  %v3201_v0 = vrot.slane %v3192_v61, %v11619_v26 }
 0x970   :  { %4397 = vmatpush2.bf16.msra.mxu0 %v10695_v1 }
 0x971   :  { %4398 = vmatprep.subr.bf16.mxu0 %v10700_v2 }
 0x974   :  { %4399 = vmatpush2.bf16.msra.mxu0 %v10698_v3 }
 0x975   :  { %4400 = vmatprep.subr.bf16.mxu0 %v10703_v4 }
 0x978   :  { %4401 = vmatpush2.bf16.msra.mxu0 %v10701_v5 }
 0x979   :  { %4402 = vmatprep.subr.bf16.mxu0 %v10706_v6 }
 0x97b   :  { %v11716_v10 = vpop.f32.mrf.mxu1 }
 0x97c   :  { %4403 = vmatpush2.bf16.msra.mxu0 %v10704_v8 }
 0x97d   :  { %v11718_v12 = vpop.f32.mrf.mxu1  ;;  %4404 = vmatprep.subr.bf16.mxu0 %v10709_v9 }
 0x97f   :  { %v4161_v14 = vpop.f32.mrf.mxu1 }
 0x980   :  { %4405 = vmatpush2.bf16.msra.mxu0 %v10707_v11  ;;  %v10761_v11 = vld [vmem:[#allocation2 + $0x1370] ss:$8 sps:$4 sm:$0xff]   ;;  %v10764_v14 = vld [vmem:[#allocation2 + $0x1360] ss:$8 sps:$4 sm:$0xff]  }
 0x981   :  { %v4162_v54 = vpop.f32.mrf.mxu1  ;;  %4406 = vmatprep.subr.bf16.mxu0 %v10712_v13  ;;  %v10763_v13 = vld [vmem:[#allocation2 + $0x1374] ss:$8 sps:$4 sm:$0xff]  }
 0x982   :  { %5131 = vmatprep.subr.bf16.mxu1 %v10763_v13  ;;  %v10767_v54 = vld [vmem:[#allocation2 + $0x1350] ss:$8 sps:$4 sm:$0xff]   ;;  %v10814_v13 = vld [vmem:[#allocation2 + $0x1464] ss:$8 sps:$4 sm:$0xff]  }
 0x983   :  { %5132 = vmatpush1.bf16.msra.mxu1 %v10761_v11  ;;  %v10809_v11 = vld [vmem:[#allocation2 + $0x1470] ss:$8 sps:$4 sm:$0xff]  }
 0x984   :  { %4407 = vmatpush2.bf16.msra.mxu0 %v10710_v15  ;;  %5133 = vmatprep.subr.bf16.mxu1 %v10766_v58  ;;  %v10769_v15 = vld [vmem:[#allocation2 + $0x1354] ss:$8 sps:$4 sm:$0xff]  }
 0x985   :  { %4880 = vmatprep.subr.bf16.mxu0 %v10715_v16  ;;  %v10772_v16 = vld [vmem:[#allocation2 + $0x1344] ss:$8 sps:$4 sm:$0xff]   ;;  %v10817_v58 = vld [vmem:[#allocation2 + $0x1454] ss:$8 sps:$4 sm:$0xff]  }
 0x987   :  { %4409 = vmatmul.mubr.bf16.vlgmr.msra.gmra.mxu0 %v4212_v18  ;;  %5134 = vmatpush1.bf16.msra.mxu1 %v10764_v14  ;;  %v10775_v18 = vld [vmem:[#allocation2 + $0x1334] ss:$8 sps:$4 sm:$0xff]   ;;  %v10815_v14 = vld [vmem:[#allocation2 + $0x1450] ss:$8 sps:$4 sm:$0xff]  }
 0x988   :  { %4881 = vmatpush1.bf16.msra.mxu0 %v10713_v17  ;;  %4912 = vmatprep.mubr.bf16.mxu0 %v4673_v20  ;;  %v10770_v17 = vld [vmem:[#allocation2 + $0x1340] ss:$8 sps:$4 sm:$0xff]   ;;  %v10778_v20 = vld [vmem:[#allocation2 + $0x1324] ss:$8 sps:$4 sm:$0xff]  }
 0x989   :  { %4882 = vmatprep.subr.bf16.mxu0 %v10718_v19  ;;  %5135 = vmatprep.subr.bf16.mxu1 %v10769_v15  ;;  %v10773_v19 = vld [vmem:[#allocation2 + $0x1330] ss:$8 sps:$4 sm:$0xff]   ;;  %v10818_v15 = vld [vmem:[#allocation2 + $0x1440] ss:$8 sps:$4 sm:$0xff]  }
 0x98b   :  { %5136 = vmatpush1.bf16.msra.mxu1 %v10767_v54  ;;  %v10823_v54 = vld [vmem:[#allocation2 + $0x1434] ss:$8 sps:$4 sm:$0xff]  }
 0x98c   :  { %4883 = vmatpush1.bf16.msra.mxu0 %v10716_v21  ;;  %5137 = vmatprep.subr.bf16.mxu1 %v10772_v16  ;;  %v10776_v21 = vld [vmem:[#allocation2 + $0x1320] ss:$8 sps:$4 sm:$0xff]   ;;  %v10821_v16 = vld [vmem:[#allocation2 + $0x1430] ss:$8 sps:$4 sm:$0xff]  }
 0x98d   :  { %4884 = vmatprep.subr.bf16.mxu0 %v10721_v22  ;;  %v10781_v22 = vld [vmem:[#allocation2 + $0x1314] ss:$8 sps:$4 sm:$0xff]  }
 0x98f   :  { %5138 = vmatpush1.bf16.msra.mxu1 %v10770_v17  ;;  %v10826_v17 = vld [vmem:[#allocation2 + $0x1424] ss:$8 sps:$4 sm:$0xff]  }
 0x990   :  { %4885 = vmatpush1.bf16.msra.mxu0 %v10719_v24  ;;  %5139 = vmatprep.subr.bf16.mxu1 %v10775_v18  ;;  %v10779_v24 = vld [vmem:[#allocation2 + $0x1310] ss:$8 sps:$4 sm:$0xff]   ;;  %v10824_v18 = vld [vmem:[#allocation2 + $0x1420] ss:$8 sps:$4 sm:$0xff]  }
 0x991   :  { %4886 = vmatprep.subr.bf16.mxu0 %v10724_v27  ;;  %v10784_v27 = vld [vmem:[#allocation2 + $0x1304] ss:$8 sps:$4 sm:$0xff]  }
 0x993   :  { %5140 = vmatpush1.bf16.msra.mxu1 %v10773_v19  ;;  %v10829_v19 = vld [vmem:[#allocation2 + $0x1414] ss:$8 sps:$4 sm:$0xff]  }
 0x994   :  { %4887 = vmatpush1.bf16.msra.mxu0 %v10722_v28  ;;  %5141 = vmatprep.subr.bf16.mxu1 %v10778_v20  ;;  %v10782_v28 = vld [vmem:[#allocation2 + $0x1300] ss:$8 sps:$4 sm:$0xff]   ;;  %v10827_v20 = vld [vmem:[#allocation2 + $0x1410] ss:$8 sps:$4 sm:$0xff]  }
 0x995   :  { %4888 = vmatprep.subr.bf16.mxu0 %v10727_v29  ;;  %v10787_v29 = vld [vmem:[#allocation2 + $0x13f4] ss:$8 sps:$4 sm:$0xff]  }
 0x997   :  { %5142 = vmatpush1.bf16.msra.mxu1 %v10776_v21  ;;  %v10832_v21 = vld [vmem:[#allocation2 + $0x1404] ss:$8 sps:$4 sm:$0xff]  }
 0x998   :  { %4889 = vmatpush1.bf16.msra.mxu0 %v10725_v7  ;;  %5143 = vmatprep.subr.bf16.mxu1 %v10781_v22  ;;  %v10785_v7 = vld [vmem:[#allocation2 + $0x13f0] ss:$8 sps:$4 sm:$0xff]   ;;  %v10830_v22 = vld [vmem:[#allocation2 + $0x1400] ss:$8 sps:$4 sm:$0xff]  }
 0x999   :  { %4890 = vmatprep.subr.bf16.mxu0 %v10730_v30  ;;  %v10790_v30 = vld [vmem:[#allocation2 + $0x13e4] ss:$8 sps:$4 sm:$0xff]  }
 0x99b   :  { %5144 = vmatpush1.bf16.msra.mxu1 %v10779_v24  ;;  %v10835_v24 = vld [vmem:[#allocation2 + $0x14f4] ss:$8 sps:$4 sm:$0xff]  }
 0x99c   :  { %4891 = vmatpush1.bf16.msra.mxu0 %v10728_v60  ;;  %5145 = vmatprep.subr.bf16.mxu1 %v10784_v27  ;;  %v10788_v60 = vld [vmem:[#allocation2 + $0x13e0] ss:$8 sps:$4 sm:$0xff]   ;;  %v10833_v27 = vld [vmem:[#allocation2 + $0x14f0] ss:$8 sps:$4 sm:$0xff]  }
 0x99d   :  { %4892 = vmatprep.subr.bf16.mxu0 %v10733_v31  ;;  %v10793_v31 = vld [vmem:[#allocation2 + $0x13d4] ss:$8 sps:$4 sm:$0xff]  }
 0x99f   :  { %5146 = vmatpush1.bf16.msra.mxu1 %v10782_v28  ;;  %v10838_v28 = vld [vmem:[#allocation2 + $0x14e4] ss:$8 sps:$4 sm:$0xff]  }
 0x9a0   :  { %4893 = vmatpush1.bf16.msra.mxu0 %v10731_v56  ;;  %5147 = vmatprep.subr.bf16.mxu1 %v10787_v29  ;;  %v10791_v56 = vld [vmem:[#allocation2 + $0x13d0] ss:$8 sps:$4 sm:$0xff]   ;;  %v10836_v29 = vld [vmem:[#allocation2 + $0x14e0] ss:$8 sps:$4 sm:$0xff]  }
 0x9a1   :  { %4894 = vmatprep.subr.bf16.mxu0 %v10736_v33  ;;  %v10796_v33 = vld [vmem:[#allocation2 + $0x13c4] ss:$8 sps:$4 sm:$0xff]  }
 0x9a3   :  { %5148 = vmatpush2.bf16.msra.mxu1 %v10785_v7  ;;  %v10841_v7 = vld [vmem:[#allocation2 + $0x14d4] ss:$8 sps:$4 sm:$0xff]  }
 0x9a4   :  { %4895 = vmatpush1.bf16.msra.mxu0 %v10734_v35  ;;  %5149 = vmatprep.subr.bf16.mxu1 %v10790_v30  ;;  %v10794_v35 = vld [vmem:[#allocation2 + $0x13c0] ss:$8 sps:$4 sm:$0xff]   ;;  %v10839_v30 = vld [vmem:[#allocation2 + $0x14d0] ss:$8 sps:$4 sm:$0xff]  }
 0x9a5   :  { %4896 = vmatprep.subr.bf16.mxu0 %v10739_v36  ;;  %v10799_v36 = vld [vmem:[#allocation2 + $0x13b4] ss:$8 sps:$4 sm:$0xff]  }
 0x9a7   :  { %5150 = vmatpush2.bf16.msra.mxu1 %v10788_v60  ;;  %v10844_v60 = vld [vmem:[#allocation2 + $0x14c4] ss:$8 sps:$4 sm:$0xff]  }
 0x9a8   :  { %4897 = vmatpush2.bf16.msra.mxu0 %v10737_v37  ;;  %5151 = vmatprep.subr.bf16.mxu1 %v10793_v31  ;;  %v10797_v37 = vld [vmem:[#allocation2 + $0x13b0] ss:$8 sps:$4 sm:$0xff]   ;;  %v10842_v31 = vld [vmem:[#allocation2 + $0x14c0] ss:$8 sps:$4 sm:$0xff]  }
 0x9a9   :  { %4898 = vmatprep.subr.bf16.mxu0 %v10742_v38  ;;  %v10802_v38 = vld [vmem:[#allocation2 + $0x13a4] ss:$8 sps:$4 sm:$0xff]  }
 0x9ab   :  { %5152 = vmatpush2.bf16.msra.mxu1 %v10791_v56  ;;  %v10847_v56 = vld [vmem:[#allocation2 + $0x14b4] ss:$8 sps:$4 sm:$0xff]  }
 0x9ac   :  { %4899 = vmatpush2.bf16.msra.mxu0 %v10740_v39  ;;  %5153 = vmatprep.subr.bf16.mxu1 %v10796_v33  ;;  %v3441_v39 = vld [vmem:[#allocation4 + $0x1a] sm:$0x3] }
 0x9ad   :  { %4900 = vmatprep.subr.bf16.mxu0 %v10745_v40  ;;  %v10800_v40 = vld [vmem:[#allocation2 + $0x13a0] ss:$8 sps:$4 sm:$0xff]   ;;  %v10845_v33 = vld [vmem:[#allocation2 + $0x14b0] ss:$8 sps:$4 sm:$0xff]  }
 0x9af   :  { %5154 = vmatpush2.bf16.msra.mxu1 %v10794_v35  ;;  %v4200_v35 = vld [vmem:[#allocation4 + $0x20] sm:$0x3] }
 0x9b0   :  { %4901 = vmatpush2.bf16.msra.mxu0 %v10743_v41  ;;  %5155 = vmatprep.subr.bf16.mxu1 %v10799_v36  ;;  %v3696_v41 = vld [vmem:[#allocation4 + $0x1c] sm:$0x3]  ;;  %v4453_v36 = vld [vmem:[#allocation4 + $0x22] sm:$0x3] }
 0x9b1   :  { %4902 = vmatprep.subr.bf16.mxu0 %v10748_v42  ;;  %v3446_v42 = vrot.slane %v3441_v39, %v11617_v25 }
 0x9b3   :  { %5156 = vmatpush2.bf16.msra.mxu1 %v10797_v37  ;;  %v4205_v37 = vrot.slane %v4200_v35, %v11617_v25 }
 0x9b4   :  { %4903 = vmatpush2.bf16.msra.mxu0 %v10746_v43  ;;  %5157 = vmatprep.subr.bf16.mxu1 %v10802_v38  ;;  %v3945_v43 = vld [vmem:[#allocation4 + $0x1e] sm:$0x3]  ;;  %v4458_v38 = vrot.slane %v4453_v36, %v11617_v25 }
 0x9b5   :  { %4904 = vmatprep.subr.bf16.mxu0 %v10751_v44  ;;  %v3701_v44 = vrot.slane %v3696_v41, %v11617_v25 }
 0x9b7   :  { %5158 = vmatpush2.bf16.msra.mxu1 %v10800_v40 }
 0x9b8   :  { %4905 = vmatpush2.bf16.msra.mxu0 %v10749_v45  ;;  %v3654_v45 = vadd.f32 %v11710_v32, %v3446_v42 }
 0x9b9   :  { %4906 = vmatprep.subr.bf16.mxu0 %v10754_v46  ;;  %v3450_v46 = vrot.slane %v3441_v39, %v11619_v26  ;;  %v4209_v39 = vrot.slane %v4200_v35, %v11619_v26  ;;  %v10890_v35 = vld [vmem:[#allocation2 + $0x15c0] ss:$8 sps:$4 sm:$0xff]  }
 0x9bb   :  { %v11723_v49 = vpop.f32.mrf.mxu1 }
 0x9bc   :  { %4907 = vmatpush2.bf16.msra.mxu0 %v10752_v47  ;;  %v3950_v47 = vrot.slane %v3945_v43, %v11617_v25 }
 0x9bd   :  { %v11725_v51 = vpop.f32.mrf.mxu1  ;;  %4908 = vmatprep.subr.bf16.mxu0 %v10757_v48  ;;  %v3705_v48 = vrot.slane %v3696_v41, %v11619_v26  ;;  %v4462_v41 = vrot.slane %v4453_v36, %v11619_v26  ;;  %v10895_v36 = vld [vmem:[#allocation2 + $0x15b4] ss:$8 sps:$4 sm:$0xff]  }
 0x9bf   :  { %v4667_v55 = vpop.f32.mrf.mxu1 }
 0x9c0   :  { %4909 = vmatpush2.bf16.msra.mxu0 %v10755_v23  ;;  %v3954_v55 = vrot.slane %v3945_v43, %v11619_v26 }
 0x9c1   :  { %v4668_v59 = vpop.f32.mrf.mxu1  ;;  %4910 = vmatprep.subr.bf16.mxu0 %v10760_v53  ;;  %v10805_v53 = vld [vmem:[#allocation2 + $0x1394] ss:$8 sps:$4 sm:$0xff]  }
 0x9c2   :  { %v10803_v59 = vld [vmem:[#allocation2 + $0x1390] ss:$8 sps:$4 sm:$0xff]   ;;  %5159 = vmatprep.subr.bf16.mxu1 %v10805_v53 }
 0x9c3   :  { %5160 = vmatpush2.bf16.msra.mxu1 %v10803_v59  ;;  %v4708_v59 = vld [vmem:[#allocation4 + $0x24] sm:$0x3] }
 0x9c4   :  { %4911 = vmatpush2.bf16.msra.mxu0 %v10758_v57 }
 0x9c7   :  { %4913 = vmatmul.mubr.bf16.vlgmr.msra.gmra.mxu0 %v4672_v63  ;;  %v3398_v1 = vpop.f32.mrf.mxu0  ;;  %v4158_v63 = vadd.f32 %v11716_v10, %v3950_v47  ;;  %v10812_v10 = vld [vmem:[#allocation2 + $0x1460] ss:$8 sps:$4 sm:$0xff]  }
 0x9c8   :  { %v3399_v2 = vadd.f32 %v3398_v1, %v3197_v62  ;;  %v3656_v62 = vadd.f32 %v11712_v34, %v3450_v46  ;;  %v10811_v34 = vld [vmem:[#allocation2 + $0x1474] ss:$8 sps:$4 sm:$0xff]  }
 0x9c9   :  { %v3400_v3 = vpop.f32.mrf.mxu0  ;;  %5384 = vmatprep.subr.bf16.mxu0 %v10811_v34  ;;  %v10856_v34 = vld [vmem:[#allocation2 + $0x1484] ss:$8 sps:$4 sm:$0xff]  }
 0x9ca   :  { %v8717_v4 = vrot.slane %v3399_v2, 4  ;;  %v3401_v5 = vadd.f32 %v3400_v3, %v3201_v0  ;;  %v10808_v2 = vld [vmem:[#allocation2 + $0x1384] ss:$8 sps:$4 sm:$0xff]   ;;  %v4160_v3 = vadd.f32 %v11718_v12, %v3954_v55  ;;  %5385 = vmatpush1.bf16.msra.mxu0 %v10809_v11  ;;  %v10851_v11 = vld [vmem:[#allocation2 + $0x1490] ss:$8 sps:$4 sm:$0xff]  }
 0x9cb   :  { %v3402_v6 = vpop.f32.mrf.mxu0  ;;  %5161 = vmatprep.subr.bf16.mxu1 %v10808_v2  ;;  %5386 = vmatprep.subr.bf16.mxu0 %v10814_v13  ;;  %v10820_v12 = vld [vmem:[#allocation2 + $0x1444] ss:$8 sps:$4 sm:$0xff]   ;;  %v10854_v13 = vld [vmem:[#allocation2 + $0x1480] ss:$8 sps:$4 sm:$0xff]  }
 0x9cc   :  { %8721 = vst [vmem:[%s11834_s3 + $0x10] sm:$0x30] %v8717_v4  ;;  %v8718_v8 = vrot.slane %v3401_v5, 4  ;;  %v10806_v6 = vld [vmem:[#allocation2 + $0x1380] ss:$8 sps:$4 sm:$0xff]  }
 0x9cd   :  { %v3403_v9 = vpop.f32.mrf.mxu0  ;;  %5162 = vmatpush2.bf16.msra.mxu1 %v10806_v6  ;;  %v10850_v6 = vld [vmem:[#allocation2 + $0x14a4] ss:$8 sps:$4 sm:$0xff]  }
 0x9ce   :  { %8722 = vst [vmem:[%s11834_s3 + $0x18] sm:$0x30] %v8718_v8  ;;  %5387 = vmatpush1.bf16.msra.mxu0 %v10812_v10  ;;  %v10857_v10 = vld [vmem:[#allocation2 + $0x1570] ss:$8 sps:$4 sm:$0xff]  }
 0x9cf   :  { %5388 = vmatprep.subr.bf16.mxu0 %v10817_v58  ;;  %v10859_v58 = vld [vmem:[#allocation2 + $0x1574] ss:$8 sps:$4 sm:$0xff]  }
 0x9d0   :  { %5637 = vmatprep.subr.bf16.mxu1 %v10859_v58  ;;  %v10928_v58 = vld [vmem:[#allocation2 + $0x1604] ss:$8 sps:$4 sm:$0xff]  }
 0x9d2   :  { %5389 = vmatpush1.bf16.msra.mxu0 %v10815_v14  ;;  %v10862_v14 = vld [vmem:[#allocation2 + $0x1564] ss:$8 sps:$4 sm:$0xff]  }
 0x9d3   :  { %5390 = vmatprep.subr.bf16.mxu0 %v10820_v12  ;;  %v10860_v12 = vld [vmem:[#allocation2 + $0x1560] ss:$8 sps:$4 sm:$0xff]  }
 0x9d6   :  { %5391 = vmatpush1.bf16.msra.mxu0 %v10818_v15  ;;  %v10865_v15 = vld [vmem:[#allocation2 + $0x1554] ss:$8 sps:$4 sm:$0xff]  }
 0x9d7   :  { %5392 = vmatprep.subr.bf16.mxu0 %v10823_v54  ;;  %v10863_v54 = vld [vmem:[#allocation2 + $0x1550] ss:$8 sps:$4 sm:$0xff]  }
 0x9da   :  { %5393 = vmatpush1.bf16.msra.mxu0 %v10821_v16  ;;  %v10868_v16 = vld [vmem:[#allocation2 + $0x1544] ss:$8 sps:$4 sm:$0xff]  }
 0x9db   :  { %5394 = vmatprep.subr.bf16.mxu0 %v10826_v17  ;;  %v10866_v17 = vld [vmem:[#allocation2 + $0x1540] ss:$8 sps:$4 sm:$0xff]  }
 0x9de   :  { %5395 = vmatpush1.bf16.msra.mxu0 %v10824_v18  ;;  %v10871_v18 = vld [vmem:[#allocation2 + $0x1534] ss:$8 sps:$4 sm:$0xff]  }
 0x9df   :  { %5396 = vmatprep.subr.bf16.mxu0 %v10829_v19  ;;  %v10869_v19 = vld [vmem:[#allocation2 + $0x1530] ss:$8 sps:$4 sm:$0xff]  }
 0x9e2   :  { %5397 = vmatpush1.bf16.msra.mxu0 %v10827_v20  ;;  %v10874_v20 = vld [vmem:[#allocation2 + $0x1524] ss:$8 sps:$4 sm:$0xff]  }
 0x9e3   :  { %5398 = vmatprep.subr.bf16.mxu0 %v10832_v21  ;;  %v10872_v21 = vld [vmem:[#allocation2 + $0x1520] ss:$8 sps:$4 sm:$0xff]  }
 0x9e6   :  { %5399 = vmatpush1.bf16.msra.mxu0 %v10830_v22  ;;  %v10877_v22 = vld [vmem:[#allocation2 + $0x1514] ss:$8 sps:$4 sm:$0xff]  }
 0x9e7   :  { %5400 = vmatprep.subr.bf16.mxu0 %v10835_v24  ;;  %v10875_v24 = vld [vmem:[#allocation2 + $0x1510] ss:$8 sps:$4 sm:$0xff]  }
 0x9ea   :  { %5401 = vmatpush2.bf16.msra.mxu0 %v10833_v27  ;;  %v10880_v27 = vld [vmem:[#allocation2 + $0x1504] ss:$8 sps:$4 sm:$0xff]  }
 0x9eb   :  { %5402 = vmatprep.subr.bf16.mxu0 %v10838_v28  ;;  %v10878_v28 = vld [vmem:[#allocation2 + $0x1500] ss:$8 sps:$4 sm:$0xff]  }
 0x9ee   :  { %5403 = vmatpush2.bf16.msra.mxu0 %v10836_v29  ;;  %v10883_v29 = vld [vmem:[#allocation2 + $0x15f4] ss:$8 sps:$4 sm:$0xff]  }
 0x9ef   :  { %5404 = vmatprep.subr.bf16.mxu0 %v10841_v7  ;;  %v10881_v7 = vld [vmem:[#allocation2 + $0x15f0] ss:$8 sps:$4 sm:$0xff]  }
 0x9f2   :  { %5405 = vmatpush2.bf16.msra.mxu0 %v10839_v30  ;;  %v10886_v30 = vld [vmem:[#allocation2 + $0x15e4] ss:$8 sps:$4 sm:$0xff]  }
 0x9f3   :  { %5406 = vmatprep.subr.bf16.mxu0 %v10844_v60  ;;  %v10884_v60 = vld [vmem:[#allocation2 + $0x15e0] ss:$8 sps:$4 sm:$0xff]  }
 0x9f6   :  { %5407 = vmatpush2.bf16.msra.mxu0 %v10842_v31  ;;  %v10889_v31 = vld [vmem:[#allocation2 + $0x15d4] ss:$8 sps:$4 sm:$0xff]  }
 0x9f7   :  { %5408 = vmatprep.subr.bf16.mxu0 %v10847_v56  ;;  %v10887_v56 = vld [vmem:[#allocation2 + $0x15d0] ss:$8 sps:$4 sm:$0xff]  }
 0x9fa   :  { %5409 = vmatpush2.bf16.msra.mxu0 %v10845_v33  ;;  %v10892_v33 = vld [vmem:[#allocation2 + $0x15c4] ss:$8 sps:$4 sm:$0xff]  }
 0x9fb   :  { %5410 = vmatprep.subr.bf16.mxu0 %v10850_v6  ;;  %v10914_v6 = vld [vmem:[#allocation2 + $0x1640] ss:$8 sps:$4 sm:$0xff]  }
 0xa07   :  { %v3902_v23 = vpop.f32.mrf.mxu0 }
 0xa08   :  { %v3903_v57 = vadd.f32 %v3902_v23, %v3701_v44  ;;  %v4664_v44 = vadd.f32 %v11723_v49, %v4458_v38  ;;  %v4959_v38 = vld [vmem:[#allocation4 + $0x26] sm:$0x3] }
 0xa09   :  { %v3904_v61 = vpop.f32.mrf.mxu0 }
 0xa0a   :  { %v3909_v0 = vadd.f32 %v3903_v57, %v3654_v45  ;;  %v3905_v32 = vadd.f32 %v3904_v61, %v3705_v48  ;;  %v4666_v48 = vadd.f32 %v11725_v51, %v4462_v41  ;;  %v4713_v61 = vrot.slane %v4708_v59, %v11617_v25 }
 0xa0b   :  { %v3906_v1 = vpop.f32.mrf.mxu0 }
 0xa0c   :  { %v3910_v4 = vadd.f32 %v3905_v32, %v3656_v62  ;;  %v11747_v5 = vadd.f32 %v4158_v63, %v3909_v0  ;;  %v4717_v62 = vrot.slane %v4708_v59, %v11619_v26  ;;  %v10898_v59 = vld [vmem:[#allocation2 + $0x15a4] ss:$8 sps:$4 sm:$0xff]  }
 0xa0d   :  { %v3907_v8 = vpop.f32.mrf.mxu0 }
 0xa0e   :  { %v11749_v9 = vadd.f32 %v4160_v3, %v3910_v4  ;;  %v10848_v8 = vld [vmem:[#allocation2 + $0x14a0] ss:$8 sps:$4 sm:$0xff]  }
 0xa0f   :  { %5411 = vmatpush2.bf16.msra.mxu0 %v10848_v8  ;;  %v10919_v8 = vld [vmem:[#allocation2 + $0x1634] ss:$8 sps:$4 sm:$0xff]  }
 0xa47   :  { %v4410_v40 = vpop.f32.mrf.mxu0 }
 0xa48   :  { %v4411_v42 = vadd.f32 %v4410_v40, %v4205_v37  ;;  %v10893_v37 = vld [vmem:[#allocation2 + $0x15b0] ss:$8 sps:$4 sm:$0xff]   ;;  %v4968_v40 = vrot.slane %v4959_v38, %v11619_v26 }
 0xa49   :  { %v4412_v43 = vpop.f32.mrf.mxu0 }
 0xa4a   :  { %v4417_v45 = vadd.f32 %v4411_v42, %v11747_v5  ;;  %v4413_v46 = vadd.f32 %v4412_v43, %v4209_v39  ;;  %v4964_v39 = vrot.slane %v4959_v38, %v11617_v25  ;;  %v10943_v38 = vld [vmem:[#allocation2 + $0x16b4] ss:$8 sps:$4 sm:$0xff]  }
 0xa4b   :  { %v4414_v47 = vpop.f32.mrf.mxu0 }
 0xa4c   :  { %v4418_v23 = vadd.f32 %v4413_v46, %v11749_v9  ;;  %v4670_v53 = vadd.f32 %v4664_v44, %v4417_v45  ;;  %v10853_v9 = vld [vmem:[#allocation2 + $0x1494] ss:$8 sps:$4 sm:$0xff]  }
 0xa4d   :  { %v4415_v55 = vpop.f32.mrf.mxu0  ;;  %5412 = vmatprep.subr.bf16.mxu0 %v10853_v9  ;;  %v10917_v9 = vld [vmem:[#allocation2 + $0x1630] ss:$8 sps:$4 sm:$0xff]  }
 0xa4e   :  { %v4671_v57 = vadd.f32 %v4666_v48, %v4418_v23  ;;  %5413 = vmatpush2.bf16.msra.mxu0 %v10851_v11  ;;  %v10922_v11 = vld [vmem:[#allocation2 + $0x1624] ss:$8 sps:$4 sm:$0xff]  }
 0xa4f   :  { %5414 = vmatprep.subr.bf16.mxu0 %v10856_v34  ;;  %v10920_v34 = vld [vmem:[#allocation2 + $0x1620] ss:$8 sps:$4 sm:$0xff]  }
 0xa52   :  { %5415 = vmatpush2.bf16.msra.mxu0 %v10854_v13  ;;  %v10925_v13 = vld [vmem:[#allocation2 + $0x1614] ss:$8 sps:$4 sm:$0xff]  }
 0xa87   :  { %v4914_v63 = vpop.f32.mrf.mxu0 }
 0xa88   :  { %v4915_v0 = vadd.f32 %v4914_v63, %v4713_v61  ;;  %v10896_v61 = vld [vmem:[#allocation2 + $0x15a0] ss:$8 sps:$4 sm:$0xff]   ;;  %v10899_v63 = vld [vmem:[#allocation2 + $0x1590] ss:$8 sps:$4 sm:$0xff]  }
 0xa89   :  { %v4916_v32 = vpop.f32.mrf.mxu0 }
 0xa8a   :  { %v4917_v49 = vadd.f32 %v4916_v32, %v4717_v62  ;;  %v4921_v1 = vadd.f32 %v4915_v0, %v4670_v53  ;;  %v10901_v62 = vld [vmem:[#allocation2 + $0x1594] ss:$8 sps:$4 sm:$0xff]   ;;  %v10904_v0 = vld [vmem:[#allocation2 + $0x1584] ss:$8 sps:$4 sm:$0xff]   ;;  %v10902_v32 = vld [vmem:[#allocation2 + $0x1580] ss:$8 sps:$4 sm:$0xff]  }
 0xa8b   :  { %v4918_v2 = vpop.f32.mrf.mxu0 }
 0xa8c   :  { %v4922_v3 = vadd.f32 %v4917_v49, %v4671_v57  ;;  %v4923_v51 = vpack.c.bf16 %v4921_v1, %v4921_v1  ;;  %v10905_v49 = vld [vmem:[#allocation2 + $0x1670] ss:$8 sps:$4 sm:$0xff]   ;;  %v10907_v1 = vld [vmem:[#allocation2 + $0x1674] ss:$8 sps:$4 sm:$0xff]   ;;  %v10910_v2 = vld [vmem:[#allocation2 + $0x1664] ss:$8 sps:$4 sm:$0xff]  }
 0xa8d   :  { %v4919_v4 = vpop.f32.mrf.mxu0  ;;  %5892 = vmatprep.subr.bf16.mxu0 %v10907_v1  ;;  %v10976_v1 = vld [vmem:[#allocation2 + $0x1704] ss:$8 sps:$4 sm:$0xff]  }
 0xa8e   :  { %v4924_v5 = vpack.c.bf16 %v4922_v3, %v4922_v3  ;;  %v10908_v3 = vld [vmem:[#allocation2 + $0x1660] ss:$8 sps:$4 sm:$0xff]   ;;  %v10913_v4 = vld [vmem:[#allocation2 + $0x1654] ss:$8 sps:$4 sm:$0xff]  }
 0xa90   :  { %5163 = vmatprep.mubr.bf16.mxu1 %v4924_v5  ;;  %v10911_v5 = vld [vmem:[#allocation2 + $0x1650] ss:$8 sps:$4 sm:$0xff]  }
 0xa91   :  { %5164 = vmatmul.mubr.bf16.vlgmr.msra.gmra.mxu1 %v4923_v51  ;;  %v10916_v51 = vld [vmem:[#allocation2 + $0x1644] ss:$8 sps:$4 sm:$0xff]  }
 0xa92   :  { %5638 = vmatpush1.bf16.msra.mxu1 %v10857_v10  ;;  %v10923_v10 = vld [vmem:[#allocation2 + $0x1610] ss:$8 sps:$4 sm:$0xff]  }
 0xa93   :  { %5639 = vmatprep.subr.bf16.mxu1 %v10862_v14  ;;  %v10926_v14 = vld [vmem:[#allocation2 + $0x1600] ss:$8 sps:$4 sm:$0xff]  }
 0xa96   :  { %5640 = vmatpush1.bf16.msra.mxu1 %v10860_v12  ;;  %v10931_v12 = vld [vmem:[#allocation2 + $0x16f4] ss:$8 sps:$4 sm:$0xff]  }
 0xa97   :  { %5641 = vmatprep.subr.bf16.mxu1 %v10865_v15  ;;  %v10929_v15 = vld [vmem:[#allocation2 + $0x16f0] ss:$8 sps:$4 sm:$0xff]  }
 0xa9a   :  { %5642 = vmatpush1.bf16.msra.mxu1 %v10863_v54  ;;  %v10934_v54 = vld [vmem:[#allocation2 + $0x16e4] ss:$8 sps:$4 sm:$0xff]  }
 0xa9b   :  { %5643 = vmatprep.subr.bf16.mxu1 %v10868_v16  ;;  %v10932_v16 = vld [vmem:[#allocation2 + $0x16e0] ss:$8 sps:$4 sm:$0xff]  }
 0xa9e   :  { %5644 = vmatpush1.bf16.msra.mxu1 %v10866_v17  ;;  %v5212_v17 = vld [vmem:[#allocation4 + $0x28] sm:$0x3] }
 0xa9f   :  { %5645 = vmatprep.subr.bf16.mxu1 %v10871_v18  ;;  %v5217_v18 = vrot.slane %v5212_v17, %v11617_v25 }
 0xaa2   :  { %5646 = vmatpush1.bf16.msra.mxu1 %v10869_v19  ;;  %v5221_v19 = vrot.slane %v5212_v17, %v11619_v26 }
 0xaa3   :  { %5647 = vmatprep.subr.bf16.mxu1 %v10874_v20 }
 0xaa6   :  { %5648 = vmatpush1.bf16.msra.mxu1 %v10872_v21 }
 0xaa7   :  { %5649 = vmatprep.subr.bf16.mxu1 %v10877_v22 }
 0xaaa   :  { %5650 = vmatpush1.bf16.msra.mxu1 %v10875_v24 }
 0xaab   :  { %5651 = vmatprep.subr.bf16.mxu1 %v10880_v27 }
 0xaae   :  { %5652 = vmatpush1.bf16.msra.mxu1 %v10878_v28 }
 0xaaf   :  { %5653 = vmatprep.subr.bf16.mxu1 %v10883_v29 }
 0xab2   :  { %5654 = vmatpush2.bf16.msra.mxu1 %v10881_v7 }
 0xab3   :  { %5655 = vmatprep.subr.bf16.mxu1 %v10886_v30 }
 0xab6   :  { %5656 = vmatpush2.bf16.msra.mxu1 %v10884_v60 }
 0xab7   :  { %5657 = vmatprep.subr.bf16.mxu1 %v10889_v31 }
 0xaba   :  { %5658 = vmatpush2.bf16.msra.mxu1 %v10887_v56 }
 0xabb   :  { %5659 = vmatprep.subr.bf16.mxu1 %v10892_v33  ;;  %v10937_v33 = vld [vmem:[#allocation2 + $0x16d4] ss:$8 sps:$4 sm:$0xff]  }
 0xabe   :  { %5660 = vmatpush2.bf16.msra.mxu1 %v10890_v35  ;;  %v10935_v35 = vld [vmem:[#allocation2 + $0x16d0] ss:$8 sps:$4 sm:$0xff]  }
 0xabf   :  { %5661 = vmatprep.subr.bf16.mxu1 %v10895_v36  ;;  %v10940_v36 = vld [vmem:[#allocation2 + $0x16c4] ss:$8 sps:$4 sm:$0xff]  }
 0xac2   :  { %5662 = vmatpush2.bf16.msra.mxu1 %v10893_v37  ;;  %v10938_v37 = vld [vmem:[#allocation2 + $0x16c0] ss:$8 sps:$4 sm:$0xff]  }
 0xac3   :  { %5663 = vmatprep.subr.bf16.mxu1 %v10898_v59  ;;  %v10962_v59 = vld [vmem:[#allocation2 + $0x1740] ss:$8 sps:$4 sm:$0xff]  }
 0xac6   :  { %5664 = vmatpush2.bf16.msra.mxu1 %v10896_v61  ;;  %v10967_v61 = vld [vmem:[#allocation2 + $0x1734] ss:$8 sps:$4 sm:$0xff]  }
 0xac7   :  { %5665 = vmatprep.subr.bf16.mxu1 %v10901_v62  ;;  %v10965_v62 = vld [vmem:[#allocation2 + $0x1730] ss:$8 sps:$4 sm:$0xff]  }
 0xaca   :  { %5666 = vmatpush2.bf16.msra.mxu1 %v10899_v63  ;;  %v10970_v63 = vld [vmem:[#allocation2 + $0x1724] ss:$8 sps:$4 sm:$0xff]  }
 0xacb   :  { %5667 = vmatprep.subr.bf16.mxu1 %v10904_v0  ;;  %v10968_v0 = vld [vmem:[#allocation2 + $0x1720] ss:$8 sps:$4 sm:$0xff]  }
 0xace   :  { %5668 = vmatpush2.bf16.msra.mxu1 %v10902_v32  ;;  %v10973_v32 = vld [vmem:[#allocation2 + $0x1714] ss:$8 sps:$4 sm:$0xff]  }
 0xb51   :  { %v5165_v41 = vpop.f32.mrf.mxu1 }
 0xb52   :  { %v5166_v42 = vadd.f32 %v5165_v41, %v4964_v39  ;;  %v10941_v39 = vld [vmem:[#allocation2 + $0x16b0] ss:$8 sps:$4 sm:$0xff]   ;;  %v10944_v41 = vld [vmem:[#allocation2 + $0x16a0] ss:$8 sps:$4 sm:$0xff]  }
 0xb53   :  { %v5167_v43 = vpop.f32.mrf.mxu1 }
 0xb54   :  { %v5172_v44 = vmul.f32 0.2, %v5166_v42  ;;  %v5168_v45 = vadd.f32 %v5167_v43, %v4968_v40  ;;  %v10946_v40 = vld [vmem:[#allocation2 + $0x16a4] ss:$8 sps:$4 sm:$0xff]   ;;  %v10947_v43 = vld [vmem:[#allocation2 + $0x1690] ss:$8 sps:$4 sm:$0xff]  }
 0xb55   :  { %v5169_v46 = vpop.f32.mrf.mxu1 }
 0xb56   :  { %v5173_v47 = vmul.f32 0.2, %v5168_v45  ;;  %v5174_v48 = vmax.f32 %v5166_v42, %v5172_v44  ;;  %v10949_v42 = vld [vmem:[#allocation2 + $0x1694] ss:$8 sps:$4 sm:$0xff]   ;;  %v10952_v44 = vld [vmem:[#allocation2 + $0x1684] ss:$8 sps:$4 sm:$0xff]  }
 0xb57   :  { %v5170_v23 = vpop.f32.mrf.mxu1  ;;  %v10953_v46 = vld [vmem:[#allocation2 + $0x1770] ss:$8 sps:$4 sm:$0xff]  }
 0xb58   :  { %v5175_v53 = vmax.f32 %v5168_v45, %v5173_v47  ;;  %v5176_v57 = vpack.c.bf16 %v5174_v48, %v5174_v48  ;;  %v10950_v45 = vld [vmem:[#allocation2 + $0x1680] ss:$8 sps:$4 sm:$0xff]   ;;  %v10955_v47 = vld [vmem:[#allocation2 + $0x1774] ss:$8 sps:$4 sm:$0xff]   ;;  %v10958_v48 = vld [vmem:[#allocation2 + $0x1764] ss:$8 sps:$4 sm:$0xff]  }
 0xb59   :  { %6145 = vmatprep.subr.bf16.mxu1 %v10955_v47  ;;  %v10956_v23 = vld [vmem:[#allocation2 + $0x1760] ss:$8 sps:$4 sm:$0xff]   ;;  %v11061_v47 = vld [vmem:[#allocation2 + $0x1830] ss:$8 sps:$4 sm:$0xff]  }
 0xb5a   :  { %v5177_v55 = vpack.c.bf16 %v5175_v53, %v5175_v53  ;;  %v10961_v53 = vld [vmem:[#allocation2 + $0x1754] ss:$8 sps:$4 sm:$0xff]  }
 0xb5c   :  { %5416 = vmatprep.mubr.bf16.mxu0 %v5177_v55  ;;  %v10959_v55 = vld [vmem:[#allocation2 + $0x1750] ss:$8 sps:$4 sm:$0xff]  }
 0xb5d   :  { %5417 = vmatmul.mubr.bf16.vlgmr.msra.gmra.mxu0 %v5176_v57  ;;  %v10964_v57 = vld [vmem:[#allocation2 + $0x1744] ss:$8 sps:$4 sm:$0xff]  }
 0xb5e   :  { %5893 = vmatpush1.bf16.msra.mxu0 %v10905_v49  ;;  %v10971_v49 = vld [vmem:[#allocation2 + $0x1710] ss:$8 sps:$4 sm:$0xff]  }
 0xb5f   :  { %5894 = vmatprep.subr.bf16.mxu0 %v10910_v2  ;;  %v10974_v2 = vld [vmem:[#allocation2 + $0x1700] ss:$8 sps:$4 sm:$0xff]  }
 0xb62   :  { %5895 = vmatpush1.bf16.msra.mxu0 %v10908_v3  ;;  %v10979_v3 = vld [vmem:[#allocation2 + $0x17f4] ss:$8 sps:$4 sm:$0xff]  }
 0xb63   :  { %5896 = vmatprep.subr.bf16.mxu0 %v10913_v4  ;;  %v10977_v4 = vld [vmem:[#allocation2 + $0x17f0] ss:$8 sps:$4 sm:$0xff]  }
 0xb66   :  { %5897 = vmatpush1.bf16.msra.mxu0 %v10911_v5  ;;  %v10982_v5 = vld [vmem:[#allocation2 + $0x17e4] ss:$8 sps:$4 sm:$0xff]  }
 0xb67   :  { %5898 = vmatprep.subr.bf16.mxu0 %v10916_v51  ;;  %v10980_v51 = vld [vmem:[#allocation2 + $0x17e0] ss:$8 sps:$4 sm:$0xff]  }
 0xb6a   :  { %5899 = vmatpush1.bf16.msra.mxu0 %v10914_v6  ;;  %v10985_v6 = vld [vmem:[#allocation2 + $0x17d4] ss:$8 sps:$4 sm:$0xff]  }
 0xb6b   :  { %5900 = vmatprep.subr.bf16.mxu0 %v10919_v8  ;;  %v10983_v8 = vld [vmem:[#allocation2 + $0x17d0] ss:$8 sps:$4 sm:$0xff]  }
 0xb6e   :  { %5901 = vmatpush1.bf16.msra.mxu0 %v10917_v9  ;;  %v10988_v9 = vld [vmem:[#allocation2 + $0x17c4] ss:$8 sps:$4 sm:$0xff]  }
 0xb6f   :  { %5902 = vmatprep.subr.bf16.mxu0 %v10922_v11  ;;  %v10986_v11 = vld [vmem:[#allocation2 + $0x17c0] ss:$8 sps:$4 sm:$0xff]  }
 0xb72   :  { %5903 = vmatpush1.bf16.msra.mxu0 %v10920_v34  ;;  %v10991_v34 = vld [vmem:[#allocation2 + $0x17b4] ss:$8 sps:$4 sm:$0xff]  }
 0xb73   :  { %5904 = vmatprep.subr.bf16.mxu0 %v10925_v13  ;;  %v10989_v13 = vld [vmem:[#allocation2 + $0x17b0] ss:$8 sps:$4 sm:$0xff]  }
 0xb76   :  { %5905 = vmatpush1.bf16.msra.mxu0 %v10923_v10  ;;  %v10994_v10 = vld [vmem:[#allocation2 + $0x17a4] ss:$8 sps:$4 sm:$0xff]  }
 0xb77   :  { %5906 = vmatprep.subr.bf16.mxu0 %v10928_v58  ;;  %v10992_v58 = vld [vmem:[#allocation2 + $0x17a0] ss:$8 sps:$4 sm:$0xff]  }
 0xb7a   :  { %5907 = vmatpush1.bf16.msra.mxu0 %v10926_v14  ;;  %v5465_v14 = vld [vmem:[#allocation4 + $0x2a] sm:$0x3] }
 0xb7b   :  { %5908 = vmatprep.subr.bf16.mxu0 %v10931_v12  ;;  %v5470_v12 = vrot.slane %v5465_v14, %v11617_v25 }
 0xb7e   :  { %5909 = vmatpush2.bf16.msra.mxu0 %v10929_v15  ;;  %v5474_v15 = vrot.slane %v5465_v14, %v11619_v26 }
 0xb7f   :  { %5910 = vmatprep.subr.bf16.mxu0 %v10934_v54 }
 0xb82   :  { %5911 = vmatpush2.bf16.msra.mxu0 %v10932_v16 }
 0xb83   :  { %5912 = vmatprep.subr.bf16.mxu0 %v10937_v33  ;;  %v10995_v33 = vld [vmem:[#allocation2 + $0x1790] ss:$8 sps:$4 sm:$0xff]  }
 0xb86   :  { %5913 = vmatpush2.bf16.msra.mxu0 %v10935_v35  ;;  %v11000_v35 = vld [vmem:[#allocation2 + $0x1784] ss:$8 sps:$4 sm:$0xff]  }
 0xb87   :  { %5914 = vmatprep.subr.bf16.mxu0 %v10940_v36  ;;  %v10998_v36 = vld [vmem:[#allocation2 + $0x1780] ss:$8 sps:$4 sm:$0xff]  }
 0xb8a   :  { %5915 = vmatpush2.bf16.msra.mxu0 %v10938_v37  ;;  %v11003_v37 = vld [vmem:[#allocation2 + $0x1974] ss:$8 sps:$4 sm:$0xff]  }
 0xb8b   :  { %5916 = vmatprep.subr.bf16.mxu0 %v10943_v38  ;;  %v11049_v38 = vld [vmem:[#allocation2 + $0x1870] ss:$8 sps:$4 sm:$0xff]  }
 0xb8e   :  { %5917 = vmatpush2.bf16.msra.mxu0 %v10941_v39  ;;  %v11051_v39 = vld [vmem:[#allocation2 + $0x1874] ss:$8 sps:$4 sm:$0xff]  }
 0xb8f   :  { %5918 = vmatprep.subr.bf16.mxu0 %v10946_v40  ;;  %v11054_v40 = vld [vmem:[#allocation2 + $0x1864] ss:$8 sps:$4 sm:$0xff]  }
 0xb92   :  { %5919 = vmatpush2.bf16.msra.mxu0 %v10944_v41  ;;  %v11052_v41 = vld [vmem:[#allocation2 + $0x1860] ss:$8 sps:$4 sm:$0xff]  }
 0xb93   :  { %5920 = vmatprep.subr.bf16.mxu0 %v10949_v42  ;;  %v11057_v42 = vld [vmem:[#allocation2 + $0x1854] ss:$8 sps:$4 sm:$0xff]  }
 0xb96   :  { %5921 = vmatpush2.bf16.msra.mxu0 %v10947_v43  ;;  %v11055_v43 = vld [vmem:[#allocation2 + $0x1850] ss:$8 sps:$4 sm:$0xff]  }
 0xb97   :  { %5922 = vmatprep.subr.bf16.mxu0 %v10952_v44  ;;  %v11060_v44 = vld [vmem:[#allocation2 + $0x1844] ss:$8 sps:$4 sm:$0xff]  }
 0xb9a   :  { %5923 = vmatpush2.bf16.msra.mxu0 %v10950_v45  ;;  %v11058_v45 = vld [vmem:[#allocation2 + $0x1840] ss:$8 sps:$4 sm:$0xff]  }
 0xb9b   :  { %6398 = vmatprep.subr.bf16.mxu0 %v11051_v39  ;;  %v11027_v39 = vld [vmem:[#allocation2 + $0x19f4] ss:$8 sps:$4 sm:$0xff]  }
 0xc1d   :  { %v5418_v20 = vpop.f32.mrf.mxu0 }
 0xc1e   :  { %v5419_v21 = vadd.f32 %v5418_v20, %v5217_v18 }
 0xc1f   :  { %v5420_v22 = vpop.f32.mrf.mxu0 }
 0xc20   :  { %v5425_v24 = vmul.f32 0.2, %v5419_v21  ;;  %v5421_v27 = vadd.f32 %v5420_v22, %v5221_v19 }
 0xc21   :  { %v5422_v28 = vpop.f32.mrf.mxu0 }
 0xc22   :  { %v5426_v29 = vmul.f32 0.2, %v5421_v27  ;;  %v5427_v7 = vmax.f32 %v5419_v21, %v5425_v24 }
 0xc23   :  { %v5423_v30 = vpop.f32.mrf.mxu0 }
 0xc24   :  { %v5428_v60 = vmax.f32 %v5421_v27, %v5426_v29  ;;  %v5429_v56 = vpack.c.bf16 %v5427_v7, %v5427_v7 }
 0xc26   :  { %v5430_v31 = vpack.c.bf16 %v5428_v60, %v5428_v60 }
 0xc28   :  { %5669 = vmatprep.mubr.bf16.mxu1 %v5430_v31 }
 0xc29   :  { %5670 = vmatmul.mubr.bf16.vlgmr.msra.gmra.mxu1 %v5429_v56  ;;  %v10997_v56 = vld [vmem:[#allocation2 + $0x1794] ss:$8 sps:$4 sm:$0xff]  }
 0xc2a   :  { %6146 = vmatpush1.bf16.msra.mxu1 %v10953_v46  ;;  %v11063_v46 = vld [vmem:[#allocation2 + $0x1834] ss:$8 sps:$4 sm:$0xff]  }
 0xc2b   :  { %6147 = vmatprep.subr.bf16.mxu1 %v10958_v48  ;;  %v11066_v48 = vld [vmem:[#allocation2 + $0x1824] ss:$8 sps:$4 sm:$0xff]  }
 0xc2e   :  { %6148 = vmatpush1.bf16.msra.mxu1 %v10956_v23  ;;  %v11064_v23 = vld [vmem:[#allocation2 + $0x1820] ss:$8 sps:$4 sm:$0xff]  }
 0xc2f   :  { %6149 = vmatprep.subr.bf16.mxu1 %v10961_v53  ;;  %v11069_v53 = vld [vmem:[#allocation2 + $0x1814] ss:$8 sps:$4 sm:$0xff]  }
 0xc32   :  { %6150 = vmatpush1.bf16.msra.mxu1 %v10959_v55  ;;  %v11067_v55 = vld [vmem:[#allocation2 + $0x1810] ss:$8 sps:$4 sm:$0xff]  }
 0xc33   :  { %6151 = vmatprep.subr.bf16.mxu1 %v10964_v57  ;;  %v11072_v57 = vld [vmem:[#allocation2 + $0x1804] ss:$8 sps:$4 sm:$0xff]  }
 0xc36   :  { %6152 = vmatpush1.bf16.msra.mxu1 %v10962_v59  ;;  %v11070_v59 = vld [vmem:[#allocation2 + $0x1800] ss:$8 sps:$4 sm:$0xff]  }
 0xc37   :  { %6153 = vmatprep.subr.bf16.mxu1 %v10967_v61  ;;  %v11075_v61 = vld [vmem:[#allocation2 + $0x18f4] ss:$8 sps:$4 sm:$0xff]  }
 0xc3a   :  { %6154 = vmatpush1.bf16.msra.mxu1 %v10965_v62  ;;  %v11073_v62 = vld [vmem:[#allocation2 + $0x18f0] ss:$8 sps:$4 sm:$0xff]  }
 0xc3b   :  { %6155 = vmatprep.subr.bf16.mxu1 %v10970_v63  ;;  %v11078_v63 = vld [vmem:[#allocation2 + $0x18e4] ss:$8 sps:$4 sm:$0xff]  }
 0xc3e   :  { %6156 = vmatpush1.bf16.msra.mxu1 %v10968_v0  ;;  %v11076_v0 = vld [vmem:[#allocation2 + $0x18e0] ss:$8 sps:$4 sm:$0xff]  }
 0xc3f   :  { %6157 = vmatprep.subr.bf16.mxu1 %v10973_v32  ;;  %v11081_v32 = vld [vmem:[#allocation2 + $0x18d4] ss:$8 sps:$4 sm:$0xff]  }
 0xc42   :  { %6158 = vmatpush1.bf16.msra.mxu1 %v10971_v49  ;;  %v11079_v49 = vld [vmem:[#allocation2 + $0x18d0] ss:$8 sps:$4 sm:$0xff]  }
 0xc43   :  { %6159 = vmatprep.subr.bf16.mxu1 %v10976_v1  ;;  %v11084_v1 = vld [vmem:[#allocation2 + $0x18c4] ss:$8 sps:$4 sm:$0xff]  }
 0xc46   :  { %6160 = vmatpush1.bf16.msra.mxu1 %v10974_v2  ;;  %v11082_v2 = vld [vmem:[#allocation2 + $0x18c0] ss:$8 sps:$4 sm:$0xff]  }
 0xc47   :  { %6161 = vmatprep.subr.bf16.mxu1 %v10979_v3  ;;  %v11087_v3 = vld [vmem:[#allocation2 + $0x18b4] ss:$8 sps:$4 sm:$0xff]  }
 0xc4a   :  { %6162 = vmatpush2.bf16.msra.mxu1 %v10977_v4  ;;  %v5720_v4 = vld [vmem:[#allocation4 + $0x2c] sm:$0x3] }
 0xc4b   :  { %6163 = vmatprep.subr.bf16.mxu1 %v10982_v5  ;;  %v11085_v5 = vld [vmem:[#allocation2 + $0x18b0] ss:$8 sps:$4 sm:$0xff]  }
 0xc4e   :  { %6164 = vmatpush2.bf16.msra.mxu1 %v10980_v51  ;;  %v11090_v51 = vld [vmem:[#allocation2 + $0x18a4] ss:$8 sps:$4 sm:$0xff]  }
 0xc4f   :  { %6165 = vmatprep.subr.bf16.mxu1 %v10985_v6  ;;  %v5725_v6 = vrot.slane %v5720_v4, %v11617_v25 }
 0xc52   :  { %6166 = vmatpush2.bf16.msra.mxu1 %v10983_v8  ;;  %v5729_v8 = vrot.slane %v5720_v4, %v11619_v26 }
 0xc53   :  { %6167 = vmatprep.subr.bf16.mxu1 %v10988_v9  ;;  %v11088_v9 = vld [vmem:[#allocation2 + $0x18a0] ss:$8 sps:$4 sm:$0xff]  }
 0xc56   :  { %6168 = vmatpush2.bf16.msra.mxu1 %v10986_v11 }
 0xc57   :  { %6169 = vmatprep.subr.bf16.mxu1 %v10991_v34 }
 0xc5a   :  { %6170 = vmatpush2.bf16.msra.mxu1 %v10989_v13 }
 0xc5b   :  { %6171 = vmatprep.subr.bf16.mxu1 %v10994_v10 }
 0xc5e   :  { %6172 = vmatpush2.bf16.msra.mxu1 %v10992_v58 }
 0xc5f   :  { %6173 = vmatprep.subr.bf16.mxu1 %v10997_v56  ;;  %v11018_v56 = vld [vmem:[#allocation2 + $0x1924] ss:$8 sps:$4 sm:$0xff]  }
 0xc62   :  { %6174 = vmatpush2.bf16.msra.mxu1 %v10995_v33  ;;  %v11016_v33 = vld [vmem:[#allocation2 + $0x1920] ss:$8 sps:$4 sm:$0xff]  }
 0xc63   :  { %6175 = vmatprep.subr.bf16.mxu1 %v11000_v35  ;;  %v11021_v35 = vld [vmem:[#allocation2 + $0x1914] ss:$8 sps:$4 sm:$0xff]  }
 0xc66   :  { %6176 = vmatpush2.bf16.msra.mxu1 %v10998_v36  ;;  %v11019_v36 = vld [vmem:[#allocation2 + $0x1910] ss:$8 sps:$4 sm:$0xff]  }
 0xc67   :  { %6656 = vmatprep.subr.bf16.mxu1 %v11003_v37  ;;  %v11024_v37 = vld [vmem:[#allocation2 + $0x1904] ss:$8 sps:$4 sm:$0xff]  }
 0xce9   :  { %v5671_v54 = vpop.f32.mrf.mxu1 }
 0xcea   :  { %v5672_v16 = vadd.f32 %v5671_v54, %v5470_v12 }
 0xceb   :  { %v5673_v17 = vpop.f32.mrf.mxu1 }
 0xcec   :  { %v5678_v18 = vmul.f32 0.2, %v5672_v16  ;;  %v5674_v19 = vadd.f32 %v5673_v17, %v5474_v15 }
 0xced   :  { %v5675_v20 = vpop.f32.mrf.mxu1 }
 0xcee   :  { %v5680_v21 = vmax.f32 %v5672_v16, %v5678_v18  ;;  %v5679_v22 = vmul.f32 0.2, %v5674_v19  ;;  %v11001_v20 = vld [vmem:[#allocation2 + $0x1970] ss:$8 sps:$4 sm:$0xff]  }
 0xcef   :  { %v5676_v24 = vpop.f32.mrf.mxu1 }
 0xcf0   :  { %11525 = vtanh.f32 %v5680_v21  ;;  %v5681_v27 = vmax.f32 %v5674_v19, %v5679_v22  ;;  %v11006_v22 = vld [vmem:[#allocation2 + $0x1964] ss:$8 sps:$4 sm:$0xff]  }
 0xcf2   :  { %11527 = vtanh.f32 %v5681_v27  ;;  %v11004_v27 = vld [vmem:[#allocation2 + $0x1960] ss:$8 sps:$4 sm:$0xff]  }
 0xcfd   :  { %v11767_v28 = vpop.eup %11525 }
 0xcfe   :  { %v8723_v29 = vrot.slane %v11767_v28, 2  ;;  %v5684_v31 = vpack.c.bf16 %v11767_v28, %v11767_v28 }
 0xcff   :  { %v11770_v7 = vpop.eup %11527 }
 0xd00   :  { %8727 = vst [vmem:[%s11834_s3 + $0x10] sm:$0xc0] %v8723_v29  ;;  %v8724_v30 = vrot.slane %v11770_v7, 2  ;;  %v5685_v60 = vpack.c.bf16 %v11770_v7, %v11770_v7  ;;  %v6442_v12 = vrot.slane %v11770_v7, 6  ;;  %v11009_v29 = vld [vmem:[#allocation2 + $0x1954] ss:$8 sps:$4 sm:$0xff]  }
 0xd01   :  { %v11007_v7 = vld [vmem:[#allocation2 + $0x1950] ss:$8 sps:$4 sm:$0xff]  }
 0xd02   :  { %8728 = vst [vmem:[%s11834_s3 + $0x18] sm:$0xc0] %v8724_v30  ;;  %5924 = vmatprep.mubr.bf16.mxu0 %v5685_v60  ;;  %v6447_v18 = vsel %vm6445_vm0, %v11674_v52, %v6442_v12  ;;  %v11012_v30 = vld [vmem:[#allocation2 + $0x1944] ss:$8 sps:$4 sm:$0xff]   ;;  %v11010_v60 = vld [vmem:[#allocation2 + $0x1940] ss:$8 sps:$4 sm:$0xff]  }
 0xd03   :  { %5925 = vmatmul.mubr.bf16.vlgmr.msra.gmra.mxu0 %v5684_v31  ;;  %v6449_v24 = vpack.c.bf16 %v6447_v18, %v6447_v18  ;;  %v11015_v52 = vld [vmem:[#allocation2 + $0x1934] ss:$8 sps:$4 sm:$0xff]   ;;  %v11013_v31 = vld [vmem:[#allocation2 + $0x1930] ss:$8 sps:$4 sm:$0xff]  }
 0xd04   :  { %6399 = vmatpush1.bf16.msra.mxu0 %v11049_v38  ;;  %v11022_v38 = vld [vmem:[#allocation2 + $0x1900] ss:$8 sps:$4 sm:$0xff]   ;;  %v11097_v12 = vld [vmem:[#allocation2 + $0x1a70] ss:$8 sps:$4 sm:$0xff]  }
 0xd05   :  { %6400 = vmatprep.subr.bf16.mxu0 %v11054_v40  ;;  %v11025_v40 = vld [vmem:[#allocation2 + $0x19f0] ss:$8 sps:$4 sm:$0xff]  }
 0xd06   :  { %v11103_v18 = vld [vmem:[#allocation2 + $0x1a50] ss:$8 sps:$4 sm:$0xff]  }
 0xd08   :  { %6401 = vmatpush1.bf16.msra.mxu0 %v11052_v41  ;;  %v11030_v41 = vld [vmem:[#allocation2 + $0x19e4] ss:$8 sps:$4 sm:$0xff]  }
 0xd09   :  { %6402 = vmatprep.subr.bf16.mxu0 %v11057_v42  ;;  %v11028_v42 = vld [vmem:[#allocation2 + $0x19e0] ss:$8 sps:$4 sm:$0xff]  }
 0xd0c   :  { %6403 = vmatpush1.bf16.msra.mxu0 %v11055_v43  ;;  %v11033_v43 = vld [vmem:[#allocation2 + $0x19d4] ss:$8 sps:$4 sm:$0xff]  }
 0xd0d   :  { %6404 = vmatprep.subr.bf16.mxu0 %v11060_v44  ;;  %v11031_v44 = vld [vmem:[#allocation2 + $0x19d0] ss:$8 sps:$4 sm:$0xff]  }
 0xd10   :  { %6405 = vmatpush1.bf16.msra.mxu0 %v11058_v45  ;;  %v11036_v45 = vld [vmem:[#allocation2 + $0x19c4] ss:$8 sps:$4 sm:$0xff]  }
 0xd11   :  { %6406 = vmatprep.subr.bf16.mxu0 %v11063_v46  ;;  %v11034_v46 = vld [vmem:[#allocation2 + $0x19c0] ss:$8 sps:$4 sm:$0xff]  }
 0xd14   :  { %6407 = vmatpush1.bf16.msra.mxu0 %v11061_v47  ;;  %v11039_v47 = vld [vmem:[#allocation2 + $0x19b4] ss:$8 sps:$4 sm:$0xff]  }
 0xd15   :  { %6408 = vmatprep.subr.bf16.mxu0 %v11066_v48  ;;  %v11037_v48 = vld [vmem:[#allocation2 + $0x19b0] ss:$8 sps:$4 sm:$0xff]  }
 0xd18   :  { %6409 = vmatpush1.bf16.msra.mxu0 %v11064_v23  ;;  %v11042_v23 = vld [vmem:[#allocation2 + $0x19a4] ss:$8 sps:$4 sm:$0xff]  }
 0xd19   :  { %6410 = vmatprep.subr.bf16.mxu0 %v11069_v53  ;;  %v11040_v53 = vld [vmem:[#allocation2 + $0x19a0] ss:$8 sps:$4 sm:$0xff]  }
 0xd1c   :  { %6411 = vmatpush1.bf16.msra.mxu0 %v11067_v55  ;;  %v11045_v55 = vld [vmem:[#allocation2 + $0x1994] ss:$8 sps:$4 sm:$0xff]  }
 0xd1d   :  { %6412 = vmatprep.subr.bf16.mxu0 %v11072_v57  ;;  %v11043_v57 = vld [vmem:[#allocation2 + $0x1990] ss:$8 sps:$4 sm:$0xff]  }
 0xd20   :  { %6413 = vmatpush1.bf16.msra.mxu0 %v11070_v59  ;;  %v11048_v59 = vld [vmem:[#allocation2 + $0x1984] ss:$8 sps:$4 sm:$0xff]  }
 0xd21   :  { %6414 = vmatprep.subr.bf16.mxu0 %v11075_v61  ;;  %v6441_v61 = vrot.slane %v11767_v28, 6  ;;  %v5973_v28 = vld [vmem:[#allocation4 + $0x2e] sm:$0x3] }
 0xd22   :  { %v5978_v4 = vrot.slane %v5973_v28, %v11617_v25 }
 0xd24   :  { %6415 = vmatpush2.bf16.msra.mxu0 %v11073_v62  ;;  %v11046_v62 = vld [vmem:[#allocation2 + $0x1980] ss:$8 sps:$4 sm:$0xff]  }
 0xd25   :  { %6416 = vmatprep.subr.bf16.mxu0 %v11078_v63  ;;  %v6446_v63 = vsel %vm6445_vm0, %v11671_v50, %v6441_v61 }
 0xd28   :  { %6417 = vmatpush2.bf16.msra.mxu0 %v11076_v0  ;;  %v6448_v0 = vpack.c.bf16 %v6446_v63, %v6446_v63 }
 0xd29   :  { %6418 = vmatprep.subr.bf16.mxu0 %v11081_v32  ;;  %v11093_v32 = vld [vmem:[#allocation2 + $0x1894] ss:$8 sps:$4 sm:$0xff]  }
 0xd2c   :  { %6419 = vmatpush2.bf16.msra.mxu0 %v11079_v49  ;;  %v11091_v49 = vld [vmem:[#allocation2 + $0x1890] ss:$8 sps:$4 sm:$0xff]  }
 0xd2d   :  { %6420 = vmatprep.subr.bf16.mxu0 %v11084_v1  ;;  %v11096_v1 = vld [vmem:[#allocation2 + $0x1884] ss:$8 sps:$4 sm:$0xff]  }
 0xd30   :  { %6421 = vmatpush2.bf16.msra.mxu0 %v11082_v2  ;;  %v11094_v2 = vld [vmem:[#allocation2 + $0x1880] ss:$8 sps:$4 sm:$0xff]  }
 0xd31   :  { %6422 = vmatprep.subr.bf16.mxu0 %v11087_v3  ;;  %v11099_v3 = vld [vmem:[#allocation2 + $0x1a74] ss:$8 sps:$4 sm:$0xff]  }
 0xd34   :  { %6423 = vmatpush2.bf16.msra.mxu0 %v11085_v5  ;;  %v5982_v5 = vrot.slane %v5973_v28, %v11619_v26  ;;  %v11148_v28 = vld [vmem:[#allocation2 + $0x1b60] ss:$8 sps:$4 sm:$0xff]  }
 0xd35   :  { %6424 = vmatprep.subr.bf16.mxu0 %v11090_v51 }
 0xd38   :  { %6425 = vmatpush2.bf16.msra.mxu0 %v11088_v9 }
 0xd39   :  { %6426 = vmatprep.subr.bf16.mxu0 %v11093_v32 }
 0xd3c   :  { %6427 = vmatpush2.bf16.msra.mxu0 %v11091_v49 }
 0xd3d   :  { %6428 = vmatprep.subr.bf16.mxu0 %v11096_v1  ;;  %v11145_v1 = vld [vmem:[#allocation2 + $0x1b70] ss:$8 sps:$4 sm:$0xff]  }
 0xd40   :  { %6429 = vmatpush2.bf16.msra.mxu0 %v11094_v2  ;;  %v11147_v2 = vld [vmem:[#allocation2 + $0x1b74] ss:$8 sps:$4 sm:$0xff]  }
 0xd41   :  { %6907 = vmatprep.subr.bf16.mxu0 %v11099_v3  ;;  %v11150_v3 = vld [vmem:[#allocation2 + $0x1b64] ss:$8 sps:$4 sm:$0xff]  }
 0xdc3   :  { %v5926_v11 = vpop.f32.mrf.mxu0 }
 0xdc4   :  { %v5927_v34 = vadd.f32 %v5926_v11, %v5725_v6 }
 0xdc5   :  { %v5928_v13 = vpop.f32.mrf.mxu0 }
 0xdc6   :  { %v5933_v10 = vmul.f32 0.2, %v5927_v34  ;;  %v5929_v58 = vadd.f32 %v5928_v13, %v5729_v8 }
 0xdc7   :  { %v5930_v14 = vpop.f32.mrf.mxu0 }
 0xdc8   :  { %v5934_v15 = vmul.f32 0.2, %v5929_v58  ;;  %v5935_v54 = vmax.f32 %v5927_v34, %v5933_v10 }
 0xdc9   :  { %v5931_v16 = vpop.f32.mrf.mxu0 }
 0xdca   :  { %v5936_v17 = vmax.f32 %v5929_v58, %v5934_v15  ;;  %v5937_v21 = vpack.c.bf16 %v5935_v54, %v5935_v54  ;;  %v11102_v54 = vld [vmem:[#allocation2 + $0x1a64] ss:$8 sps:$4 sm:$0xff]   ;;  %v11100_v16 = vld [vmem:[#allocation2 + $0x1a60] ss:$8 sps:$4 sm:$0xff]  }
 0xdcc   :  { %v5938_v19 = vpack.c.bf16 %v5936_v17, %v5936_v17  ;;  %v11105_v17 = vld [vmem:[#allocation2 + $0x1a54] ss:$8 sps:$4 sm:$0xff]  }
 0xdce   :  { %6177 = vmatprep.mubr.bf16.mxu1 %v5938_v19  ;;  %v11108_v19 = vld [vmem:[#allocation2 + $0x1a44] ss:$8 sps:$4 sm:$0xff]  }
 0xdcf   :  { %6178 = vmatmul.mubr.bf16.vlgmr.msra.gmra.mxu1 %v5937_v21  ;;  %v11111_v21 = vld [vmem:[#allocation2 + $0x1a34] ss:$8 sps:$4 sm:$0xff]  }
 0xdd0   :  { %6657 = vmatpush1.bf16.msra.mxu1 %v11001_v20  ;;  %6688 = vmatprep.mubr.bf16.mxu1 %v6449_v24  ;;  %v11106_v20 = vld [vmem:[#allocation2 + $0x1a40] ss:$8 sps:$4 sm:$0xff]   ;;  %v11114_v24 = vld [vmem:[#allocation2 + $0x1a24] ss:$8 sps:$4 sm:$0xff]  }
 0xdd1   :  { %6658 = vmatprep.subr.bf16.mxu1 %v11006_v22  ;;  %v11109_v22 = vld [vmem:[#allocation2 + $0x1a30] ss:$8 sps:$4 sm:$0xff]  }
 0xdd4   :  { %6659 = vmatpush1.bf16.msra.mxu1 %v11004_v27  ;;  %v11112_v27 = vld [vmem:[#allocation2 + $0x1a20] ss:$8 sps:$4 sm:$0xff]  }
 0xdd5   :  { %6660 = vmatprep.subr.bf16.mxu1 %v11009_v29  ;;  %v11117_v29 = vld [vmem:[#allocation2 + $0x1a14] ss:$8 sps:$4 sm:$0xff]  }
 0xdd8   :  { %6661 = vmatpush1.bf16.msra.mxu1 %v11007_v7  ;;  %v11115_v7 = vld [vmem:[#allocation2 + $0x1a10] ss:$8 sps:$4 sm:$0xff]  }
 0xdd9   :  { %6662 = vmatprep.subr.bf16.mxu1 %v11012_v30  ;;  %v11120_v30 = vld [vmem:[#allocation2 + $0x1a04] ss:$8 sps:$4 sm:$0xff]  }
 0xddc   :  { %6663 = vmatpush1.bf16.msra.mxu1 %v11010_v60  ;;  %v11118_v60 = vld [vmem:[#allocation2 + $0x1a00] ss:$8 sps:$4 sm:$0xff]  }
 0xddd   :  { %6664 = vmatprep.subr.bf16.mxu1 %v11015_v52  ;;  %v11123_v52 = vld [vmem:[#allocation2 + $0x1af4] ss:$8 sps:$4 sm:$0xff]  }
 0xde0   :  { %6665 = vmatpush1.bf16.msra.mxu1 %v11013_v31  ;;  %v11121_v31 = vld [vmem:[#allocation2 + $0x1af0] ss:$8 sps:$4 sm:$0xff]  }
 0xde1   :  { %6666 = vmatprep.subr.bf16.mxu1 %v11018_v56  ;;  %v11126_v56 = vld [vmem:[#allocation2 + $0x1ae4] ss:$8 sps:$4 sm:$0xff]  }
 0xde4   :  { %6667 = vmatpush1.bf16.msra.mxu1 %v11016_v33  ;;  %v11124_v33 = vld [vmem:[#allocation2 + $0x1ae0] ss:$8 sps:$4 sm:$0xff]  }
 0xde5   :  { %6668 = vmatprep.subr.bf16.mxu1 %v11021_v35  ;;  %v11129_v35 = vld [vmem:[#allocation2 + $0x1ad4] ss:$8 sps:$4 sm:$0xff]  }
 0xde8   :  { %6669 = vmatpush1.bf16.msra.mxu1 %v11019_v36  ;;  %v11127_v36 = vld [vmem:[#allocation2 + $0x1ad0] ss:$8 sps:$4 sm:$0xff]  }
 0xde9   :  { %6670 = vmatprep.subr.bf16.mxu1 %v11024_v37  ;;  %v11132_v37 = vld [vmem:[#allocation2 + $0x1ac4] ss:$8 sps:$4 sm:$0xff]  }
 0xdec   :  { %6671 = vmatpush1.bf16.msra.mxu1 %v11022_v38  ;;  %v11130_v38 = vld [vmem:[#allocation2 + $0x1ac0] ss:$8 sps:$4 sm:$0xff]  }
 0xded   :  { %6672 = vmatprep.subr.bf16.mxu1 %v11027_v39  ;;  %v11135_v39 = vld [vmem:[#allocation2 + $0x1ab4] ss:$8 sps:$4 sm:$0xff]  }
 0xdf0   :  { %6673 = vmatpush2.bf16.msra.mxu1 %v11025_v40  ;;  %v11133_v40 = vld [vmem:[#allocation2 + $0x1ab0] ss:$8 sps:$4 sm:$0xff]  }
 0xdf1   :  { %6674 = vmatprep.subr.bf16.mxu1 %v11030_v41  ;;  %v11138_v41 = vld [vmem:[#allocation2 + $0x1aa4] ss:$8 sps:$4 sm:$0xff]  }
 0xdf4   :  { %6675 = vmatpush2.bf16.msra.mxu1 %v11028_v42  ;;  %v6484_v42 = vld [vmem:[#allocation4 + $0x32] sm:$0x3] }
 0xdf5   :  { %6676 = vmatprep.subr.bf16.mxu1 %v11033_v43  ;;  %v11136_v43 = vld [vmem:[#allocation2 + $0x1aa0] ss:$8 sps:$4 sm:$0xff]  }
 0xdf8   :  { %6677 = vmatpush2.bf16.msra.mxu1 %v11031_v44  ;;  %v6489_v44 = vrot.slane %v6484_v42, %v11617_v25 }
 0xdf9   :  { %6678 = vmatprep.subr.bf16.mxu1 %v11036_v45  ;;  %v11141_v45 = vld [vmem:[#allocation2 + $0x1a94] ss:$8 sps:$4 sm:$0xff]  }
 0xdfc   :  { %6679 = vmatpush2.bf16.msra.mxu1 %v11034_v46  ;;  %v6493_v46 = vrot.slane %v6484_v42, %v11619_v26  ;;  %v11213_v42 = vld [vmem:[#allocation2 + $0x1c14] ss:$8 sps:$4 sm:$0xff]  }
 0xdfd   :  { %6680 = vmatprep.subr.bf16.mxu1 %v11039_v47 }
 0xe00   :  { %6681 = vmatpush2.bf16.msra.mxu1 %v11037_v48  ;;  %v11139_v48 = vld [vmem:[#allocation2 + $0x1a90] ss:$8 sps:$4 sm:$0xff]  }
 0xe01   :  { %6682 = vmatprep.subr.bf16.mxu1 %v11042_v23 }
 0xe04   :  { %6683 = vmatpush2.bf16.msra.mxu1 %v11040_v53 }
 0xe05   :  { %6684 = vmatprep.subr.bf16.mxu1 %v11045_v55  ;;  %v11144_v55 = vld [vmem:[#allocation2 + $0x1a84] ss:$8 sps:$4 sm:$0xff]  }
 0xe08   :  { %6685 = vmatpush2.bf16.msra.mxu1 %v11043_v57 }
 0xe09   :  { %6686 = vmatprep.subr.bf16.mxu1 %v11048_v59 }
 0xe0c   :  { %6687 = vmatpush2.bf16.msra.mxu1 %v11046_v62  ;;  %v11142_v62 = vld [vmem:[#allocation2 + $0x1a80] ss:$8 sps:$4 sm:$0xff]  }
 0xe0d   :  { %7158 = vmatprep.subr.bf16.mxu1 %v11147_v2 }
 0xe0f   :  { %6689 = vmatmul.mubr.bf16.vlgmr.msra.gmra.mxu1 %v6448_v0 }
 0xe10   :  { %7159 = vmatpush1.bf16.msra.mxu1 %v11145_v1 }
 0xe11   :  { %7160 = vmatprep.subr.bf16.mxu1 %v11150_v3 }
 0xe14   :  { %7161 = vmatpush1.bf16.msra.mxu1 %v11148_v28 }
 0xe8f   :  { %v6179_v51 = vpop.f32.mrf.mxu1 }
 0xe90   :  { %v6180_v50 = vadd.f32 %v6179_v51, %v5978_v4  ;;  %v11153_v4 = vld [vmem:[#allocation2 + $0x1b54] ss:$8 sps:$4 sm:$0xff]   ;;  %v11156_v51 = vld [vmem:[#allocation2 + $0x1b44] ss:$8 sps:$4 sm:$0xff]  }
 0xe91   :  { %v6181_v6 = vpop.f32.mrf.mxu1  ;;  %7162 = vmatprep.subr.bf16.mxu1 %v11153_v4 }
 0xe92   :  { %v6186_v8 = vmul.f32 0.2, %v6180_v50  ;;  %v6182_v9 = vadd.f32 %v6181_v6, %v5982_v5  ;;  %v11151_v5 = vld [vmem:[#allocation2 + $0x1b50] ss:$8 sps:$4 sm:$0xff]   ;;  %v11159_v6 = vld [vmem:[#allocation2 + $0x1b34] ss:$8 sps:$4 sm:$0xff]  }
 0xe93   :  { %v6183_v11 = vpop.f32.mrf.mxu1  ;;  %7163 = vmatpush1.bf16.msra.mxu1 %v11151_v5 }
 0xe94   :  { %v6187_v34 = vmul.f32 0.2, %v6182_v9  ;;  %v6188_v13 = vmax.f32 %v6180_v50, %v6186_v8  ;;  %v11154_v50 = vld [vmem:[#allocation2 + $0x1b40] ss:$8 sps:$4 sm:$0xff]   ;;  %7164 = vmatprep.subr.bf16.mxu1 %v11156_v51  ;;  %v11157_v8 = vld [vmem:[#allocation2 + $0x1b30] ss:$8 sps:$4 sm:$0xff]  }
 0xe95   :  { %v6184_v10 = vpop.f32.mrf.mxu1  ;;  %v11160_v11 = vld [vmem:[#allocation2 + $0x1b20] ss:$8 sps:$4 sm:$0xff]  }
 0xe96   :  { %v6189_v58 = vmax.f32 %v6182_v9, %v6187_v34  ;;  %v6190_v15 = vpack.c.bf16 %v6188_v13, %v6188_v13  ;;  %v11162_v9 = vld [vmem:[#allocation2 + $0x1b24] ss:$8 sps:$4 sm:$0xff]   ;;  %v11165_v34 = vld [vmem:[#allocation2 + $0x1b14] ss:$8 sps:$4 sm:$0xff]   ;;  %v11163_v13 = vld [vmem:[#allocation2 + $0x1b10] ss:$8 sps:$4 sm:$0xff]  }
 0xe97   :  { %7165 = vmatpush1.bf16.msra.mxu1 %v11154_v50  ;;  %v11168_v10 = vld [vmem:[#allocation2 + $0x1b04] ss:$8 sps:$4 sm:$0xff]   ;;  %v6735_v50 = vld [vmem:[#allocation4 + $0x34] sm:$0x3] }
 0xe98   :  { %v6191_v14 = vpack.c.bf16 %v6189_v58, %v6189_v58  ;;  %7166 = vmatprep.subr.bf16.mxu1 %v11159_v6  ;;  %v11166_v58 = vld [vmem:[#allocation2 + $0x1b00] ss:$8 sps:$4 sm:$0xff]   ;;  %v6740_v6 = vrot.slane %v6735_v50, %v11617_v25 }
 0xe9a   :  { %6430 = vmatprep.mubr.bf16.mxu0 %v6191_v14  ;;  %v11171_v14 = vld [vmem:[#allocation2 + $0x1bf4] ss:$8 sps:$4 sm:$0xff]  }
 0xe9b   :  { %6431 = vmatmul.mubr.bf16.vlgmr.msra.gmra.mxu0 %v6190_v15  ;;  %7167 = vmatpush1.bf16.msra.mxu1 %v11157_v8  ;;  %v11174_v15 = vld [vmem:[#allocation2 + $0x1be4] ss:$8 sps:$4 sm:$0xff]   ;;  %v6744_v8 = vrot.slane %v6735_v50, %v11619_v26  ;;  %v11289_v50 = vld [vmem:[#allocation2 + $0x1e70] ss:$8 sps:$4 sm:$0xff]  }
 0xe9c   :  { %6908 = vmatpush1.bf16.msra.mxu0 %v11097_v12  ;;  %7168 = vmatprep.subr.bf16.mxu1 %v11162_v9  ;;  %v11169_v12 = vld [vmem:[#allocation2 + $0x1bf0] ss:$8 sps:$4 sm:$0xff]  }
 0xe9d   :  { %6909 = vmatprep.subr.bf16.mxu0 %v11102_v54  ;;  %v11172_v54 = vld [vmem:[#allocation2 + $0x1be0] ss:$8 sps:$4 sm:$0xff]  }
 0xe9f   :  { %7169 = vmatpush1.bf16.msra.mxu1 %v11160_v11 }
 0xea0   :  { %6910 = vmatpush1.bf16.msra.mxu0 %v11100_v16  ;;  %7170 = vmatprep.subr.bf16.mxu1 %v11165_v34  ;;  %v11177_v16 = vld [vmem:[#allocation2 + $0x1bd4] ss:$8 sps:$4 sm:$0xff]  }
 0xea1   :  { %6911 = vmatprep.subr.bf16.mxu0 %v11105_v17  ;;  %v11175_v17 = vld [vmem:[#allocation2 + $0x1bd0] ss:$8 sps:$4 sm:$0xff]  }
 0xea3   :  { %7171 = vmatpush1.bf16.msra.mxu1 %v11163_v13 }
 0xea4   :  { %6912 = vmatpush1.bf16.msra.mxu0 %v11103_v18  ;;  %7172 = vmatprep.subr.bf16.mxu1 %v11168_v10  ;;  %v11180_v18 = vld [vmem:[#allocation2 + $0x1bc4] ss:$8 sps:$4 sm:$0xff]  }
 0xea5   :  { %6913 = vmatprep.subr.bf16.mxu0 %v11108_v19  ;;  %v11178_v19 = vld [vmem:[#allocation2 + $0x1bc0] ss:$8 sps:$4 sm:$0xff]  }
 0xea7   :  { %7173 = vmatpush1.bf16.msra.mxu1 %v11166_v58 }
 0xea8   :  { %6914 = vmatpush1.bf16.msra.mxu0 %v11106_v20  ;;  %7174 = vmatprep.subr.bf16.mxu1 %v11171_v14  ;;  %v11183_v20 = vld [vmem:[#allocation2 + $0x1bb4] ss:$8 sps:$4 sm:$0xff]  }
 0xea9   :  { %6915 = vmatprep.subr.bf16.mxu0 %v11111_v21  ;;  %v11181_v21 = vld [vmem:[#allocation2 + $0x1bb0] ss:$8 sps:$4 sm:$0xff]  }
 0xeab   :  { %7175 = vmatpush2.bf16.msra.mxu1 %v11169_v12 }
 0xeac   :  { %6916 = vmatpush1.bf16.msra.mxu0 %v11109_v22  ;;  %7176 = vmatprep.subr.bf16.mxu1 %v11174_v15  ;;  %v11186_v22 = vld [vmem:[#allocation2 + $0x1ba4] ss:$8 sps:$4 sm:$0xff]  }
 0xead   :  { %6917 = vmatprep.subr.bf16.mxu0 %v11114_v24  ;;  %v11184_v24 = vld [vmem:[#allocation2 + $0x1ba0] ss:$8 sps:$4 sm:$0xff]  }
 0xeaf   :  { %7177 = vmatpush2.bf16.msra.mxu1 %v11172_v54 }
 0xeb0   :  { %6918 = vmatpush1.bf16.msra.mxu0 %v11112_v27  ;;  %7178 = vmatprep.subr.bf16.mxu1 %v11177_v16  ;;  %v11189_v27 = vld [vmem:[#allocation2 + $0x1b94] ss:$8 sps:$4 sm:$0xff]  }
 0xeb1   :  { %6919 = vmatprep.subr.bf16.mxu0 %v11117_v29  ;;  %v11187_v29 = vld [vmem:[#allocation2 + $0x1b90] ss:$8 sps:$4 sm:$0xff]   ;;  %v11237_v16 = vld [vmem:[#allocation2 + $0x1c94] ss:$8 sps:$4 sm:$0xff]  }
 0xeb3   :  { %7179 = vmatpush2.bf16.msra.mxu1 %v11175_v17  ;;  %v11235_v17 = vld [vmem:[#allocation2 + $0x1c90] ss:$8 sps:$4 sm:$0xff]  }
 0xeb4   :  { %6920 = vmatpush1.bf16.msra.mxu0 %v11115_v7  ;;  %7180 = vmatprep.subr.bf16.mxu1 %v11180_v18  ;;  %v11192_v7 = vld [vmem:[#allocation2 + $0x1b84] ss:$8 sps:$4 sm:$0xff]  }
 0xeb5   :  { %6921 = vmatprep.subr.bf16.mxu0 %v11120_v30  ;;  %v11190_v30 = vld [vmem:[#allocation2 + $0x1b80] ss:$8 sps:$4 sm:$0xff]   ;;  %v11240_v18 = vld [vmem:[#allocation2 + $0x1c84] ss:$8 sps:$4 sm:$0xff]  }
 0xeb7   :  { %7181 = vmatpush2.bf16.msra.mxu1 %v11178_v19  ;;  %v11238_v19 = vld [vmem:[#allocation2 + $0x1c80] ss:$8 sps:$4 sm:$0xff]  }
 0xeb8   :  { %6922 = vmatpush1.bf16.msra.mxu0 %v11118_v60  ;;  %7182 = vmatprep.subr.bf16.mxu1 %v11183_v20  ;;  %v11193_v60 = vld [vmem:[#allocation2 + $0x1c70] ss:$8 sps:$4 sm:$0xff]  }
 0xeb9   :  { %6923 = vmatprep.subr.bf16.mxu0 %v11123_v52  ;;  %v11195_v52 = vld [vmem:[#allocation2 + $0x1c74] ss:$8 sps:$4 sm:$0xff]   ;;  %v11241_v20 = vld [vmem:[#allocation2 + $0x1d70] ss:$8 sps:$4 sm:$0xff]  }
 0xebb   :  { %7183 = vmatpush2.bf16.msra.mxu1 %v11181_v21  ;;  %v11243_v21 = vld [vmem:[#allocation2 + $0x1d74] ss:$8 sps:$4 sm:$0xff]  }
 0xebc   :  { %6924 = vmatpush2.bf16.msra.mxu0 %v11121_v31  ;;  %7184 = vmatprep.subr.bf16.mxu1 %v11186_v22  ;;  %v11198_v31 = vld [vmem:[#allocation2 + $0x1c64] ss:$8 sps:$4 sm:$0xff]  }
 0xebd   :  { %6925 = vmatprep.subr.bf16.mxu0 %v11126_v56  ;;  %v11196_v56 = vld [vmem:[#allocation2 + $0x1c60] ss:$8 sps:$4 sm:$0xff]   ;;  %v11246_v22 = vld [vmem:[#allocation2 + $0x1d64] ss:$8 sps:$4 sm:$0xff]  }
 0xebf   :  { %7185 = vmatpush2.bf16.msra.mxu1 %v11184_v24  ;;  %v11244_v24 = vld [vmem:[#allocation2 + $0x1d60] ss:$8 sps:$4 sm:$0xff]  }
 0xec0   :  { %6926 = vmatpush2.bf16.msra.mxu0 %v11124_v33  ;;  %7186 = vmatprep.subr.bf16.mxu1 %v11189_v27  ;;  %v11201_v33 = vld [vmem:[#allocation2 + $0x1c54] ss:$8 sps:$4 sm:$0xff]  }
 0xec1   :  { %6927 = vmatprep.subr.bf16.mxu0 %v11129_v35  ;;  %v11199_v35 = vld [vmem:[#allocation2 + $0x1c50] ss:$8 sps:$4 sm:$0xff]   ;;  %v11249_v27 = vld [vmem:[#allocation2 + $0x1d54] ss:$8 sps:$4 sm:$0xff]  }
 0xec3   :  { %7187 = vmatpush2.bf16.msra.mxu1 %v11187_v29  ;;  %v11247_v29 = vld [vmem:[#allocation2 + $0x1d50] ss:$8 sps:$4 sm:$0xff]  }
 0xec4   :  { %6928 = vmatpush2.bf16.msra.mxu0 %v11127_v36  ;;  %7188 = vmatprep.subr.bf16.mxu1 %v11192_v7  ;;  %v11204_v36 = vld [vmem:[#allocation2 + $0x1c44] ss:$8 sps:$4 sm:$0xff]  }
 0xec5   :  { %6929 = vmatprep.subr.bf16.mxu0 %v11132_v37  ;;  %v11202_v37 = vld [vmem:[#allocation2 + $0x1c40] ss:$8 sps:$4 sm:$0xff]   ;;  %v11252_v7 = vld [vmem:[#allocation2 + $0x1d44] ss:$8 sps:$4 sm:$0xff]  }
 0xec7   :  { %7189 = vmatpush2.bf16.msra.mxu1 %v11190_v30  ;;  %v11250_v30 = vld [vmem:[#allocation2 + $0x1d40] ss:$8 sps:$4 sm:$0xff]  }
 0xec8   :  { %6930 = vmatpush2.bf16.msra.mxu0 %v11130_v38  ;;  %v11207_v38 = vld [vmem:[#allocation2 + $0x1c34] ss:$8 sps:$4 sm:$0xff]   ;;  %7660 = vmatprep.subr.bf16.mxu1 %v11243_v21  ;;  %v11318_v21 = vld [vmem:[#allocation2 + $0x1ee4] ss:$8 sps:$4 sm:$0xff]  }
 0xec9   :  { %6931 = vmatprep.subr.bf16.mxu0 %v11135_v39  ;;  %v11205_v39 = vld [vmem:[#allocation2 + $0x1c30] ss:$8 sps:$4 sm:$0xff]  }
 0xecc   :  { %6932 = vmatpush2.bf16.msra.mxu0 %v11133_v40  ;;  %v11210_v40 = vld [vmem:[#allocation2 + $0x1c24] ss:$8 sps:$4 sm:$0xff]  }
 0xecd   :  { %6933 = vmatprep.subr.bf16.mxu0 %v11138_v41  ;;  %v11208_v41 = vld [vmem:[#allocation2 + $0x1c20] ss:$8 sps:$4 sm:$0xff]  }
 0xecf   :  { %v6690_v47 = vpop.f32.mrf.mxu1 }
 0xed0   :  { %6934 = vmatpush2.bf16.msra.mxu0 %v11136_v43  ;;  %v6691_v23 = vadd.f32 %v6690_v47, %v6489_v44  ;;  %v11211_v43 = vld [vmem:[#allocation2 + $0x1c10] ss:$8 sps:$4 sm:$0xff]   ;;  %v11216_v44 = vld [vmem:[#allocation2 + $0x1c04] ss:$8 sps:$4 sm:$0xff]  }
 0xed1   :  { %v6692_v53 = vpop.f32.mrf.mxu1  ;;  %6935 = vmatprep.subr.bf16.mxu0 %v11141_v45  ;;  %v11214_v45 = vld [vmem:[#allocation2 + $0x1c00] ss:$8 sps:$4 sm:$0xff]   ;;  %v11217_v47 = vld [vmem:[#allocation2 + $0x1cf0] ss:$8 sps:$4 sm:$0xff]  }
 0xed2   :  { %v6693_v57 = vadd.f32 %v6692_v53, %v6493_v46  ;;  %v6697_v63 = vmax.f32 %v6691_v23, 0.0  ;;  %v11219_v46 = vld [vmem:[#allocation2 + $0x1cf4] ss:$8 sps:$4 sm:$0xff]   ;;  %v11220_v23 = vld [vmem:[#allocation2 + $0x1ce0] ss:$8 sps:$4 sm:$0xff]  }
 0xed3   :  { %v6694_v59 = vpop.f32.mrf.mxu1  ;;  %v11225_v53 = vld [vmem:[#allocation2 + $0x1cd4] ss:$8 sps:$4 sm:$0xff]  }
 0xed4   :  { %v6698_v61 = vmax.f32 %v6693_v57, 0.0  ;;  %6936 = vmatpush2.bf16.msra.mxu0 %v11139_v48  ;;  %v6699_v49 = vpack.c.bf16 %v6697_v63, %v6697_v63  ;;  %v11222_v48 = vld [vmem:[#allocation2 + $0x1ce4] ss:$8 sps:$4 sm:$0xff]   ;;  %v11226_v59 = vld [vmem:[#allocation2 + $0x1cc0] ss:$8 sps:$4 sm:$0xff]  }
 0xed5   :  { %v6695_v0 = vpop.f32.mrf.mxu1  ;;  %6937 = vmatprep.subr.bf16.mxu0 %v11144_v55  ;;  %v11223_v55 = vld [vmem:[#allocation2 + $0x1cd0] ss:$8 sps:$4 sm:$0xff]   ;;  %v11228_v57 = vld [vmem:[#allocation2 + $0x1cc4] ss:$8 sps:$4 sm:$0xff]  }
 0xed6   :  { %v6700_v32 = vpack.c.bf16 %v6698_v61, %v6698_v61  ;;  %v11231_v61 = vld [vmem:[#allocation2 + $0x1cb4] ss:$8 sps:$4 sm:$0xff]   ;;  %v6226_v63 = vld [vmem:[#allocation4 + $0x30] sm:$0x3]  ;;  %v11234_v0 = vld [vmem:[#allocation2 + $0x1ca4] ss:$8 sps:$4 sm:$0xff]  }
 0xed7   :  { %v6235_v1 = vrot.slane %v6226_v63, %v11619_v26 }
 0xed8   :  { %6938 = vmatpush2.bf16.msra.mxu0 %v11142_v62  ;;  %6939 = vmatprep.mubr.bf16.mxu0 %v6700_v32  ;;  %v11229_v62 = vld [vmem:[#allocation2 + $0x1cb0] ss:$8 sps:$4 sm:$0xff]   ;;  %v6231_v32 = vrot.slane %v6226_v63, %v11617_v25 }
 0xed9   :  { %7409 = vmatprep.subr.bf16.mxu0 %v11195_v52  ;;  %v11253_v52 = vld [vmem:[#allocation2 + $0x1d30] ss:$8 sps:$4 sm:$0xff]  }
 0xedb   :  { %6940 = vmatmul.mubr.bf16.vlgmr.msra.gmra.mxu0 %v6699_v49  ;;  %v11232_v49 = vld [vmem:[#allocation2 + $0x1ca0] ss:$8 sps:$4 sm:$0xff]  }
 0xedc   :  { %7410 = vmatpush1.bf16.msra.mxu0 %v11193_v60  ;;  %v11255_v60 = vld [vmem:[#allocation2 + $0x1d34] ss:$8 sps:$4 sm:$0xff]  }
 0xedd   :  { %7411 = vmatprep.subr.bf16.mxu0 %v11198_v31  ;;  %v11258_v31 = vld [vmem:[#allocation2 + $0x1d24] ss:$8 sps:$4 sm:$0xff]  }
 0xee0   :  { %7412 = vmatpush1.bf16.msra.mxu0 %v11196_v56  ;;  %v11256_v56 = vld [vmem:[#allocation2 + $0x1d20] ss:$8 sps:$4 sm:$0xff]  }
 0xee1   :  { %7413 = vmatprep.subr.bf16.mxu0 %v11201_v33  ;;  %v11261_v33 = vld [vmem:[#allocation2 + $0x1d14] ss:$8 sps:$4 sm:$0xff]  }
 0xee4   :  { %7414 = vmatpush1.bf16.msra.mxu0 %v11199_v35  ;;  %v11259_v35 = vld [vmem:[#allocation2 + $0x1d10] ss:$8 sps:$4 sm:$0xff]  }
 0xee5   :  { %7415 = vmatprep.subr.bf16.mxu0 %v11204_v36  ;;  %v11264_v36 = vld [vmem:[#allocation2 + $0x1d04] ss:$8 sps:$4 sm:$0xff]  }
 0xee8   :  { %7416 = vmatpush1.bf16.msra.mxu0 %v11202_v37  ;;  %v11262_v37 = vld [vmem:[#allocation2 + $0x1d00] ss:$8 sps:$4 sm:$0xff]  }
 0xee9   :  { %7417 = vmatprep.subr.bf16.mxu0 %v11207_v38  ;;  %v11267_v38 = vld [vmem:[#allocation2 + $0x1df4] ss:$8 sps:$4 sm:$0xff]  }
 0xeec   :  { %7418 = vmatpush1.bf16.msra.mxu0 %v11205_v39  ;;  %v11265_v39 = vld [vmem:[#allocation2 + $0x1df0] ss:$8 sps:$4 sm:$0xff]  }
 0xeed   :  { %7419 = vmatprep.subr.bf16.mxu0 %v11210_v40  ;;  %v11270_v40 = vld [vmem:[#allocation2 + $0x1de4] ss:$8 sps:$4 sm:$0xff]  }
 0xef0   :  { %7420 = vmatpush1.bf16.msra.mxu0 %v11208_v41  ;;  %v11268_v41 = vld [vmem:[#allocation2 + $0x1de0] ss:$8 sps:$4 sm:$0xff]  }
 0xef1   :  { %7421 = vmatprep.subr.bf16.mxu0 %v11213_v42  ;;  %v11273_v42 = vld [vmem:[#allocation2 + $0x1dd4] ss:$8 sps:$4 sm:$0xff]  }
 0xef4   :  { %7422 = vmatpush1.bf16.msra.mxu0 %v11211_v43  ;;  %v11271_v43 = vld [vmem:[#allocation2 + $0x1dd0] ss:$8 sps:$4 sm:$0xff]  }
 0xef5   :  { %7423 = vmatprep.subr.bf16.mxu0 %v11216_v44  ;;  %v11276_v44 = vld [vmem:[#allocation2 + $0x1dc4] ss:$8 sps:$4 sm:$0xff]  }
 0xef8   :  { %7424 = vmatpush1.bf16.msra.mxu0 %v11214_v45  ;;  %v11274_v45 = vld [vmem:[#allocation2 + $0x1dc0] ss:$8 sps:$4 sm:$0xff]  }
 0xef9   :  { %7425 = vmatprep.subr.bf16.mxu0 %v11219_v46  ;;  %v11279_v46 = vld [vmem:[#allocation2 + $0x1db4] ss:$8 sps:$4 sm:$0xff]  }
 0xefc   :  { %7426 = vmatpush2.bf16.msra.mxu0 %v11217_v47  ;;  %v11277_v47 = vld [vmem:[#allocation2 + $0x1db0] ss:$8 sps:$4 sm:$0xff]  }
 0xefd   :  { %7427 = vmatprep.subr.bf16.mxu0 %v11222_v48  ;;  %v11282_v48 = vld [vmem:[#allocation2 + $0x1da4] ss:$8 sps:$4 sm:$0xff]  }
 0xf00   :  { %7428 = vmatpush2.bf16.msra.mxu0 %v11220_v23  ;;  %v11280_v23 = vld [vmem:[#allocation2 + $0x1da0] ss:$8 sps:$4 sm:$0xff]  }
 0xf01   :  { %7429 = vmatprep.subr.bf16.mxu0 %v11225_v53  ;;  %v6986_v53 = vld [vmem:[#allocation4 + $0x36] sm:$0x3] }
 0xf04   :  { %7430 = vmatpush2.bf16.msra.mxu0 %v11223_v55  ;;  %v6991_v55 = vrot.slane %v6986_v53, %v11617_v25 }
 0xf05   :  { %7431 = vmatprep.subr.bf16.mxu0 %v11228_v57  ;;  %v6995_v57 = vrot.slane %v6986_v53, %v11619_v26  ;;  %v11337_v53 = vld [vmem:[#allocation2 + $0x1f70] ss:$8 sps:$4 sm:$0xff]  }
 0xf08   :  { %7432 = vmatpush2.bf16.msra.mxu0 %v11226_v59 }
 0xf09   :  { %7433 = vmatprep.subr.bf16.mxu0 %v11231_v61 }
 0xf0c   :  { %7434 = vmatpush2.bf16.msra.mxu0 %v11229_v62 }
 0xf0d   :  { %7435 = vmatprep.subr.bf16.mxu0 %v11234_v0 }
 0xf10   :  { %7436 = vmatpush2.bf16.msra.mxu0 %v11232_v49 }
 0xf11   :  { %7437 = vmatprep.subr.bf16.mxu0 %v11237_v16  ;;  %v11307_v16 = vld [vmem:[#allocation2 + $0x1e10] ss:$8 sps:$4 sm:$0xff]  }
 0xf14   :  { %7438 = vmatpush2.bf16.msra.mxu0 %v11235_v17  ;;  %v11312_v17 = vld [vmem:[#allocation2 + $0x1e04] ss:$8 sps:$4 sm:$0xff]  }
 0xf15   :  { %7439 = vmatprep.subr.bf16.mxu0 %v11240_v18  ;;  %v11310_v18 = vld [vmem:[#allocation2 + $0x1e00] ss:$8 sps:$4 sm:$0xff]  }
 0xf18   :  { %7440 = vmatpush2.bf16.msra.mxu0 %v11238_v19  ;;  %v11315_v19 = vld [vmem:[#allocation2 + $0x1ef4] ss:$8 sps:$4 sm:$0xff]  }
 0xf5b   :  { %v6432_v2 = vpop.f32.mrf.mxu0 }
 0xf5c   :  { %v6433_v3 = vadd.f32 %v6432_v2, %v6231_v32 }
 0xf5d   :  { %v6434_v28 = vpop.f32.mrf.mxu0 }
 0xf5e   :  { %8729 = vst [vmem:[%s11834_s3 + $0x20] sm:$0x3] %v6433_v3  ;;  %v6435_v4 = vadd.f32 %v6434_v28, %v6235_v1  ;;  %v11285_v28 = vld [vmem:[#allocation2 + $0x1d94] ss:$8 sps:$4 sm:$0xff]  }
 0xf5f   :  { %v6436_v5 = vpop.f32.mrf.mxu0 }
 0xf60   :  { %8730 = vst [vmem:[%s11834_s3 + $0x28] sm:$0x3] %v6435_v4  ;;  %v11283_v4 = vld [vmem:[#allocation2 + $0x1d90] ss:$8 sps:$4 sm:$0xff]   ;;  %v11288_v5 = vld [vmem:[#allocation2 + $0x1d84] ss:$8 sps:$4 sm:$0xff]  }
 0xf61   :  { %v6437_v51 = vpop.f32.mrf.mxu0 }
 0xf62   :  { %v11286_v51 = vld [vmem:[#allocation2 + $0x1d80] ss:$8 sps:$4 sm:$0xff]  }
 0xf9b   :  { %v6941_v9 = vpop.f32.mrf.mxu0 }
 0xf9c   :  { %v6942_v11 = vadd.f32 %v6941_v9, %v6740_v6  ;;  %v11291_v6 = vld [vmem:[#allocation2 + $0x1e74] ss:$8 sps:$4 sm:$0xff]   ;;  %v11292_v9 = vld [vmem:[#allocation2 + $0x1e60] ss:$8 sps:$4 sm:$0xff]  }
 0xf9d   :  { %v6943_v34 = vpop.f32.mrf.mxu0  ;;  %7909 = vmatprep.subr.bf16.mxu0 %v11291_v6  ;;  %v11366_v6 = vld [vmem:[#allocation2 + $0x1fe4] ss:$8 sps:$4 sm:$0xff]  }
 0xf9e   :  { %v6944_v13 = vadd.f32 %v6943_v34, %v6744_v8  ;;  %v6948_v10 = vmax.f32 %v6942_v11, 0.0  ;;  %v11294_v8 = vld [vmem:[#allocation2 + $0x1e64] ss:$8 sps:$4 sm:$0xff]   ;;  %v11297_v11 = vld [vmem:[#allocation2 + $0x1e54] ss:$8 sps:$4 sm:$0xff]  }
 0xf9f   :  { %v6945_v58 = vpop.f32.mrf.mxu0  ;;  %v11295_v34 = vld [vmem:[#allocation2 + $0x1e50] ss:$8 sps:$4 sm:$0xff]  }
 0xfa0   :  { %v6949_v14 = vmax.f32 %v6944_v13, 0.0  ;;  %v6950_v54 = vpack.c.bf16 %v6948_v10, %v6948_v10  ;;  %v11300_v13 = vld [vmem:[#allocation2 + $0x1e44] ss:$8 sps:$4 sm:$0xff]   ;;  %v11298_v10 = vld [vmem:[#allocation2 + $0x1e40] ss:$8 sps:$4 sm:$0xff]  }
 0xfa1   :  { %v6946_v12 = vpop.f32.mrf.mxu0  ;;  %v11303_v58 = vld [vmem:[#allocation2 + $0x1e34] ss:$8 sps:$4 sm:$0xff]  }
 0xfa2   :  { %v6951_v15 = vpack.c.bf16 %v6949_v14, %v6949_v14  ;;  %v11301_v14 = vld [vmem:[#allocation2 + $0x1e30] ss:$8 sps:$4 sm:$0xff]   ;;  %v11306_v12 = vld [vmem:[#allocation2 + $0x1e24] ss:$8 sps:$4 sm:$0xff]  }
 0xfa4   :  { %7190 = vmatprep.mubr.bf16.mxu1 %v6951_v15  ;;  %v11304_v15 = vld [vmem:[#allocation2 + $0x1e20] ss:$8 sps:$4 sm:$0xff]  }
 0xfa5   :  { %7191 = vmatmul.mubr.bf16.vlgmr.msra.gmra.mxu1 %v6950_v54  ;;  %v11309_v54 = vld [vmem:[#allocation2 + $0x1e14] ss:$8 sps:$4 sm:$0xff]  }
 0xfa6   :  { %7661 = vmatpush1.bf16.msra.mxu1 %v11241_v20  ;;  %v11313_v20 = vld [vmem:[#allocation2 + $0x1ef0] ss:$8 sps:$4 sm:$0xff]  }
 0xfa7   :  { %7662 = vmatprep.subr.bf16.mxu1 %v11246_v22  ;;  %v11316_v22 = vld [vmem:[#allocation2 + $0x1ee0] ss:$8 sps:$4 sm:$0xff]  }
 0xfaa   :  { %7663 = vmatpush1.bf16.msra.mxu1 %v11244_v24  ;;  %v11321_v24 = vld [vmem:[#allocation2 + $0x1ed4] ss:$8 sps:$4 sm:$0xff]  }
 0xfab   :  { %7664 = vmatprep.subr.bf16.mxu1 %v11249_v27  ;;  %v11319_v27 = vld [vmem:[#allocation2 + $0x1ed0] ss:$8 sps:$4 sm:$0xff]  }
 0xfae   :  { %7665 = vmatpush1.bf16.msra.mxu1 %v11247_v29  ;;  %v11324_v29 = vld [vmem:[#allocation2 + $0x1ec4] ss:$8 sps:$4 sm:$0xff]  }
 0xfaf   :  { %7666 = vmatprep.subr.bf16.mxu1 %v11252_v7  ;;  %v11322_v7 = vld [vmem:[#allocation2 + $0x1ec0] ss:$8 sps:$4 sm:$0xff]  }
 0xfb2   :  { %7667 = vmatpush1.bf16.msra.mxu1 %v11250_v30  ;;  %v11327_v30 = vld [vmem:[#allocation2 + $0x1eb4] ss:$8 sps:$4 sm:$0xff]  }
 0xfb3   :  { %7668 = vmatprep.subr.bf16.mxu1 %v11255_v60  ;;  %v11325_v60 = vld [vmem:[#allocation2 + $0x1eb0] ss:$8 sps:$4 sm:$0xff]  }
 0xfb6   :  { %7669 = vmatpush1.bf16.msra.mxu1 %v11253_v52  ;;  %v11330_v52 = vld [vmem:[#allocation2 + $0x1ea4] ss:$8 sps:$4 sm:$0xff]  }
 0xfb7   :  { %7670 = vmatprep.subr.bf16.mxu1 %v11258_v31  ;;  %v11328_v31 = vld [vmem:[#allocation2 + $0x1ea0] ss:$8 sps:$4 sm:$0xff]  }
 0xfba   :  { %7671 = vmatpush1.bf16.msra.mxu1 %v11256_v56  ;;  %v7237_v56 = vld [vmem:[#allocation4 + $0x38] sm:$0x3] }
 0xfbb   :  { %7672 = vmatprep.subr.bf16.mxu1 %v11261_v33  ;;  %v7242_v33 = vrot.slane %v7237_v56, %v11617_v25 }
 0xfbe   :  { %7673 = vmatpush1.bf16.msra.mxu1 %v11259_v35  ;;  %v7246_v35 = vrot.slane %v7237_v56, %v11619_v26  ;;  %v11385_v56 = vld [vmem:[#allocation2 + $0x2070] ss:$8 sps:$4 sm:$0xff]  }
 0xfbf   :  { %7674 = vmatprep.subr.bf16.mxu1 %v11264_v36 }
 0xfc2   :  { %7675 = vmatpush1.bf16.msra.mxu1 %v11262_v37 }
 0xfc3   :  { %7676 = vmatprep.subr.bf16.mxu1 %v11267_v38 }
 0xfc6   :  { %7677 = vmatpush2.bf16.msra.mxu1 %v11265_v39 }
 0xfc7   :  { %7678 = vmatprep.subr.bf16.mxu1 %v11270_v40 }
 0xfca   :  { %7679 = vmatpush2.bf16.msra.mxu1 %v11268_v41 }
 0xfcb   :  { %7680 = vmatprep.subr.bf16.mxu1 %v11273_v42 }
 0xfce   :  { %7681 = vmatpush2.bf16.msra.mxu1 %v11271_v43 }
 0xfcf   :  { %7682 = vmatprep.subr.bf16.mxu1 %v11276_v44 }
 0xfd2   :  { %7683 = vmatpush2.bf16.msra.mxu1 %v11274_v45 }
 0xfd3   :  { %7684 = vmatprep.subr.bf16.mxu1 %v11279_v46  ;;  %v11333_v46 = vld [vmem:[#allocation2 + $0x1e94] ss:$8 sps:$4 sm:$0xff]  }
 0xfd6   :  { %7685 = vmatpush2.bf16.msra.mxu1 %v11277_v47  ;;  %v11331_v47 = vld [vmem:[#allocation2 + $0x1e90] ss:$8 sps:$4 sm:$0xff]  }
 0xfd7   :  { %7686 = vmatprep.subr.bf16.mxu1 %v11282_v48  ;;  %v11336_v48 = vld [vmem:[#allocation2 + $0x1e84] ss:$8 sps:$4 sm:$0xff]  }
 0xfda   :  { %7687 = vmatpush2.bf16.msra.mxu1 %v11280_v23  ;;  %v11334_v23 = vld [vmem:[#allocation2 + $0x1e80] ss:$8 sps:$4 sm:$0xff]  }
 0xfdb   :  { %7688 = vmatprep.subr.bf16.mxu1 %v11285_v28  ;;  %v11355_v28 = vld [vmem:[#allocation2 + $0x1f10] ss:$8 sps:$4 sm:$0xff]  }
 0xfde   :  { %7689 = vmatpush2.bf16.msra.mxu1 %v11283_v4  ;;  %v11360_v4 = vld [vmem:[#allocation2 + $0x1f04] ss:$8 sps:$4 sm:$0xff]  }
 0xfdf   :  { %7690 = vmatprep.subr.bf16.mxu1 %v11288_v5  ;;  %v11358_v5 = vld [vmem:[#allocation2 + $0x1f00] ss:$8 sps:$4 sm:$0xff]  }
 0xfe2   :  { %7691 = vmatpush2.bf16.msra.mxu1 %v11286_v51  ;;  %v11363_v51 = vld [vmem:[#allocation2 + $0x1ff4] ss:$8 sps:$4 sm:$0xff]  }
0x1065   :  { %v7192_v59 = vpop.f32.mrf.mxu1 }
0x1066   :  { %v7193_v61 = vadd.f32 %v7192_v59, %v6991_v55  ;;  %v11339_v55 = vld [vmem:[#allocation2 + $0x1f74] ss:$8 sps:$4 sm:$0xff]   ;;  %v11340_v59 = vld [vmem:[#allocation2 + $0x1f60] ss:$8 sps:$4 sm:$0xff]  }
0x1067   :  { %v7194_v62 = vpop.f32.mrf.mxu1  ;;  %8160 = vmatprep.subr.bf16.mxu1 %v11339_v55  ;;  %v11414_v55 = vld [vmem:[#allocation2 + $0x20e4] ss:$8 sps:$4 sm:$0xff]  }
0x1068   :  { %v7195_v63 = vadd.f32 %v7194_v62, %v6995_v57  ;;  %v7199_v0 = vmax.f32 %v7193_v61, 0.0  ;;  %v11342_v57 = vld [vmem:[#allocation2 + $0x1f64] ss:$8 sps:$4 sm:$0xff]   ;;  %v11345_v61 = vld [vmem:[#allocation2 + $0x1f54] ss:$8 sps:$4 sm:$0xff]  }
0x1069   :  { %v7196_v32 = vpop.f32.mrf.mxu1  ;;  %v11343_v62 = vld [vmem:[#allocation2 + $0x1f50] ss:$8 sps:$4 sm:$0xff]  }
0x106a   :  { %v7200_v49 = vmax.f32 %v7195_v63, 0.0  ;;  %v7201_v3 = vpack.c.bf16 %v7199_v0, %v7199_v0  ;;  %v11348_v63 = vld [vmem:[#allocation2 + $0x1f44] ss:$8 sps:$4 sm:$0xff]   ;;  %v11346_v0 = vld [vmem:[#allocation2 + $0x1f40] ss:$8 sps:$4 sm:$0xff]  }
0x106b   :  { %v7197_v1 = vpop.f32.mrf.mxu1  ;;  %v11351_v32 = vld [vmem:[#allocation2 + $0x1f34] ss:$8 sps:$4 sm:$0xff]  }
0x106c   :  { %v7202_v2 = vpack.c.bf16 %v7200_v49, %v7200_v49  ;;  %v11349_v49 = vld [vmem:[#allocation2 + $0x1f30] ss:$8 sps:$4 sm:$0xff]   ;;  %v11354_v1 = vld [vmem:[#allocation2 + $0x1f24] ss:$8 sps:$4 sm:$0xff]  }
0x106e   :  { %7441 = vmatprep.mubr.bf16.mxu0 %v7202_v2  ;;  %v11352_v2 = vld [vmem:[#allocation2 + $0x1f20] ss:$8 sps:$4 sm:$0xff]  }
0x106f   :  { %7442 = vmatmul.mubr.bf16.vlgmr.msra.gmra.mxu0 %v7201_v3  ;;  %v11357_v3 = vld [vmem:[#allocation2 + $0x1f14] ss:$8 sps:$4 sm:$0xff]  }
0x1070   :  { %7910 = vmatpush1.bf16.msra.mxu0 %v11289_v50  ;;  %v11361_v50 = vld [vmem:[#allocation2 + $0x1ff0] ss:$8 sps:$4 sm:$0xff]  }
0x1071   :  { %7911 = vmatprep.subr.bf16.mxu0 %v11294_v8  ;;  %v11364_v8 = vld [vmem:[#allocation2 + $0x1fe0] ss:$8 sps:$4 sm:$0xff]  }
0x1074   :  { %7912 = vmatpush1.bf16.msra.mxu0 %v11292_v9  ;;  %v11369_v9 = vld [vmem:[#allocation2 + $0x1fd4] ss:$8 sps:$4 sm:$0xff]  }
0x1075   :  { %7913 = vmatprep.subr.bf16.mxu0 %v11297_v11  ;;  %v11367_v11 = vld [vmem:[#allocation2 + $0x1fd0] ss:$8 sps:$4 sm:$0xff]  }
0x1078   :  { %7914 = vmatpush1.bf16.msra.mxu0 %v11295_v34  ;;  %v11372_v34 = vld [vmem:[#allocation2 + $0x1fc4] ss:$8 sps:$4 sm:$0xff]  }
0x1079   :  { %7915 = vmatprep.subr.bf16.mxu0 %v11300_v13  ;;  %v11370_v13 = vld [vmem:[#allocation2 + $0x1fc0] ss:$8 sps:$4 sm:$0xff]  }
0x107c   :  { %7916 = vmatpush1.bf16.msra.mxu0 %v11298_v10  ;;  %v11375_v10 = vld [vmem:[#allocation2 + $0x1fb4] ss:$8 sps:$4 sm:$0xff]  }
0x107d   :  { %7917 = vmatprep.subr.bf16.mxu0 %v11303_v58  ;;  %v11373_v58 = vld [vmem:[#allocation2 + $0x1fb0] ss:$8 sps:$4 sm:$0xff]  }
0x1080   :  { %7918 = vmatpush1.bf16.msra.mxu0 %v11301_v14  ;;  %v11378_v14 = vld [vmem:[#allocation2 + $0x1fa4] ss:$8 sps:$4 sm:$0xff]  }
0x1081   :  { %7919 = vmatprep.subr.bf16.mxu0 %v11306_v12  ;;  %v11376_v12 = vld [vmem:[#allocation2 + $0x1fa0] ss:$8 sps:$4 sm:$0xff]  }
0x1084   :  { %7920 = vmatpush1.bf16.msra.mxu0 %v11304_v15  ;;  %v7488_v15 = vld [vmem:[#allocation4 + $0x3a] sm:$0x3] }
0x1085   :  { %7921 = vmatprep.subr.bf16.mxu0 %v11309_v54  ;;  %v7493_v54 = vrot.slane %v7488_v15, %v11617_v25 }
0x1088   :  { %7922 = vmatpush1.bf16.msra.mxu0 %v11307_v16  ;;  %v7497_v16 = vrot.slane %v7488_v15, %v11619_v26  ;;  %v11433_v15 = vld [vmem:[#allocation2 + $0x2170] ss:$8 sps:$4 sm:$0xff]  }
0x1089   :  { %7923 = vmatprep.subr.bf16.mxu0 %v11312_v17 }
0x108c   :  { %7924 = vmatpush1.bf16.msra.mxu0 %v11310_v18 }
0x108d   :  { %7925 = vmatprep.subr.bf16.mxu0 %v11315_v19 }
0x1090   :  { %7926 = vmatpush2.bf16.msra.mxu0 %v11313_v20 }
0x1091   :  { %7927 = vmatprep.subr.bf16.mxu0 %v11318_v21 }
0x1094   :  { %7928 = vmatpush2.bf16.msra.mxu0 %v11316_v22 }
0x1095   :  { %7929 = vmatprep.subr.bf16.mxu0 %v11321_v24 }
0x1098   :  { %7930 = vmatpush2.bf16.msra.mxu0 %v11319_v27 }
0x1099   :  { %7931 = vmatprep.subr.bf16.mxu0 %v11324_v29 }
0x109c   :  { %7932 = vmatpush2.bf16.msra.mxu0 %v11322_v7 }
0x109d   :  { %7933 = vmatprep.subr.bf16.mxu0 %v11327_v30  ;;  %v11381_v30 = vld [vmem:[#allocation2 + $0x1f94] ss:$8 sps:$4 sm:$0xff]  }
0x10a0   :  { %7934 = vmatpush2.bf16.msra.mxu0 %v11325_v60  ;;  %v11379_v60 = vld [vmem:[#allocation2 + $0x1f90] ss:$8 sps:$4 sm:$0xff]  }
0x10a1   :  { %7935 = vmatprep.subr.bf16.mxu0 %v11330_v52  ;;  %v11384_v52 = vld [vmem:[#allocation2 + $0x1f84] ss:$8 sps:$4 sm:$0xff]  }
0x10a4   :  { %7936 = vmatpush2.bf16.msra.mxu0 %v11328_v31  ;;  %v11382_v31 = vld [vmem:[#allocation2 + $0x1f80] ss:$8 sps:$4 sm:$0xff]  }
0x10a5   :  { %7937 = vmatprep.subr.bf16.mxu0 %v11333_v46  ;;  %v11403_v46 = vld [vmem:[#allocation2 + $0x2010] ss:$8 sps:$4 sm:$0xff]  }
0x10a8   :  { %7938 = vmatpush2.bf16.msra.mxu0 %v11331_v47  ;;  %v11408_v47 = vld [vmem:[#allocation2 + $0x2004] ss:$8 sps:$4 sm:$0xff]  }
0x10a9   :  { %7939 = vmatprep.subr.bf16.mxu0 %v11336_v48  ;;  %v11406_v48 = vld [vmem:[#allocation2 + $0x2000] ss:$8 sps:$4 sm:$0xff]  }
0x10ac   :  { %7940 = vmatpush2.bf16.msra.mxu0 %v11334_v23  ;;  %v11411_v23 = vld [vmem:[#allocation2 + $0x20f4] ss:$8 sps:$4 sm:$0xff]  }
0x112f   :  { %v7443_v36 = vpop.f32.mrf.mxu0 }
0x1130   :  { %v7444_v37 = vadd.f32 %v7443_v36, %v7242_v33  ;;  %v11387_v33 = vld [vmem:[#allocation2 + $0x2074] ss:$8 sps:$4 sm:$0xff]   ;;  %v11388_v36 = vld [vmem:[#allocation2 + $0x2060] ss:$8 sps:$4 sm:$0xff]  }
0x1131   :  { %v7445_v38 = vpop.f32.mrf.mxu0  ;;  %8411 = vmatprep.subr.bf16.mxu0 %v11387_v33  ;;  %v11462_v33 = vld [vmem:[#allocation2 + $0x21e4] ss:$8 sps:$4 sm:$0xff]  }
0x1132   :  { %v7446_v39 = vadd.f32 %v7445_v38, %v7246_v35  ;;  %v7450_v40 = vmax.f32 %v7444_v37, 0.0  ;;  %v11390_v35 = vld [vmem:[#allocation2 + $0x2064] ss:$8 sps:$4 sm:$0xff]   ;;  %v11393_v37 = vld [vmem:[#allocation2 + $0x2054] ss:$8 sps:$4 sm:$0xff]  }
0x1133   :  { %v7447_v41 = vpop.f32.mrf.mxu0  ;;  %v11391_v38 = vld [vmem:[#allocation2 + $0x2050] ss:$8 sps:$4 sm:$0xff]  }
0x1134   :  { %v7451_v42 = vmax.f32 %v7446_v39, 0.0  ;;  %v7452_v45 = vpack.c.bf16 %v7450_v40, %v7450_v40  ;;  %v11396_v39 = vld [vmem:[#allocation2 + $0x2044] ss:$8 sps:$4 sm:$0xff]   ;;  %v11394_v40 = vld [vmem:[#allocation2 + $0x2040] ss:$8 sps:$4 sm:$0xff]  }
0x1135   :  { %v7448_v43 = vpop.f32.mrf.mxu0  ;;  %v11399_v41 = vld [vmem:[#allocation2 + $0x2034] ss:$8 sps:$4 sm:$0xff]  }
0x1136   :  { %v7453_v44 = vpack.c.bf16 %v7451_v42, %v7451_v42  ;;  %v11397_v42 = vld [vmem:[#allocation2 + $0x2030] ss:$8 sps:$4 sm:$0xff]   ;;  %v11402_v43 = vld [vmem:[#allocation2 + $0x2024] ss:$8 sps:$4 sm:$0xff]  }
0x1138   :  { %7692 = vmatprep.mubr.bf16.mxu1 %v7453_v44  ;;  %v11400_v44 = vld [vmem:[#allocation2 + $0x2020] ss:$8 sps:$4 sm:$0xff]  }
0x1139   :  { %7693 = vmatmul.mubr.bf16.vlgmr.msra.gmra.mxu1 %v7452_v45  ;;  %v11405_v45 = vld [vmem:[#allocation2 + $0x2014] ss:$8 sps:$4 sm:$0xff]  }
0x113a   :  { %8161 = vmatpush1.bf16.msra.mxu1 %v11337_v53  ;;  %v11409_v53 = vld [vmem:[#allocation2 + $0x20f0] ss:$8 sps:$4 sm:$0xff]  }
0x113b   :  { %8162 = vmatprep.subr.bf16.mxu1 %v11342_v57  ;;  %v11412_v57 = vld [vmem:[#allocation2 + $0x20e0] ss:$8 sps:$4 sm:$0xff]  }
0x113e   :  { %8163 = vmatpush1.bf16.msra.mxu1 %v11340_v59  ;;  %v11417_v59 = vld [vmem:[#allocation2 + $0x20d4] ss:$8 sps:$4 sm:$0xff]  }
0x113f   :  { %8164 = vmatprep.subr.bf16.mxu1 %v11345_v61  ;;  %v11415_v61 = vld [vmem:[#allocation2 + $0x20d0] ss:$8 sps:$4 sm:$0xff]  }
0x1142   :  { %8165 = vmatpush1.bf16.msra.mxu1 %v11343_v62  ;;  %v11420_v62 = vld [vmem:[#allocation2 + $0x20c4] ss:$8 sps:$4 sm:$0xff]  }
0x1143   :  { %8166 = vmatprep.subr.bf16.mxu1 %v11348_v63  ;;  %v11418_v63 = vld [vmem:[#allocation2 + $0x20c0] ss:$8 sps:$4 sm:$0xff]  }
0x1146   :  { %8167 = vmatpush1.bf16.msra.mxu1 %v11346_v0  ;;  %v11423_v0 = vld [vmem:[#allocation2 + $0x20b4] ss:$8 sps:$4 sm:$0xff]  }
0x1147   :  { %8168 = vmatprep.subr.bf16.mxu1 %v11351_v32  ;;  %v11421_v32 = vld [vmem:[#allocation2 + $0x20b0] ss:$8 sps:$4 sm:$0xff]  }
0x114a   :  { %8169 = vmatpush1.bf16.msra.mxu1 %v11349_v49  ;;  %v11426_v49 = vld [vmem:[#allocation2 + $0x20a4] ss:$8 sps:$4 sm:$0xff]  }
0x114b   :  { %8170 = vmatprep.subr.bf16.mxu1 %v11354_v1  ;;  %v11424_v1 = vld [vmem:[#allocation2 + $0x20a0] ss:$8 sps:$4 sm:$0xff]  }
0x114e   :  { %8171 = vmatpush1.bf16.msra.mxu1 %v11352_v2  ;;  %v7737_v2 = vld [vmem:[#allocation4 + $0x3c] sm:$0x3] }
0x114f   :  { %8172 = vmatprep.subr.bf16.mxu1 %v11357_v3  ;;  %v7742_v3 = vrot.slane %v7737_v2, %v11617_v25 }
0x1152   :  { %8173 = vmatpush1.bf16.msra.mxu1 %v11355_v28  ;;  %v7746_v28 = vrot.slane %v7737_v2, %v11619_v26  ;;  %v8239_v2 = vld [vmem:[#allocation4 + $0x40] sm:$0x3] }
0x1153   :  { %8174 = vmatprep.subr.bf16.mxu1 %v11360_v4 }
0x1156   :  { %8175 = vmatpush1.bf16.msra.mxu1 %v11358_v5 }
0x1157   :  { %8176 = vmatprep.subr.bf16.mxu1 %v11363_v51 }
0x115a   :  { %8177 = vmatpush2.bf16.msra.mxu1 %v11361_v50 }
0x115b   :  { %8178 = vmatprep.subr.bf16.mxu1 %v11366_v6 }
0x115e   :  { %8179 = vmatpush2.bf16.msra.mxu1 %v11364_v8 }
0x115f   :  { %8180 = vmatprep.subr.bf16.mxu1 %v11369_v9 }
0x1162   :  { %8181 = vmatpush2.bf16.msra.mxu1 %v11367_v11 }
0x1163   :  { %8182 = vmatprep.subr.bf16.mxu1 %v11372_v34 }
0x1166   :  { %8183 = vmatpush2.bf16.msra.mxu1 %v11370_v13 }
0x1167   :  { %8184 = vmatprep.subr.bf16.mxu1 %v11375_v10  ;;  %v11429_v10 = vld [vmem:[#allocation2 + $0x2094] ss:$8 sps:$4 sm:$0xff]  }
0x116a   :  { %8185 = vmatpush2.bf16.msra.mxu1 %v11373_v58  ;;  %v11427_v58 = vld [vmem:[#allocation2 + $0x2090] ss:$8 sps:$4 sm:$0xff]  }
0x116b   :  { %8186 = vmatprep.subr.bf16.mxu1 %v11378_v14  ;;  %v11432_v14 = vld [vmem:[#allocation2 + $0x2084] ss:$8 sps:$4 sm:$0xff]  }
0x116e   :  { %8187 = vmatpush2.bf16.msra.mxu1 %v11376_v12  ;;  %v11430_v12 = vld [vmem:[#allocation2 + $0x2080] ss:$8 sps:$4 sm:$0xff]  }
0x116f   :  { %8188 = vmatprep.subr.bf16.mxu1 %v11381_v30  ;;  %v11451_v30 = vld [vmem:[#allocation2 + $0x2110] ss:$8 sps:$4 sm:$0xff]  }
0x1172   :  { %8189 = vmatpush2.bf16.msra.mxu1 %v11379_v60  ;;  %v11456_v60 = vld [vmem:[#allocation2 + $0x2104] ss:$8 sps:$4 sm:$0xff]  }
0x1173   :  { %8190 = vmatprep.subr.bf16.mxu1 %v11384_v52  ;;  %v11454_v52 = vld [vmem:[#allocation2 + $0x2100] ss:$8 sps:$4 sm:$0xff]  }
0x1176   :  { %8191 = vmatpush2.bf16.msra.mxu1 %v11382_v31  ;;  %v11459_v31 = vld [vmem:[#allocation2 + $0x21f4] ss:$8 sps:$4 sm:$0xff]  }
0x11f9   :  { %v7694_v17 = vpop.f32.mrf.mxu1 }
0x11fa   :  { %v7695_v18 = vadd.f32 %v7694_v17, %v7493_v54  ;;  %v11435_v54 = vld [vmem:[#allocation2 + $0x2174] ss:$8 sps:$4 sm:$0xff]   ;;  %v11436_v17 = vld [vmem:[#allocation2 + $0x2160] ss:$8 sps:$4 sm:$0xff]  }
0x11fb   :  { %v7696_v19 = vpop.f32.mrf.mxu1  ;;  %8662 = vmatprep.subr.bf16.mxu1 %v11435_v54 }
0x11fc   :  { %v8733_v20 = vrot.slane %v7695_v18, 6  ;;  %v7697_v21 = vadd.f32 %v7696_v19, %v7497_v16  ;;  %v7701_v29 = vpack.c.bf16 %v7695_v18, %v7695_v18  ;;  %v11438_v16 = vld [vmem:[#allocation2 + $0x2164] ss:$8 sps:$4 sm:$0xff]   ;;  %v11441_v18 = vld [vmem:[#allocation2 + $0x2154] ss:$8 sps:$4 sm:$0xff]  }
0x11fd   :  { %v7698_v22 = vpop.f32.mrf.mxu1  ;;  %v11439_v19 = vld [vmem:[#allocation2 + $0x2150] ss:$8 sps:$4 sm:$0xff]  }
0x11fe   :  { %8737 = vst [vmem:[%s11834_s3 + $0x20] sm:$0x3c] %v8733_v20  ;;  %v7702_v24 = vpack.c.bf16 %v7697_v21, %v7697_v21  ;;  %v8734_v27 = vrot.slane %v7697_v21, 6  ;;  %v11444_v20 = vld [vmem:[#allocation2 + $0x2144] ss:$8 sps:$4 sm:$0xff]  }
0x11ff   :  { %v7699_v7 = vpop.f32.mrf.mxu1  ;;  %v11442_v21 = vld [vmem:[#allocation2 + $0x2140] ss:$8 sps:$4 sm:$0xff]   ;;  %v11447_v22 = vld [vmem:[#allocation2 + $0x2134] ss:$8 sps:$4 sm:$0xff]  }
0x1200   :  { %8738 = vst [vmem:[%s11834_s3 + $0x28] sm:$0x3c] %v8734_v27  ;;  %7941 = vmatprep.mubr.bf16.mxu0 %v7702_v24  ;;  %v11445_v24 = vld [vmem:[#allocation2 + $0x2130] ss:$8 sps:$4 sm:$0xff]   ;;  %v11450_v27 = vld [vmem:[#allocation2 + $0x2124] ss:$8 sps:$4 sm:$0xff]  }
0x1201   :  { %7942 = vmatmul.mubr.bf16.vlgmr.msra.gmra.mxu0 %v7701_v29  ;;  %v11448_v29 = vld [vmem:[#allocation2 + $0x2120] ss:$8 sps:$4 sm:$0xff]   ;;  %v11453_v7 = vld [vmem:[#allocation2 + $0x2114] ss:$8 sps:$4 sm:$0xff]  }
0x1202   :  { %8412 = vmatpush1.bf16.msra.mxu0 %v11385_v56  ;;  %v11457_v56 = vld [vmem:[#allocation2 + $0x21f0] ss:$8 sps:$4 sm:$0xff]  }
0x1203   :  { %8413 = vmatprep.subr.bf16.mxu0 %v11390_v35  ;;  %v11460_v35 = vld [vmem:[#allocation2 + $0x21e0] ss:$8 sps:$4 sm:$0xff]  }
0x1206   :  { %8414 = vmatpush1.bf16.msra.mxu0 %v11388_v36  ;;  %v11465_v36 = vld [vmem:[#allocation2 + $0x21d4] ss:$8 sps:$4 sm:$0xff]  }
0x1207   :  { %8415 = vmatprep.subr.bf16.mxu0 %v11393_v37  ;;  %v11463_v37 = vld [vmem:[#allocation2 + $0x21d0] ss:$8 sps:$4 sm:$0xff]  }
0x120a   :  { %8416 = vmatpush1.bf16.msra.mxu0 %v11391_v38  ;;  %v11468_v38 = vld [vmem:[#allocation2 + $0x21c4] ss:$8 sps:$4 sm:$0xff]  }
0x120b   :  { %8417 = vmatprep.subr.bf16.mxu0 %v11396_v39  ;;  %v11466_v39 = vld [vmem:[#allocation2 + $0x21c0] ss:$8 sps:$4 sm:$0xff]  }
0x120e   :  { %8418 = vmatpush1.bf16.msra.mxu0 %v11394_v40  ;;  %v11471_v40 = vld [vmem:[#allocation2 + $0x21b4] ss:$8 sps:$4 sm:$0xff]  }
0x120f   :  { %8419 = vmatprep.subr.bf16.mxu0 %v11399_v41  ;;  %v11469_v41 = vld [vmem:[#allocation2 + $0x21b0] ss:$8 sps:$4 sm:$0xff]  }
0x1212   :  { %8420 = vmatpush1.bf16.msra.mxu0 %v11397_v42  ;;  %v11474_v42 = vld [vmem:[#allocation2 + $0x21a4] ss:$8 sps:$4 sm:$0xff]  }
0x1213   :  { %8421 = vmatprep.subr.bf16.mxu0 %v11402_v43  ;;  %v11472_v43 = vld [vmem:[#allocation2 + $0x21a0] ss:$8 sps:$4 sm:$0xff]  }
0x1216   :  { %8422 = vmatpush1.bf16.msra.mxu0 %v11400_v44  ;;  %v7988_v44 = vld [vmem:[#allocation4 + $0x3e] sm:$0x3] }
0x1217   :  { %8423 = vmatprep.subr.bf16.mxu0 %v11405_v45  ;;  %v7993_v45 = vrot.slane %v7988_v44, %v11617_v25 }
0x121a   :  { %8424 = vmatpush1.bf16.msra.mxu0 %v11403_v46  ;;  %v7997_v46 = vrot.slane %v7988_v44, %v11619_v26 }
0x121b   :  { %8425 = vmatprep.subr.bf16.mxu0 %v11408_v47 }
0x121e   :  { %8426 = vmatpush1.bf16.msra.mxu0 %v11406_v48 }
0x121f   :  { %8427 = vmatprep.subr.bf16.mxu0 %v11411_v23 }
0x1222   :  { %8428 = vmatpush2.bf16.msra.mxu0 %v11409_v53 }
0x1223   :  { %8429 = vmatprep.subr.bf16.mxu0 %v11414_v55 }
0x1226   :  { %8430 = vmatpush2.bf16.msra.mxu0 %v11412_v57 }
0x1227   :  { %8431 = vmatprep.subr.bf16.mxu0 %v11417_v59 }
0x122a   :  { %8432 = vmatpush2.bf16.msra.mxu0 %v11415_v61 }
0x122b   :  { %8433 = vmatprep.subr.bf16.mxu0 %v11420_v62 }
0x122e   :  { %8434 = vmatpush2.bf16.msra.mxu0 %v11418_v63 }
0x122f   :  { %8435 = vmatprep.subr.bf16.mxu0 %v11423_v0  ;;  %v11477_v0 = vld [vmem:[#allocation2 + $0x2194] ss:$8 sps:$4 sm:$0xff]  }
0x1232   :  { %8436 = vmatpush2.bf16.msra.mxu0 %v11421_v32  ;;  %v11475_v32 = vld [vmem:[#allocation2 + $0x2190] ss:$8 sps:$4 sm:$0xff]  }
0x1233   :  { %8437 = vmatprep.subr.bf16.mxu0 %v11426_v49  ;;  %v11480_v49 = vld [vmem:[#allocation2 + $0x2184] ss:$8 sps:$4 sm:$0xff]  }
0x1236   :  { %8438 = vmatpush2.bf16.msra.mxu0 %v11424_v1  ;;  %v11478_v1 = vld [vmem:[#allocation2 + $0x2180] ss:$8 sps:$4 sm:$0xff]  }
0x1237   :  { %8439 = vmatprep.subr.bf16.mxu0 %v11429_v10  ;;  %v8490_v10 = vld [vmem:[#allocation4 + $0x42] sm:$0x3] }
0x123a   :  { %8440 = vmatpush2.bf16.msra.mxu0 %v11427_v58  ;;  %v8495_v58 = vrot.slane %v8490_v10, %v11617_v25 }
0x123b   :  { %8441 = vmatprep.subr.bf16.mxu0 %v11432_v14  ;;  %v8499_v14 = vrot.slane %v8490_v10, %v11619_v26 }
0x123e   :  { %8442 = vmatpush2.bf16.msra.mxu0 %v11430_v12 }
0x12c1   :  { %v7943_v4 = vpop.f32.mrf.mxu0 }
0x12c2   :  { %v7944_v5 = vadd.f32 %v7943_v4, %v7742_v3  ;;  %v8244_v3 = vrot.slane %v8239_v2, %v11617_v25 }
0x12c3   :  { %v7945_v51 = vpop.f32.mrf.mxu0 }
0x12c4   :  { %v7946_v50 = vadd.f32 %v7945_v51, %v7746_v28  ;;  %v7950_v6 = vmax.f32 %v7944_v5, 0.0  ;;  %v8248_v28 = vrot.slane %v8239_v2, %v11619_v26 }
0x12c5   :  { %v7947_v8 = vpop.f32.mrf.mxu0 }
0x12c6   :  { %v7951_v9 = vmax.f32 %v7946_v50, 0.0  ;;  %v7952_v13 = vpack.c.bf16 %v7950_v6, %v7950_v6 }
0x12c7   :  { %v7948_v11 = vpop.f32.mrf.mxu0 }
0x12c8   :  { %v7953_v34 = vpack.c.bf16 %v7951_v9, %v7951_v9 }
0x12ca   :  { %8192 = vmatprep.mubr.bf16.mxu1 %v7953_v34 }
0x12cb   :  { %8193 = vmatmul.mubr.bf16.vlgmr.msra.gmra.mxu1 %v7952_v13 }
0x12cc   :  { %8663 = vmatpush1.bf16.msra.mxu1 %v11433_v15 }
0x12cd   :  { %8664 = vmatprep.subr.bf16.mxu1 %v11438_v16 }
0x12d0   :  { %8665 = vmatpush1.bf16.msra.mxu1 %v11436_v17 }
0x12d1   :  { %8666 = vmatprep.subr.bf16.mxu1 %v11441_v18 }
0x12d4   :  { %8667 = vmatpush1.bf16.msra.mxu1 %v11439_v19 }
0x12d5   :  { %8668 = vmatprep.subr.bf16.mxu1 %v11444_v20 }
0x12d8   :  { %8669 = vmatpush1.bf16.msra.mxu1 %v11442_v21 }
0x12d9   :  { %8670 = vmatprep.subr.bf16.mxu1 %v11447_v22 }
0x12dc   :  { %8671 = vmatpush1.bf16.msra.mxu1 %v11445_v24 }
0x12dd   :  { %8672 = vmatprep.subr.bf16.mxu1 %v11450_v27 }
0x12e0   :  { %8673 = vmatpush1.bf16.msra.mxu1 %v11448_v29 }
0x12e1   :  { %8674 = vmatprep.subr.bf16.mxu1 %v11453_v7 }
0x12e4   :  { %8675 = vmatpush1.bf16.msra.mxu1 %v11451_v30 }
0x12e5   :  { %8676 = vmatprep.subr.bf16.mxu1 %v11456_v60 }
0x12e8   :  { %8677 = vmatpush1.bf16.msra.mxu1 %v11454_v52 }
0x12e9   :  { %8678 = vmatprep.subr.bf16.mxu1 %v11459_v31 }
0x12ec   :  { %8679 = vmatpush2.bf16.msra.mxu1 %v11457_v56 }
0x12ed   :  { %8680 = vmatprep.subr.bf16.mxu1 %v11462_v33 }
0x12f0   :  { %8681 = vmatpush2.bf16.msra.mxu1 %v11460_v35 }
0x12f1   :  { %8682 = vmatprep.subr.bf16.mxu1 %v11465_v36 }
0x12f4   :  { %8683 = vmatpush2.bf16.msra.mxu1 %v11463_v37 }
0x12f5   :  { %8684 = vmatprep.subr.bf16.mxu1 %v11468_v38 }
0x12f8   :  { %8685 = vmatpush2.bf16.msra.mxu1 %v11466_v39 }
0x12f9   :  { %8686 = vmatprep.subr.bf16.mxu1 %v11471_v40 }
0x12fc   :  { %8687 = vmatpush2.bf16.msra.mxu1 %v11469_v41 }
0x12fd   :  { %8688 = vmatprep.subr.bf16.mxu1 %v11474_v42 }
0x1300   :  { %8689 = vmatpush2.bf16.msra.mxu1 %v11472_v43 }
0x1301   :  { %8690 = vmatprep.subr.bf16.mxu1 %v11477_v0 }
0x1304   :  { %8691 = vmatpush2.bf16.msra.mxu1 %v11475_v32 }
0x1305   :  { %8692 = vmatprep.subr.bf16.mxu1 %v11480_v49 }
0x1308   :  { %8693 = vmatpush2.bf16.msra.mxu1 %v11478_v1 }
0x138b   :  { %v8194_v47 = vpop.f32.mrf.mxu1 }
0x138c   :  { %v8195_v48 = vadd.f32 %v8194_v47, %v7993_v45 }
0x138d   :  { %v8196_v23 = vpop.f32.mrf.mxu1 }
0x138e   :  { %v8197_v53 = vadd.f32 %v8196_v23, %v7997_v46  ;;  %v8201_v55 = vmax.f32 %v8195_v48, 0.0 }
0x138f   :  { %v8198_v57 = vpop.f32.mrf.mxu1 }
0x1390   :  { %v8202_v59 = vmax.f32 %v8197_v53, 0.0  ;;  %v8203_v63 = vpack.c.bf16 %v8201_v55, %v8201_v55 }
0x1391   :  { %v8199_v61 = vpop.f32.mrf.mxu1 }
0x1392   :  { %v8204_v62 = vpack.c.bf16 %v8202_v59, %v8202_v59 }
0x1394   :  { %8443 = vmatprep.mubr.bf16.mxu0 %v8204_v62 }
0x1395   :  { %8444 = vmatmul.mubr.bf16.vlgmr.msra.gmra.mxu0 %v8203_v63 }
0x1455   :  { %v8445_v4 = vpop.f32.mrf.mxu0 }
0x1456   :  { %v8446_v5 = vadd.f32 %v8445_v4, %v8244_v3 }
0x1457   :  { %v8447_v51 = vpop.f32.mrf.mxu0 }
0x1458   :  { %v8448_v50 = vadd.f32 %v8447_v51, %v8248_v28  ;;  %v8452_v6 = vmax.f32 %v8446_v5, 0.0 }
0x1459   :  { %v8449_v8 = vpop.f32.mrf.mxu0 }
0x145a   :  { %v8453_v9 = vmax.f32 %v8448_v50, 0.0  ;;  %v8454_v13 = vpack.c.bf16 %v8452_v6, %v8452_v6 }
0x145b   :  { %v8450_v11 = vpop.f32.mrf.mxu0 }
0x145c   :  { %v8455_v34 = vpack.c.bf16 %v8453_v9, %v8453_v9 }
0x145e   :  { %8694 = vmatprep.mubr.bf16.mxu1 %v8455_v34 }
0x145f   :  { %8695 = vmatmul.mubr.bf16.vlgmr.msra.gmra.mxu1 %v8454_v13 }
0x151f   :  { %v8696_v12 = vpop.f32.mrf.mxu1 }
0x1520   :  { %v8697_v15 = vadd.f32 %v8696_v12, %v8495_v58 }
0x1521   :  { %v8698_v54 = vpop.f32.mrf.mxu1 }
0x1522   :  { %v8741_v16 = vrot.slane %v8697_v15, 2  ;;  %v8699_v17 = vadd.f32 %v8698_v54, %v8499_v14 }
0x1523   :  { %v8700_v18 = vpop.f32.mrf.mxu1 }
0x1524   :  { %8745 = vst [vmem:[%s11834_s3 + $0x30] ss:$-12 sps:$4 sm:$0xc3] %v8741_v16   ;;  %v8742_v19 = vrot.slane %v8699_v17, 2 }
0x1525   :  { %v8701_v20 = vpop.f32.mrf.mxu1 }
0x1526   :  { %8746 = vst [vmem:[%s11834_s3 + $0x38] ss:$-12 sps:$4 sm:$0xc3] %v8742_v19  }
0x1527   :  { %8753 = vsyncpa [#allocation3], 1 }
0x1528   :  { %8754 = vsyncpa [#allocation5], 1 }

</bundles_post_ra>
